<compile_context>
chip_gen: v7x
topology: tpu7x:2x2x1
jax: 0.10.0
libtpu: 0.0.40
codegen_flags: <defaults>
</compile_context>

<pallas_src>
import numpy as np
import jax
import jax.numpy as jnp
from jax.experimental import pallas as pl
from jax.experimental.pallas import tpu as pltpu

# ---------------- config (mirrors FEDformerModel / configs) ----------------
B = 2              # batch
SEQ_LEN = 16       # configs.seq_len
D_MODEL = 128      # configs.d_model
N_HEADS = 8        # configs.n_heads (FourierBlock weights hard-code 8 heads)
D_FF = 128         # configs.d_ff
E_LAYERS = 2       # configs.e_layers
MODES = 4          # configs.modes
MOVING_AVG = 5     # configs.moving_avg (odd)
OUT_DIM = 8        # configs.out_dim
DROPOUT = 0.0      # eval-mode -> identity

E_HEAD = D_MODEL // N_HEADS
ENC_MODES = min(MODES, SEQ_LEN // 2)     # kept low modes
R = D_MODEL // SEQ_LEN                   # 8: lane-groups of the ".view" scramble

assert N_HEADS == 8, "FourierBlock weights1 hard-codes 8 heads"
assert D_MODEL % SEQ_LEN == 0, "fused scramble assumes d_model % seq_len == 0"
assert MOVING_AVG % 2 == 1

PARAM_ORDER = ["wqT", "bq", "dftc", "dfts", "wmix", "sync", "syns",
               "woTb", "bo", "dec", "w1T", "w2T", "gamma", "beta",
               "wfcT", "bfc"]


# ---------------------------- Pallas kernel --------------------------------
def fedformer_kernel(x_ref, wqT_ref, bq_ref, dftc_ref, dfts_ref, wmix_ref,
                     sync_ref, syns_ref, woTb_ref, bo_ref, dec_ref,
                     w1T_ref, w2T_ref, gamma_ref, beta_ref,
                     wfcT_ref, bfc_ref, o_ref):
    f32 = jnp.float32
    L, D, M, NL, r = SEQ_LEN, D_MODEL, ENC_MODES, E_LAYERS, R

    x = x_ref[0]                       # (L, D) current residual stream
    dftc = dftc_ref[...]               # (M, L)  cos rows of the forward DFT
    dfts = dfts_ref[...]               # (M, L) -sin rows of the forward DFT
    sync = sync_ref[...]               # (L, M)  irfft cos synthesis (scaled)
    syns = syns_ref[...]               # (L, M)  irfft -sin synthesis (scaled)
    dec = dec_ref[...]                 # (L, L)  I - moving_avg (series_decomp residual)

    # one-hot row masks used to apply the per-mode mixing weight to row k only
    row_ids = jax.lax.broadcasted_iota(jnp.int32, (M, 1), 0)
    mode_masks = [(row_ids == k).astype(f32) for k in range(M)]

    for l in range(NL):
        # ---- AutoCorrelationLayer: query projection (key/value projections are
        #      ignored by FourierBlock in the reference, so they are omitted).
        xq = jnp.dot(x, wqT_ref[l], preferred_element_type=f32) + bq_ref[l]   # (L, D)

        # ---- FourierBlock, mode-batched & lane-dense.
        # forward DFT of the kept low modes: rows = modes, lanes = channels.
        xr = jnp.dot(dftc, xq, preferred_element_type=f32)                    # (M, D)
        xi = jnp.dot(dfts, xq, preferred_element_type=f32)                    # (M, D)
        xcat = jnp.concatenate([xr, xi], axis=1)                              # (M, 2D)

        # per-mode complex head-block mixing; real/imag packed on lanes so each
        # mode is a single (M, 2D)@(2D, 2D) matmul (rows != k are masked to 0).
        # wmix also carries the output-channel permutation that realizes
        # torch's `.view(B, L, H*E)` scramble (folded at pack time).
        ycat = jnp.zeros((M, 2 * D), f32)
        for k in range(M):
            ycat = ycat + jnp.dot(xcat * mode_masks[k], wmix_ref[l, k],
                                  preferred_element_type=f32)                 # (M, 2D)
        yr = ycat[:, :D]                                                      # (M, D)
        yi = ycat[:, D:]                                                      # (M, D)

        # inverse rfft (only kept modes are nonzero) -> gall[t, 16*j + l'] is the
        # irfft value of (scrambled) channel 8*l'+j at time t.
        gall = (jnp.dot(sync, yr, preferred_element_type=f32)
                + jnp.dot(syns, yi, preferred_element_type=f32))              # (L, D)

        # scramble + output projection: transpose once, then 8 dense matmuls
        # against precomputed row-blocks of Wo^T.
        blk = gall.T                                                          # (D, L)
        proj = bo_ref[l]                                                      # (1, D)
        for j in range(r):
            proj = proj + jnp.dot(blk[L * j:L * (j + 1), :], woTb_ref[l, j],
                                  preferred_element_type=f32)                 # (L, D)

        # ---- EncoderLayer: residual + decomp1 + conv1x1-FFN + decomp2
        x = jnp.dot(dec, x + proj, preferred_element_type=f32)                # decomp1
        y = jnp.maximum(jnp.dot(x, w1T_ref[l], preferred_element_type=f32), 0.0)
        y = jnp.dot(y, w2T_ref[l], preferred_element_type=f32)
        x = jnp.dot(dec, x + y, preferred_element_type=f32)                   # decomp2

    # ---- Encoder norm: my_Layernorm ----
    mu = jnp.mean(x, axis=-1, keepdims=True)
    var = jnp.mean((x - mu) ** 2, axis=-1, keepdims=True)
    xh = (x - mu) * jax.lax.rsqrt(var + 1e-5) * gamma_ref[...] + beta_ref[...]
    xh = xh - jnp.mean(xh, axis=0, keepdims=True)

    # ---- head: feat_select == 'mean' over time, then fc ----
    feat = jnp.mean(xh, axis=0, keepdims=True)                                # (1, D)
    o_ref[0] = (jnp.dot(feat, wfcT_ref[...], preferred_element_type=f32)
                + bfc_ref[...])                                               # (1, OUT_DIM)


# ------------------------------ wrapper -------------------------------------
def fedformer_forward(x, kparams):
    in_specs = [pl.BlockSpec((1, SEQ_LEN, D_MODEL), lambda b: (b, 0, 0))]
    args = []
    for name in PARAM_ORDER:
        a = jnp.asarray(kparams[name], jnp.float32)
        args.append(a)
        nd = a.ndim
        in_specs.append(pl.BlockSpec(a.shape, lambda b, nd=nd: (0,) * nd))

    out = pl.pallas_call(
        fedformer_kernel,
        out_shape=jax.ShapeDtypeStruct((B, 1, OUT_DIM), jnp.float32),
        grid=(B,),
        in_specs=in_specs,
        out_specs=pl.BlockSpec((1, 1, OUT_DIM), lambda b: (b, 0, 0)),
        compiler_params=pltpu.CompilerParams(dimension_semantics=("parallel",)),
    )(x, *args)
    return out[:, 0, :]


# ----------------------- deterministic parameter init -----------------------
def init_params(key):
    D, L, M, NL, Dff, H, E = D_MODEL, SEQ_LEN, ENC_MODES, E_LAYERS, D_FF, N_HEADS, E_HEAD
    ks = jax.random.split(key, 12)
    raw = dict(
        Wq=0.1 * jax.random.normal(ks[0], (NL, D, D), jnp.float32),
        bq=0.02 * jax.random.normal(ks[1], (NL, D), jnp.float32),
        Wo=0.1 * jax.random.normal(ks[2], (NL, D, D), jnp.float32),
        bo=0.02 * jax.random.normal(ks[3], (NL, D), jnp.float32),
        # FourierBlock complex weights (n_layers, 8, D//8, D//8, modes)
        wr=jax.random.uniform(ks[4], (NL, H, E, E, M), jnp.float32, 0.0, 0.05),
        wi=jax.random.uniform(ks[5], (NL, H, E, E, M), jnp.float32, 0.0, 0.05),
        # conv1d(kernel_size=1, bias=False) weights (out, in)
        W1=0.1 * jax.random.normal(ks[6], (NL, Dff, D), jnp.float32),
        W2=0.1 * jax.random.normal(ks[7], (NL, D, Dff), jnp.float32),
        gamma=1.0 + 0.1 * jax.random.normal(ks[8], (D,), jnp.float32),
        beta=0.1 * jax.random.normal(ks[9], (D,), jnp.float32),
        Wfc=0.1 * jax.random.normal(ks[10], (OUT_DIM, D), jnp.float32),
        bfc=0.02 * jax.random.normal(ks[11], (OUT_DIM,), jnp.float32),
    )
    return raw


def pack_kernel_params(raw):
    D, L, M, NL, H, E, r = D_MODEL, SEQ_LEN, ENC_MODES, E_LAYERS, N_HEADS, E_HEAD, R
    n = {}
    n["wqT"] = np.transpose(np.asarray(raw["Wq"]), (0, 2, 1))
    n["bq"] = np.asarray(raw["bq"]).reshape(NL, 1, D)

    # forward DFT rows for kept modes (mode_select='low'), rows = modes
    t = np.arange(L).astype(np.float64)
    kk = np.arange(M).astype(np.float64)
    ang = 2.0 * np.pi * np.outer(kk, t) / L          # (M, L)
    n["dftc"] = np.cos(ang).astype(np.float32)       # (M, L)
    n["dfts"] = (-np.sin(ang)).astype(np.float32)    # (M, L)

    # inverse rfft synthesis (scaled, hermitian-doubled except DC / Nyquist)
    coef = np.where(np.arange(M) == 0, 1.0, 2.0)
    if L % 2 == 0:
        coef = np.where(np.arange(M) == L // 2, 1.0, coef)
    n["sync"] = (coef[None, :] * np.cos(ang.T) / L).astype(np.float32)   # (L, M)
    n["syns"] = (-coef[None, :] * np.sin(ang.T) / L).astype(np.float32)  # (L, M)

    # complex mixing weights: block-diagonal over heads, real/imag packed as a
    # (2D, 2D) real matrix, output columns permuted so lane 16*j + l' holds
    # channel 8*l' + j (this folds torch's `.view(B,L,H*E)` scramble).
    perm = np.array([8 * (q % L) + q // L for q in range(D)])
    wr = np.asarray(raw["wr"])
    wi = np.asarray(raw["wi"])
    wmix = np.zeros((NL, M, 2 * D, 2 * D), np.float32)
    for l in range(NL):
        for k in range(M):
            Wr = np.zeros((D, D), np.float32)
            Wi = np.zeros((D, D), np.float32)
            for h in range(H):
                sl = slice(h * E, (h + 1) * E)
                Wr[sl, sl] = wr[l, h, :, :, k]
                Wi[sl, sl] = wi[l, h, :, :, k]
            Wc = np.block([[Wr, Wi], [-Wi, Wr]])          # (2D, 2D)
            wmix[l, k, :, :D] = Wc[:, :D][:, perm]
            wmix[l, k, :, D:] = Wc[:, D:][:, perm]
    n["wmix"] = wmix

    # output projection, split into the r row-blocks WoT[16j:16j+16, :]
    n["woTb"] = np.transpose(np.asarray(raw["Wo"]), (0, 2, 1)).reshape(NL, r, L, D)
    n["bo"] = np.asarray(raw["bo"]).reshape(NL, 1, D)

    # series_decomp residual operator: I - moving_avg (AvgPool1d, edge-replicate)
    K = MOVING_AVG
    pad = (K - 1) // 2
    ama = np.zeros((L, L), np.float32)
    for tt in range(L):
        for jj in range(K):
            s = min(max(tt + jj - pad, 0), L - 1)
            ama[tt, s] += 1.0 / K
    n["dec"] = (np.eye(L, dtype=np.float32) - ama).astype(np.float32)

    n["w1T"] = np.transpose(np.asarray(raw["W1"]), (0, 2, 1))
    n["w2T"] = np.transpose(np.asarray(raw["W2"]), (0, 2, 1))
    n["gamma"] = np.asarray(raw["gamma"]).reshape(1, D)
    n["beta"] = np.asarray(raw["beta"]).reshape(1, D)
    n["wfcT"] = np.asarray(raw["Wfc"]).T
    n["bfc"] = np.asarray(raw["bfc"]).reshape(1, OUT_DIM)
    return {k: jnp.asarray(v, jnp.float32) for k, v in n.items()}


# ------------------- plain-JAX reference (mirrors PyTorch) ------------------
def moving_avg_ref(x, K):
    pad = (K - 1) // 2
    front = jnp.repeat(x[:, :1, :], pad, axis=1)
    end = jnp.repeat(x[:, -1:, :], pad, axis=1)
    xp = jnp.concatenate([front, x, end], axis=1)
    L = x.shape[1]
    return jnp.stack([xp[:, t:t + K, :].mean(axis=1) for t in range(L)], axis=1)


def reference_forward(x, raw):
    D, L, M, NL, H, E = D_MODEL, SEQ_LEN, ENC_MODES, E_LAYERS, N_HEADS, E_HEAD
    WqT = jnp.transpose(raw["Wq"], (0, 2, 1))
    WoT = jnp.transpose(raw["Wo"], (0, 2, 1))
    W1T = jnp.transpose(raw["W1"], (0, 2, 1))
    W2T = jnp.transpose(raw["W2"], (0, 2, 1))
    Wc = raw["wr"] + 1j * raw["wi"]
    Bx = x.shape[0]
    for l in range(NL):
        q = x @ WqT[l] + raw["bq"][l]
        q4 = q.reshape(Bx, L, H, E)
        xp = jnp.transpose(q4, (0, 2, 3, 1))                  # (B, H, E, L)
        x_ft = jnp.fft.rfft(xp, axis=-1)
        out_ft = jnp.zeros((Bx, H, E, L // 2 + 1), dtype=x_ft.dtype)
        for k in range(M):                                    # index = [0..M-1] ('low')
            out_ft = out_ft.at[:, :, :, k].set(
                jnp.einsum("bhi,hio->bho", x_ft[:, :, :, k], Wc[l, :, :, :, k]))
        xt = jnp.fft.irfft(out_ft, n=L, axis=-1)              # (B, H, E, L)
        out = xt.reshape(Bx, L, H * E)                        # torch .view scramble
        new_x = out @ WoT[l] + raw["bo"][l]
        x = x + new_x
        x = x - moving_avg_ref(x, MOVING_AVG)
        y = jax.nn.relu(x @ W1T[l]) @ W2T[l]
        z = x + y
        x = z - moving_avg_ref(z, MOVING_AVG)
    mu = x.mean(axis=-1, keepdims=True)
    var = ((x - mu) ** 2).mean(axis=-1, keepdims=True)
    xh = (x - mu) / jnp.sqrt(var + 1e-5) * raw["gamma"] + raw["beta"]
    xh = xh - xh.mean(axis=1, keepdims=True)
    feat = jnp.transpose(xh, (0, 2, 1)).mean(axis=-1)         # feat_select = 'mean'
    return feat @ raw["Wfc"].T + raw["bfc"]


# ----------------------------------- main ------------------------------------
if __name__ == "__main__":
    key = jax.random.PRNGKey(0)
    kx, kp = jax.random.split(key)
    x = jax.random.normal(kx, (B, SEQ_LEN, D_MODEL), dtype=jnp.float32)

    raw = init_params(kp)
    kparams = pack_kernel_params(raw)

    out = fedformer_forward(x, kparams)
    out = jax.block_until_ready(out)

    # reference at full matmul precision (kernel runs single-pass MXU matmuls
    # with f32 accumulation; the module's mean-pooled head keeps the final
    # output well within the tolerance).
    with jax.default_matmul_precision("highest"):
        ref = jax.block_until_ready(reference_forward(x, raw))
    np.testing.assert_allclose(np.asarray(out), np.asarray(ref), rtol=1e-3, atol=1e-3)

    print("KERNEL_OK")
</pallas_src>

<mosaic_0001>
module attributes {stable_mosaic.version = 11 : i64} {
  func.func @fedformer_kernel(%arg0: i32, %arg1: memref<1x16x128xf32, #tpu.memory_space<vmem>>, %arg2: memref<2x128x128xf32, #tpu.memory_space<vmem>>, %arg3: memref<2x1x128xf32, #tpu.memory_space<vmem>>, %arg4: memref<4x16xf32, #tpu.memory_space<vmem>>, %arg5: memref<4x16xf32, #tpu.memory_space<vmem>>, %arg6: memref<2x4x256x256xf32, #tpu.memory_space<vmem>>, %arg7: memref<16x4xf32, #tpu.memory_space<vmem>>, %arg8: memref<16x4xf32, #tpu.memory_space<vmem>>, %arg9: memref<2x8x16x128xf32, #tpu.memory_space<vmem>>, %arg10: memref<2x1x128xf32, #tpu.memory_space<vmem>>, %arg11: memref<16x16xf32, #tpu.memory_space<vmem>>, %arg12: memref<2x128x128xf32, #tpu.memory_space<vmem>>, %arg13: memref<2x128x128xf32, #tpu.memory_space<vmem>>, %arg14: memref<1x128xf32, #tpu.memory_space<vmem>>, %arg15: memref<1x128xf32, #tpu.memory_space<vmem>>, %arg16: memref<128x8xf32, #tpu.memory_space<vmem>>, %arg17: memref<1x8xf32, #tpu.memory_space<vmem>>, %arg18: memref<1x1x8xf32, #tpu.memory_space<vmem>>) attributes {dimension_semantics = [#tpu.dimension_semantics<parallel>], iteration_bounds = array<i64: 2>, scalar_prefetch = 0 : i64, scratch_operands = 0 : i64, tpu.core_type = #tpu.core_type<tc>, window_params = [{transform_indices = @transform_0, window_bounds = array<i64: 1, 16, 128>}, {pipeline_mode = #tpu.pipeline_mode<synchronous>, transform_indices = @transform_1, window_bounds = array<i64: 2, 128, 128>}, {pipeline_mode = #tpu.pipeline_mode<synchronous>, transform_indices = @transform_2, window_bounds = array<i64: 2, 1, 128>}, {pipeline_mode = #tpu.pipeline_mode<synchronous>, transform_indices = @transform_3, window_bounds = array<i64: 4, 16>}, {pipeline_mode = #tpu.pipeline_mode<synchronous>, transform_indices = @transform_4, window_bounds = array<i64: 4, 16>}, {pipeline_mode = #tpu.pipeline_mode<synchronous>, transform_indices = @transform_5, window_bounds = array<i64: 2, 4, 256, 256>}, {pipeline_mode = #tpu.pipeline_mode<synchronous>, transform_indices = @transform_6, window_bounds = array<i64: 16, 4>}, {pipeline_mode = #tpu.pipeline_mode<synchronous>, transform_indices = @transform_7, window_bounds = array<i64: 16, 4>}, {pipeline_mode = #tpu.pipeline_mode<synchronous>, transform_indices = @transform_8, window_bounds = array<i64: 2, 8, 16, 128>}, {pipeline_mode = #tpu.pipeline_mode<synchronous>, transform_indices = @transform_9, window_bounds = array<i64: 2, 1, 128>}, {pipeline_mode = #tpu.pipeline_mode<synchronous>, transform_indices = @transform_10, window_bounds = array<i64: 16, 16>}, {pipeline_mode = #tpu.pipeline_mode<synchronous>, transform_indices = @transform_11, window_bounds = array<i64: 2, 128, 128>}, {pipeline_mode = #tpu.pipeline_mode<synchronous>, transform_indices = @transform_12, window_bounds = array<i64: 2, 128, 128>}, {pipeline_mode = #tpu.pipeline_mode<synchronous>, transform_indices = @transform_13, window_bounds = array<i64: 1, 128>}, {pipeline_mode = #tpu.pipeline_mode<synchronous>, transform_indices = @transform_14, window_bounds = array<i64: 1, 128>}, {pipeline_mode = #tpu.pipeline_mode<synchronous>, transform_indices = @transform_15, window_bounds = array<i64: 128, 8>}, {pipeline_mode = #tpu.pipeline_mode<synchronous>, transform_indices = @transform_16, window_bounds = array<i64: 1, 8>}, {transform_indices = @transform_17, window_bounds = array<i64: 1, 1, 8>}]} {
    %c0 = arith.constant 0 : index
    %c0_0 = arith.constant 0 : index
    %c0_1 = arith.constant 0 : index
    %0 = vector.load %arg1[%c0, %c0_0, %c0_1] : memref<1x16x128xf32, #tpu.memory_space<vmem>>, vector<1x16x128xf32>
    %1 = vector.shape_cast %0 : vector<1x16x128xf32> to vector<16x128xf32>
    %c0_2 = arith.constant 0 : index
    %c0_3 = arith.constant 0 : index
    %2 = vector.load %arg4[%c0_2, %c0_3] : memref<4x16xf32, #tpu.memory_space<vmem>>, vector<4x16xf32>
    %c0_4 = arith.constant 0 : index
    %c0_5 = arith.constant 0 : index
    %3 = vector.load %arg5[%c0_4, %c0_5] : memref<4x16xf32, #tpu.memory_space<vmem>>, vector<4x16xf32>
    %c0_6 = arith.constant 0 : index
    %c0_7 = arith.constant 0 : index
    %4 = vector.load %arg7[%c0_6, %c0_7] : memref<16x4xf32, #tpu.memory_space<vmem>>, vector<16x4xf32>
    %c0_8 = arith.constant 0 : index
    %c0_9 = arith.constant 0 : index
    %5 = vector.load %arg8[%c0_8, %c0_9] : memref<16x4xf32, #tpu.memory_space<vmem>>, vector<16x4xf32>
    %c0_10 = arith.constant 0 : index
    %c0_11 = arith.constant 0 : index
    %6 = vector.load %arg11[%c0_10, %c0_11] : memref<16x16xf32, #tpu.memory_space<vmem>>, vector<16x16xf32>
    %7 = tpu.iota {dimensions = array<i32: 0>} : vector<4x1xi32>
    %c0_i32 = arith.constant 0 : i32
    %8 = vector.broadcast %c0_i32 : i32 to vector<4x1xi32>
    %9 = arith.cmpi eq, %7, %8 : vector<4x1xi32>
    %10 = arith.extui %9 : vector<4x1xi1> to vector<4x1xi32>
    %11 = arith.sitofp %10 : vector<4x1xi32> to vector<4x1xf32>
    %c1_i32 = arith.constant 1 : i32
    %12 = vector.broadcast %c1_i32 : i32 to vector<4x1xi32>
    %13 = arith.cmpi eq, %7, %12 : vector<4x1xi32>
    %14 = arith.extui %13 : vector<4x1xi1> to vector<4x1xi32>
    %15 = arith.sitofp %14 : vector<4x1xi32> to vector<4x1xf32>
    %c2_i32 = arith.constant 2 : i32
    %16 = vector.broadcast %c2_i32 : i32 to vector<4x1xi32>
    %17 = arith.cmpi eq, %7, %16 : vector<4x1xi32>
    %18 = arith.extui %17 : vector<4x1xi1> to vector<4x1xi32>
    %19 = arith.sitofp %18 : vector<4x1xi32> to vector<4x1xf32>
    %c3_i32 = arith.constant 3 : i32
    %20 = vector.broadcast %c3_i32 : i32 to vector<4x1xi32>
    %21 = arith.cmpi eq, %7, %20 : vector<4x1xi32>
    %22 = arith.extui %21 : vector<4x1xi1> to vector<4x1xi32>
    %23 = arith.sitofp %22 : vector<4x1xi32> to vector<4x1xf32>
    %c0_12 = arith.constant 0 : index
    %c0_13 = arith.constant 0 : index
    %c0_14 = arith.constant 0 : index
    %24 = vector.load %arg2[%c0_12, %c0_13, %c0_14] : memref<2x128x128xf32, #tpu.memory_space<vmem>>, vector<1x128x128xf32>
    %25 = vector.shape_cast %24 : vector<1x128x128xf32> to vector<128x128xf32>
    %cst = arith.constant dense<0.000000e+00> : vector<16x128xf32>
    %26 = tpu.matmul %1, %25, %cst {dimension_numbers = #tpu.dot_dimension_numbers<[1], [0], [0], [1], [0, 0, 1, 1], [], []>} : vector<16x128xf32>, vector<128x128xf32>, vector<16x128xf32> -> vector<16x128xf32>
    %c0_15 = arith.constant 0 : index
    %c0_16 = arith.constant 0 : index
    %c0_17 = arith.constant 0 : index
    %27 = vector.load %arg3[%c0_15, %c0_16, %c0_17] : memref<2x1x128xf32, #tpu.memory_space<vmem>>, vector<1x1x128xf32>
    %28 = vector.shape_cast %27 : vector<1x1x128xf32> to vector<1x128xf32>
    %29 = vector.broadcast %28 : vector<1x128xf32> to vector<16x128xf32>
    %30 = arith.addf %26, %29 : vector<16x128xf32>
    %cst_18 = arith.constant dense<0.000000e+00> : vector<4x128xf32>
    %31 = tpu.matmul %2, %30, %cst_18 {dimension_numbers = #tpu.dot_dimension_numbers<[1], [0], [0], [1], [0, 0, 1, 1], [], []>} : vector<4x16xf32>, vector<16x128xf32>, vector<4x128xf32> -> vector<4x128xf32>
    %cst_19 = arith.constant dense<0.000000e+00> : vector<4x128xf32>
    %32 = tpu.matmul %3, %30, %cst_19 {dimension_numbers = #tpu.dot_dimension_numbers<[1], [0], [0], [1], [0, 0, 1, 1], [], []>} : vector<4x16xf32>, vector<16x128xf32>, vector<4x128xf32> -> vector<4x128xf32>
    %33 = tpu.concatenate %31, %32 in 1 : vector<4x128xf32>, vector<4x128xf32> -> vector<4x256xf32>
    %cst_20 = arith.constant 0.000000e+00 : f32
    %34 = vector.broadcast %cst_20 : f32 to vector<4x256xf32>
    %35 = vector.broadcast %11 : vector<4x1xf32> to vector<4x256xf32>
    %36 = arith.mulf %33, %35 : vector<4x256xf32>
    %c0_21 = arith.constant 0 : index
    %c0_22 = arith.constant 0 : index
    %c0_23 = arith.constant 0 : index
    %c0_24 = arith.constant 0 : index
    %37 = vector.load %arg6[%c0_21, %c0_22, %c0_23, %c0_24] : memref<2x4x256x256xf32, #tpu.memory_space<vmem>>, vector<1x1x256x256xf32>
    %38 = vector.shape_cast %37 : vector<1x1x256x256xf32> to vector<256x256xf32>
    %cst_25 = arith.constant dense<0.000000e+00> : vector<4x256xf32>
    %39 = tpu.matmul %36, %38, %cst_25 {dimension_numbers = #tpu.dot_dimension_numbers<[1], [0], [0], [1], [0, 0, 1, 1], [], []>} : vector<4x256xf32>, vector<256x256xf32>, vector<4x256xf32> -> vector<4x256xf32>
    %40 = arith.addf %34, %39 : vector<4x256xf32>
    %41 = vector.broadcast %15 : vector<4x1xf32> to vector<4x256xf32>
    %42 = arith.mulf %33, %41 : vector<4x256xf32>
    %c0_26 = arith.constant 0 : index
    %c1 = arith.constant 1 : index
    %c0_27 = arith.constant 0 : index
    %c0_28 = arith.constant 0 : index
    %43 = vector.load %arg6[%c0_26, %c1, %c0_27, %c0_28] : memref<2x4x256x256xf32, #tpu.memory_space<vmem>>, vector<1x1x256x256xf32>
    %44 = vector.shape_cast %43 : vector<1x1x256x256xf32> to vector<256x256xf32>
    %cst_29 = arith.constant dense<0.000000e+00> : vector<4x256xf32>
    %45 = tpu.matmul %42, %44, %cst_29 {dimension_numbers = #tpu.dot_dimension_numbers<[1], [0], [0], [1], [0, 0, 1, 1], [], []>} : vector<4x256xf32>, vector<256x256xf32>, vector<4x256xf32> -> vector<4x256xf32>
    %46 = arith.addf %40, %45 : vector<4x256xf32>
    %47 = vector.broadcast %19 : vector<4x1xf32> to vector<4x256xf32>
    %48 = arith.mulf %33, %47 : vector<4x256xf32>
    %c0_30 = arith.constant 0 : index
    %c2 = arith.constant 2 : index
    %c0_31 = arith.constant 0 : index
    %c0_32 = arith.constant 0 : index
    %49 = vector.load %arg6[%c0_30, %c2, %c0_31, %c0_32] : memref<2x4x256x256xf32, #tpu.memory_space<vmem>>, vector<1x1x256x256xf32>
    %50 = vector.shape_cast %49 : vector<1x1x256x256xf32> to vector<256x256xf32>
    %cst_33 = arith.constant dense<0.000000e+00> : vector<4x256xf32>
    %51 = tpu.matmul %48, %50, %cst_33 {dimension_numbers = #tpu.dot_dimension_numbers<[1], [0], [0], [1], [0, 0, 1, 1], [], []>} : vector<4x256xf32>, vector<256x256xf32>, vector<4x256xf32> -> vector<4x256xf32>
    %52 = arith.addf %46, %51 : vector<4x256xf32>
    %53 = vector.broadcast %23 : vector<4x1xf32> to vector<4x256xf32>
    %54 = arith.mulf %33, %53 : vector<4x256xf32>
    %c0_34 = arith.constant 0 : index
    %c3 = arith.constant 3 : index
    %c0_35 = arith.constant 0 : index
    %c0_36 = arith.constant 0 : index
    %55 = vector.load %arg6[%c0_34, %c3, %c0_35, %c0_36] : memref<2x4x256x256xf32, #tpu.memory_space<vmem>>, vector<1x1x256x256xf32>
    %56 = vector.shape_cast %55 : vector<1x1x256x256xf32> to vector<256x256xf32>
    %cst_37 = arith.constant dense<0.000000e+00> : vector<4x256xf32>
    %57 = tpu.matmul %54, %56, %cst_37 {dimension_numbers = #tpu.dot_dimension_numbers<[1], [0], [0], [1], [0, 0, 1, 1], [], []>} : vector<4x256xf32>, vector<256x256xf32>, vector<4x256xf32> -> vector<4x256xf32>
    %58 = arith.addf %52, %57 : vector<4x256xf32>
    %59 = vector.extract_strided_slice %58 {offsets = [0, 0], sizes = [4, 128], strides = [1, 1]} : vector<4x256xf32> to vector<4x128xf32>
    %60 = vector.extract_strided_slice %58 {offsets = [0, 128], sizes = [4, 128], strides = [1, 1]} : vector<4x256xf32> to vector<4x128xf32>
    %cst_38 = arith.constant dense<0.000000e+00> : vector<16x128xf32>
    %61 = tpu.matmul %4, %59, %cst_38 {dimension_numbers = #tpu.dot_dimension_numbers<[1], [0], [0], [1], [0, 0, 1, 1], [], []>} : vector<16x4xf32>, vector<4x128xf32>, vector<16x128xf32> -> vector<16x128xf32>
    %cst_39 = arith.constant dense<0.000000e+00> : vector<16x128xf32>
    %62 = tpu.matmul %5, %60, %cst_39 {dimension_numbers = #tpu.dot_dimension_numbers<[1], [0], [0], [1], [0, 0, 1, 1], [], []>} : vector<16x4xf32>, vector<4x128xf32>, vector<16x128xf32> -> vector<16x128xf32>
    %63 = arith.addf %61, %62 : vector<16x128xf32>
    %64 = tpu.transpose %63, [1, 0] : vector<16x128xf32> -> vector<128x16xf32>
    %c0_40 = arith.constant 0 : index
    %c0_41 = arith.constant 0 : index
    %c0_42 = arith.constant 0 : index
    %65 = vector.load %arg10[%c0_40, %c0_41, %c0_42] : memref<2x1x128xf32, #tpu.memory_space<vmem>>, vector<1x1x128xf32>
    %66 = vector.shape_cast %65 : vector<1x1x128xf32> to vector<1x128xf32>
    %67 = vector.extract_strided_slice %64 {offsets = [0, 0], sizes = [16, 16], strides = [1, 1]} : vector<128x16xf32> to vector<16x16xf32>
    %c0_43 = arith.constant 0 : index
    %c0_44 = arith.constant 0 : index
    %c0_45 = arith.constant 0 : index
    %c0_46 = arith.constant 0 : index
    %68 = vector.load %arg9[%c0_43, %c0_44, %c0_45, %c0_46] : memref<2x8x16x128xf32, #tpu.memory_space<vmem>>, vector<1x1x16x128xf32>
    %69 = vector.shape_cast %68 : vector<1x1x16x128xf32> to vector<16x128xf32>
    %cst_47 = arith.constant dense<0.000000e+00> : vector<16x128xf32>
    %70 = tpu.matmul %67, %69, %cst_47 {dimension_numbers = #tpu.dot_dimension_numbers<[1], [0], [0], [1], [0, 0, 1, 1], [], []>} : vector<16x16xf32>, vector<16x128xf32>, vector<16x128xf32> -> vector<16x128xf32>
    %71 = vector.broadcast %66 : vector<1x128xf32> to vector<16x128xf32>
    %72 = arith.addf %71, %70 : vector<16x128xf32>
    %73 = vector.extract_strided_slice %64 {offsets = [16, 0], sizes = [16, 16], strides = [1, 1]} : vector<128x16xf32> to vector<16x16xf32>
    %c0_48 = arith.constant 0 : index
    %c1_49 = arith.constant 1 : index
    %c0_50 = arith.constant 0 : index
    %c0_51 = arith.constant 0 : index
    %74 = vector.load %arg9[%c0_48, %c1_49, %c0_50, %c0_51] : memref<2x8x16x128xf32, #tpu.memory_space<vmem>>, vector<1x1x16x128xf32>
    %75 = vector.shape_cast %74 : vector<1x1x16x128xf32> to vector<16x128xf32>
    %cst_52 = arith.constant dense<0.000000e+00> : vector<16x128xf32>
    %76 = tpu.matmul %73, %75, %cst_52 {dimension_numbers = #tpu.dot_dimension_numbers<[1], [0], [0], [1], [0, 0, 1, 1], [], []>} : vector<16x16xf32>, vector<16x128xf32>, vector<16x128xf32> -> vector<16x128xf32>
    %77 = arith.addf %72, %76 : vector<16x128xf32>
    %78 = vector.extract_strided_slice %64 {offsets = [32, 0], sizes = [16, 16], strides = [1, 1]} : vector<128x16xf32> to vector<16x16xf32>
    %c0_53 = arith.constant 0 : index
    %c2_54 = arith.constant 2 : index
    %c0_55 = arith.constant 0 : index
    %c0_56 = arith.constant 0 : index
    %79 = vector.load %arg9[%c0_53, %c2_54, %c0_55, %c0_56] : memref<2x8x16x128xf32, #tpu.memory_space<vmem>>, vector<1x1x16x128xf32>
    %80 = vector.shape_cast %79 : vector<1x1x16x128xf32> to vector<16x128xf32>
    %cst_57 = arith.constant dense<0.000000e+00> : vector<16x128xf32>
    %81 = tpu.matmul %78, %80, %cst_57 {dimension_numbers = #tpu.dot_dimension_numbers<[1], [0], [0], [1], [0, 0, 1, 1], [], []>} : vector<16x16xf32>, vector<16x128xf32>, vector<16x128xf32> -> vector<16x128xf32>
    %82 = arith.addf %77, %81 : vector<16x128xf32>
    %83 = vector.extract_strided_slice %64 {offsets = [48, 0], sizes = [16, 16], strides = [1, 1]} : vector<128x16xf32> to vector<16x16xf32>
    %c0_58 = arith.constant 0 : index
    %c3_59 = arith.constant 3 : index
    %c0_60 = arith.constant 0 : index
    %c0_61 = arith.constant 0 : index
    %84 = vector.load %arg9[%c0_58, %c3_59, %c0_60, %c0_61] : memref<2x8x16x128xf32, #tpu.memory_space<vmem>>, vector<1x1x16x128xf32>
    %85 = vector.shape_cast %84 : vector<1x1x16x128xf32> to vector<16x128xf32>
    %cst_62 = arith.constant dense<0.000000e+00> : vector<16x128xf32>
    %86 = tpu.matmul %83, %85, %cst_62 {dimension_numbers = #tpu.dot_dimension_numbers<[1], [0], [0], [1], [0, 0, 1, 1], [], []>} : vector<16x16xf32>, vector<16x128xf32>, vector<16x128xf32> -> vector<16x128xf32>
    %87 = arith.addf %82, %86 : vector<16x128xf32>
    %88 = vector.extract_strided_slice %64 {offsets = [64, 0], sizes = [16, 16], strides = [1, 1]} : vector<128x16xf32> to vector<16x16xf32>
    %c0_63 = arith.constant 0 : index
    %c4 = arith.constant 4 : index
    %c0_64 = arith.constant 0 : index
    %c0_65 = arith.constant 0 : index
    %89 = vector.load %arg9[%c0_63, %c4, %c0_64, %c0_65] : memref<2x8x16x128xf32, #tpu.memory_space<vmem>>, vector<1x1x16x128xf32>
    %90 = vector.shape_cast %89 : vector<1x1x16x128xf32> to vector<16x128xf32>
    %cst_66 = arith.constant dense<0.000000e+00> : vector<16x128xf32>
    %91 = tpu.matmul %88, %90, %cst_66 {dimension_numbers = #tpu.dot_dimension_numbers<[1], [0], [0], [1], [0, 0, 1, 1], [], []>} : vector<16x16xf32>, vector<16x128xf32>, vector<16x128xf32> -> vector<16x128xf32>
    %92 = arith.addf %87, %91 : vector<16x128xf32>
    %93 = vector.extract_strided_slice %64 {offsets = [80, 0], sizes = [16, 16], strides = [1, 1]} : vector<128x16xf32> to vector<16x16xf32>
    %c0_67 = arith.constant 0 : index
    %c5 = arith.constant 5 : index
    %c0_68 = arith.constant 0 : index
    %c0_69 = arith.constant 0 : index
    %94 = vector.load %arg9[%c0_67, %c5, %c0_68, %c0_69] : memref<2x8x16x128xf32, #tpu.memory_space<vmem>>, vector<1x1x16x128xf32>
    %95 = vector.shape_cast %94 : vector<1x1x16x128xf32> to vector<16x128xf32>
    %cst_70 = arith.constant dense<0.000000e+00> : vector<16x128xf32>
    %96 = tpu.matmul %93, %95, %cst_70 {dimension_numbers = #tpu.dot_dimension_numbers<[1], [0], [0], [1], [0, 0, 1, 1], [], []>} : vector<16x16xf32>, vector<16x128xf32>, vector<16x128xf32> -> vector<16x128xf32>
    %97 = arith.addf %92, %96 : vector<16x128xf32>
    %98 = vector.extract_strided_slice %64 {offsets = [96, 0], sizes = [16, 16], strides = [1, 1]} : vector<128x16xf32> to vector<16x16xf32>
    %c0_71 = arith.constant 0 : index
    %c6 = arith.constant 6 : index
    %c0_72 = arith.constant 0 : index
    %c0_73 = arith.constant 0 : index
    %99 = vector.load %arg9[%c0_71, %c6, %c0_72, %c0_73] : memref<2x8x16x128xf32, #tpu.memory_space<vmem>>, vector<1x1x16x128xf32>
    %100 = vector.shape_cast %99 : vector<1x1x16x128xf32> to vector<16x128xf32>
    %cst_74 = arith.constant dense<0.000000e+00> : vector<16x128xf32>
    %101 = tpu.matmul %98, %100, %cst_74 {dimension_numbers = #tpu.dot_dimension_numbers<[1], [0], [0], [1], [0, 0, 1, 1], [], []>} : vector<16x16xf32>, vector<16x128xf32>, vector<16x128xf32> -> vector<16x128xf32>
    %102 = arith.addf %97, %101 : vector<16x128xf32>
    %103 = vector.extract_strided_slice %64 {offsets = [112, 0], sizes = [16, 16], strides = [1, 1]} : vector<128x16xf32> to vector<16x16xf32>
    %c0_75 = arith.constant 0 : index
    %c7 = arith.constant 7 : index
    %c0_76 = arith.constant 0 : index
    %c0_77 = arith.constant 0 : index
    %104 = vector.load %arg9[%c0_75, %c7, %c0_76, %c0_77] : memref<2x8x16x128xf32, #tpu.memory_space<vmem>>, vector<1x1x16x128xf32>
    %105 = vector.shape_cast %104 : vector<1x1x16x128xf32> to vector<16x128xf32>
    %cst_78 = arith.constant dense<0.000000e+00> : vector<16x128xf32>
    %106 = tpu.matmul %103, %105, %cst_78 {dimension_numbers = #tpu.dot_dimension_numbers<[1], [0], [0], [1], [0, 0, 1, 1], [], []>} : vector<16x16xf32>, vector<16x128xf32>, vector<16x128xf32> -> vector<16x128xf32>
    %107 = arith.addf %102, %106 : vector<16x128xf32>
    %108 = arith.addf %1, %107 : vector<16x128xf32>
    %cst_79 = arith.constant dense<0.000000e+00> : vector<16x128xf32>
    %109 = tpu.matmul %6, %108, %cst_79 {dimension_numbers = #tpu.dot_dimension_numbers<[1], [0], [0], [1], [0, 0, 1, 1], [], []>} : vector<16x16xf32>, vector<16x128xf32>, vector<16x128xf32> -> vector<16x128xf32>
    %c0_80 = arith.constant 0 : index
    %c0_81 = arith.constant 0 : index
    %c0_82 = arith.constant 0 : index
    %110 = vector.load %arg12[%c0_80, %c0_81, %c0_82] : memref<2x128x128xf32, #tpu.memory_space<vmem>>, vector<1x128x128xf32>
    %111 = vector.shape_cast %110 : vector<1x128x128xf32> to vector<128x128xf32>
    %cst_83 = arith.constant dense<0.000000e+00> : vector<16x128xf32>
    %112 = tpu.matmul %109, %111, %cst_83 {dimension_numbers = #tpu.dot_dimension_numbers<[1], [0], [0], [1], [0, 0, 1, 1], [], []>} : vector<16x128xf32>, vector<128x128xf32>, vector<16x128xf32> -> vector<16x128xf32>
    %cst_84 = arith.constant 0.000000e+00 : f32
    %113 = vector.broadcast %cst_84 : f32 to vector<16x128xf32>
    %114 = arith.maximumf %112, %113 : vector<16x128xf32>
    %c0_85 = arith.constant 0 : index
    %c0_86 = arith.constant 0 : index
    %c0_87 = arith.constant 0 : index
    %115 = vector.load %arg13[%c0_85, %c0_86, %c0_87] : memref<2x128x128xf32, #tpu.memory_space<vmem>>, vector<1x128x128xf32>
    %116 = vector.shape_cast %115 : vector<1x128x128xf32> to vector<128x128xf32>
    %cst_88 = arith.constant dense<0.000000e+00> : vector<16x128xf32>
    %117 = tpu.matmul %114, %116, %cst_88 {dimension_numbers = #tpu.dot_dimension_numbers<[1], [0], [0], [1], [0, 0, 1, 1], [], []>} : vector<16x128xf32>, vector<128x128xf32>, vector<16x128xf32> -> vector<16x128xf32>
    %118 = arith.addf %109, %117 : vector<16x128xf32>
    %cst_89 = arith.constant dense<0.000000e+00> : vector<16x128xf32>
    %119 = tpu.matmul %6, %118, %cst_89 {dimension_numbers = #tpu.dot_dimension_numbers<[1], [0], [0], [1], [0, 0, 1, 1], [], []>} : vector<16x16xf32>, vector<16x128xf32>, vector<16x128xf32> -> vector<16x128xf32>
    %c1_90 = arith.constant 1 : index
    %c0_91 = arith.constant 0 : index
    %c0_92 = arith.constant 0 : index
    %120 = vector.load %arg2[%c1_90, %c0_91, %c0_92] : memref<2x128x128xf32, #tpu.memory_space<vmem>>, vector<1x128x128xf32>
    %121 = vector.shape_cast %120 : vector<1x128x128xf32> to vector<128x128xf32>
    %cst_93 = arith.constant dense<0.000000e+00> : vector<16x128xf32>
    %122 = tpu.matmul %119, %121, %cst_93 {dimension_numbers = #tpu.dot_dimension_numbers<[1], [0], [0], [1], [0, 0, 1, 1], [], []>} : vector<16x128xf32>, vector<128x128xf32>, vector<16x128xf32> -> vector<16x128xf32>
    %c1_94 = arith.constant 1 : index
    %c0_95 = arith.constant 0 : index
    %c0_96 = arith.constant 0 : index
    %123 = vector.load %arg3[%c1_94, %c0_95, %c0_96] : memref<2x1x128xf32, #tpu.memory_space<vmem>>, vector<1x1x128xf32>
    %124 = vector.shape_cast %123 : vector<1x1x128xf32> to vector<1x128xf32>
    %125 = vector.broadcast %124 : vector<1x128xf32> to vector<16x128xf32>
    %126 = arith.addf %122, %125 : vector<16x128xf32>
    %cst_97 = arith.constant dense<0.000000e+00> : vector<4x128xf32>
    %127 = tpu.matmul %2, %126, %cst_97 {dimension_numbers = #tpu.dot_dimension_numbers<[1], [0], [0], [1], [0, 0, 1, 1], [], []>} : vector<4x16xf32>, vector<16x128xf32>, vector<4x128xf32> -> vector<4x128xf32>
    %cst_98 = arith.constant dense<0.000000e+00> : vector<4x128xf32>
    %128 = tpu.matmul %3, %126, %cst_98 {dimension_numbers = #tpu.dot_dimension_numbers<[1], [0], [0], [1], [0, 0, 1, 1], [], []>} : vector<4x16xf32>, vector<16x128xf32>, vector<4x128xf32> -> vector<4x128xf32>
    %129 = tpu.concatenate %127, %128 in 1 : vector<4x128xf32>, vector<4x128xf32> -> vector<4x256xf32>
    %cst_99 = arith.constant 0.000000e+00 : f32
    %130 = vector.broadcast %cst_99 : f32 to vector<4x256xf32>
    %131 = vector.broadcast %11 : vector<4x1xf32> to vector<4x256xf32>
    %132 = arith.mulf %129, %131 : vector<4x256xf32>
    %c1_100 = arith.constant 1 : index
    %c0_101 = arith.constant 0 : index
    %c0_102 = arith.constant 0 : index
    %c0_103 = arith.constant 0 : index
    %133 = vector.load %arg6[%c1_100, %c0_101, %c0_102, %c0_103] : memref<2x4x256x256xf32, #tpu.memory_space<vmem>>, vector<1x1x256x256xf32>
    %134 = vector.shape_cast %133 : vector<1x1x256x256xf32> to vector<256x256xf32>
    %cst_104 = arith.constant dense<0.000000e+00> : vector<4x256xf32>
    %135 = tpu.matmul %132, %134, %cst_104 {dimension_numbers = #tpu.dot_dimension_numbers<[1], [0], [0], [1], [0, 0, 1, 1], [], []>} : vector<4x256xf32>, vector<256x256xf32>, vector<4x256xf32> -> vector<4x256xf32>
    %136 = arith.addf %130, %135 : vector<4x256xf32>
    %137 = vector.broadcast %15 : vector<4x1xf32> to vector<4x256xf32>
    %138 = arith.mulf %129, %137 : vector<4x256xf32>
    %c1_105 = arith.constant 1 : index
    %c1_106 = arith.constant 1 : index
    %c0_107 = arith.constant 0 : index
    %c0_108 = arith.constant 0 : index
    %139 = vector.load %arg6[%c1_105, %c1_106, %c0_107, %c0_108] : memref<2x4x256x256xf32, #tpu.memory_space<vmem>>, vector<1x1x256x256xf32>
    %140 = vector.shape_cast %139 : vector<1x1x256x256xf32> to vector<256x256xf32>
    %cst_109 = arith.constant dense<0.000000e+00> : vector<4x256xf32>
    %141 = tpu.matmul %138, %140, %cst_109 {dimension_numbers = #tpu.dot_dimension_numbers<[1], [0], [0], [1], [0, 0, 1, 1], [], []>} : vector<4x256xf32>, vector<256x256xf32>, vector<4x256xf32> -> vector<4x256xf32>
    %142 = arith.addf %136, %141 : vector<4x256xf32>
    %143 = vector.broadcast %19 : vector<4x1xf32> to vector<4x256xf32>
    %144 = arith.mulf %129, %143 : vector<4x256xf32>
    %c1_110 = arith.constant 1 : index
    %c2_111 = arith.constant 2 : index
    %c0_112 = arith.constant 0 : index
    %c0_113 = arith.constant 0 : index
    %145 = vector.load %arg6[%c1_110, %c2_111, %c0_112, %c0_113] : memref<2x4x256x256xf32, #tpu.memory_space<vmem>>, vector<1x1x256x256xf32>
    %146 = vector.shape_cast %145 : vector<1x1x256x256xf32> to vector<256x256xf32>
    %cst_114 = arith.constant dense<0.000000e+00> : vector<4x256xf32>
    %147 = tpu.matmul %144, %146, %cst_114 {dimension_numbers = #tpu.dot_dimension_numbers<[1], [0], [0], [1], [0, 0, 1, 1], [], []>} : vector<4x256xf32>, vector<256x256xf32>, vector<4x256xf32> -> vector<4x256xf32>
    %148 = arith.addf %142, %147 : vector<4x256xf32>
    %149 = vector.broadcast %23 : vector<4x1xf32> to vector<4x256xf32>
    %150 = arith.mulf %129, %149 : vector<4x256xf32>
    %c1_115 = arith.constant 1 : index
    %c3_116 = arith.constant 3 : index
    %c0_117 = arith.constant 0 : index
    %c0_118 = arith.constant 0 : index
    %151 = vector.load %arg6[%c1_115, %c3_116, %c0_117, %c0_118] : memref<2x4x256x256xf32, #tpu.memory_space<vmem>>, vector<1x1x256x256xf32>
    %152 = vector.shape_cast %151 : vector<1x1x256x256xf32> to vector<256x256xf32>
    %cst_119 = arith.constant dense<0.000000e+00> : vector<4x256xf32>
    %153 = tpu.matmul %150, %152, %cst_119 {dimension_numbers = #tpu.dot_dimension_numbers<[1], [0], [0], [1], [0, 0, 1, 1], [], []>} : vector<4x256xf32>, vector<256x256xf32>, vector<4x256xf32> -> vector<4x256xf32>
    %154 = arith.addf %148, %153 : vector<4x256xf32>
    %155 = vector.extract_strided_slice %154 {offsets = [0, 0], sizes = [4, 128], strides = [1, 1]} : vector<4x256xf32> to vector<4x128xf32>
    %156 = vector.extract_strided_slice %154 {offsets = [0, 128], sizes = [4, 128], strides = [1, 1]} : vector<4x256xf32> to vector<4x128xf32>
    %cst_120 = arith.constant dense<0.000000e+00> : vector<16x128xf32>
    %157 = tpu.matmul %4, %155, %cst_120 {dimension_numbers = #tpu.dot_dimension_numbers<[1], [0], [0], [1], [0, 0, 1, 1], [], []>} : vector<16x4xf32>, vector<4x128xf32>, vector<16x128xf32> -> vector<16x128xf32>
    %cst_121 = arith.constant dense<0.000000e+00> : vector<16x128xf32>
    %158 = tpu.matmul %5, %156, %cst_121 {dimension_numbers = #tpu.dot_dimension_numbers<[1], [0], [0], [1], [0, 0, 1, 1], [], []>} : vector<16x4xf32>, vector<4x128xf32>, vector<16x128xf32> -> vector<16x128xf32>
    %159 = arith.addf %157, %158 : vector<16x128xf32>
    %160 = tpu.transpose %159, [1, 0] : vector<16x128xf32> -> vector<128x16xf32>
    %c1_122 = arith.constant 1 : index
    %c0_123 = arith.constant 0 : index
    %c0_124 = arith.constant 0 : index
    %161 = vector.load %arg10[%c1_122, %c0_123, %c0_124] : memref<2x1x128xf32, #tpu.memory_space<vmem>>, vector<1x1x128xf32>
    %162 = vector.shape_cast %161 : vector<1x1x128xf32> to vector<1x128xf32>
    %163 = vector.extract_strided_slice %160 {offsets = [0, 0], sizes = [16, 16], strides = [1, 1]} : vector<128x16xf32> to vector<16x16xf32>
    %c1_125 = arith.constant 1 : index
    %c0_126 = arith.constant 0 : index
    %c0_127 = arith.constant 0 : index
    %c0_128 = arith.constant 0 : index
    %164 = vector.load %arg9[%c1_125, %c0_126, %c0_127, %c0_128] : memref<2x8x16x128xf32, #tpu.memory_space<vmem>>, vector<1x1x16x128xf32>
    %165 = vector.shape_cast %164 : vector<1x1x16x128xf32> to vector<16x128xf32>
    %cst_129 = arith.constant dense<0.000000e+00> : vector<16x128xf32>
    %166 = tpu.matmul %163, %165, %cst_129 {dimension_numbers = #tpu.dot_dimension_numbers<[1], [0], [0], [1], [0, 0, 1, 1], [], []>} : vector<16x16xf32>, vector<16x128xf32>, vector<16x128xf32> -> vector<16x128xf32>
    %167 = vector.broadcast %162 : vector<1x128xf32> to vector<16x128xf32>
    %168 = arith.addf %167, %166 : vector<16x128xf32>
    %169 = vector.extract_strided_slice %160 {offsets = [16, 0], sizes = [16, 16], strides = [1, 1]} : vector<128x16xf32> to vector<16x16xf32>
    %c1_130 = arith.constant 1 : index
    %c1_131 = arith.constant 1 : index
    %c0_132 = arith.constant 0 : index
    %c0_133 = arith.constant 0 : index
    %170 = vector.load %arg9[%c1_130, %c1_131, %c0_132, %c0_133] : memref<2x8x16x128xf32, #tpu.memory_space<vmem>>, vector<1x1x16x128xf32>
    %171 = vector.shape_cast %170 : vector<1x1x16x128xf32> to vector<16x128xf32>
    %cst_134 = arith.constant dense<0.000000e+00> : vector<16x128xf32>
    %172 = tpu.matmul %169, %171, %cst_134 {dimension_numbers = #tpu.dot_dimension_numbers<[1], [0], [0], [1], [0, 0, 1, 1], [], []>} : vector<16x16xf32>, vector<16x128xf32>, vector<16x128xf32> -> vector<16x128xf32>
    %173 = arith.addf %168, %172 : vector<16x128xf32>
    %174 = vector.extract_strided_slice %160 {offsets = [32, 0], sizes = [16, 16], strides = [1, 1]} : vector<128x16xf32> to vector<16x16xf32>
    %c1_135 = arith.constant 1 : index
    %c2_136 = arith.constant 2 : index
    %c0_137 = arith.constant 0 : index
    %c0_138 = arith.constant 0 : index
    %175 = vector.load %arg9[%c1_135, %c2_136, %c0_137, %c0_138] : memref<2x8x16x128xf32, #tpu.memory_space<vmem>>, vector<1x1x16x128xf32>
    %176 = vector.shape_cast %175 : vector<1x1x16x128xf32> to vector<16x128xf32>
    %cst_139 = arith.constant dense<0.000000e+00> : vector<16x128xf32>
    %177 = tpu.matmul %174, %176, %cst_139 {dimension_numbers = #tpu.dot_dimension_numbers<[1], [0], [0], [1], [0, 0, 1, 1], [], []>} : vector<16x16xf32>, vector<16x128xf32>, vector<16x128xf32> -> vector<16x128xf32>
    %178 = arith.addf %173, %177 : vector<16x128xf32>
    %179 = vector.extract_strided_slice %160 {offsets = [48, 0], sizes = [16, 16], strides = [1, 1]} : vector<128x16xf32> to vector<16x16xf32>
    %c1_140 = arith.constant 1 : index
    %c3_141 = arith.constant 3 : index
    %c0_142 = arith.constant 0 : index
    %c0_143 = arith.constant 0 : index
    %180 = vector.load %arg9[%c1_140, %c3_141, %c0_142, %c0_143] : memref<2x8x16x128xf32, #tpu.memory_space<vmem>>, vector<1x1x16x128xf32>
    %181 = vector.shape_cast %180 : vector<1x1x16x128xf32> to vector<16x128xf32>
    %cst_144 = arith.constant dense<0.000000e+00> : vector<16x128xf32>
    %182 = tpu.matmul %179, %181, %cst_144 {dimension_numbers = #tpu.dot_dimension_numbers<[1], [0], [0], [1], [0, 0, 1, 1], [], []>} : vector<16x16xf32>, vector<16x128xf32>, vector<16x128xf32> -> vector<16x128xf32>
    %183 = arith.addf %178, %182 : vector<16x128xf32>
    %184 = vector.extract_strided_slice %160 {offsets = [64, 0], sizes = [16, 16], strides = [1, 1]} : vector<128x16xf32> to vector<16x16xf32>
    %c1_145 = arith.constant 1 : index
    %c4_146 = arith.constant 4 : index
    %c0_147 = arith.constant 0 : index
    %c0_148 = arith.constant 0 : index
    %185 = vector.load %arg9[%c1_145, %c4_146, %c0_147, %c0_148] : memref<2x8x16x128xf32, #tpu.memory_space<vmem>>, vector<1x1x16x128xf32>
    %186 = vector.shape_cast %185 : vector<1x1x16x128xf32> to vector<16x128xf32>
    %cst_149 = arith.constant dense<0.000000e+00> : vector<16x128xf32>
    %187 = tpu.matmul %184, %186, %cst_149 {dimension_numbers = #tpu.dot_dimension_numbers<[1], [0], [0], [1], [0, 0, 1, 1], [], []>} : vector<16x16xf32>, vector<16x128xf32>, vector<16x128xf32> -> vector<16x128xf32>
    %188 = arith.addf %183, %187 : vector<16x128xf32>
    %189 = vector.extract_strided_slice %160 {offsets = [80, 0], sizes = [16, 16], strides = [1, 1]} : vector<128x16xf32> to vector<16x16xf32>
    %c1_150 = arith.constant 1 : index
    %c5_151 = arith.constant 5 : index
    %c0_152 = arith.constant 0 : index
    %c0_153 = arith.constant 0 : index
    %190 = vector.load %arg9[%c1_150, %c5_151, %c0_152, %c0_153] : memref<2x8x16x128xf32, #tpu.memory_space<vmem>>, vector<1x1x16x128xf32>
    %191 = vector.shape_cast %190 : vector<1x1x16x128xf32> to vector<16x128xf32>
    %cst_154 = arith.constant dense<0.000000e+00> : vector<16x128xf32>
    %192 = tpu.matmul %189, %191, %cst_154 {dimension_numbers = #tpu.dot_dimension_numbers<[1], [0], [0], [1], [0, 0, 1, 1], [], []>} : vector<16x16xf32>, vector<16x128xf32>, vector<16x128xf32> -> vector<16x128xf32>
    %193 = arith.addf %188, %192 : vector<16x128xf32>
    %194 = vector.extract_strided_slice %160 {offsets = [96, 0], sizes = [16, 16], strides = [1, 1]} : vector<128x16xf32> to vector<16x16xf32>
    %c1_155 = arith.constant 1 : index
    %c6_156 = arith.constant 6 : index
    %c0_157 = arith.constant 0 : index
    %c0_158 = arith.constant 0 : index
    %195 = vector.load %arg9[%c1_155, %c6_156, %c0_157, %c0_158] : memref<2x8x16x128xf32, #tpu.memory_space<vmem>>, vector<1x1x16x128xf32>
    %196 = vector.shape_cast %195 : vector<1x1x16x128xf32> to vector<16x128xf32>
    %cst_159 = arith.constant dense<0.000000e+00> : vector<16x128xf32>
    %197 = tpu.matmul %194, %196, %cst_159 {dimension_numbers = #tpu.dot_dimension_numbers<[1], [0], [0], [1], [0, 0, 1, 1], [], []>} : vector<16x16xf32>, vector<16x128xf32>, vector<16x128xf32> -> vector<16x128xf32>
    %198 = arith.addf %193, %197 : vector<16x128xf32>
    %199 = vector.extract_strided_slice %160 {offsets = [112, 0], sizes = [16, 16], strides = [1, 1]} : vector<128x16xf32> to vector<16x16xf32>
    %c1_160 = arith.constant 1 : index
    %c7_161 = arith.constant 7 : index
    %c0_162 = arith.constant 0 : index
    %c0_163 = arith.constant 0 : index
    %200 = vector.load %arg9[%c1_160, %c7_161, %c0_162, %c0_163] : memref<2x8x16x128xf32, #tpu.memory_space<vmem>>, vector<1x1x16x128xf32>
    %201 = vector.shape_cast %200 : vector<1x1x16x128xf32> to vector<16x128xf32>
    %cst_164 = arith.constant dense<0.000000e+00> : vector<16x128xf32>
    %202 = tpu.matmul %199, %201, %cst_164 {dimension_numbers = #tpu.dot_dimension_numbers<[1], [0], [0], [1], [0, 0, 1, 1], [], []>} : vector<16x16xf32>, vector<16x128xf32>, vector<16x128xf32> -> vector<16x128xf32>
    %203 = arith.addf %198, %202 : vector<16x128xf32>
    %204 = arith.addf %119, %203 : vector<16x128xf32>
    %cst_165 = arith.constant dense<0.000000e+00> : vector<16x128xf32>
    %205 = tpu.matmul %6, %204, %cst_165 {dimension_numbers = #tpu.dot_dimension_numbers<[1], [0], [0], [1], [0, 0, 1, 1], [], []>} : vector<16x16xf32>, vector<16x128xf32>, vector<16x128xf32> -> vector<16x128xf32>
    %c1_166 = arith.constant 1 : index
    %c0_167 = arith.constant 0 : index
    %c0_168 = arith.constant 0 : index
    %206 = vector.load %arg12[%c1_166, %c0_167, %c0_168] : memref<2x128x128xf32, #tpu.memory_space<vmem>>, vector<1x128x128xf32>
    %207 = vector.shape_cast %206 : vector<1x128x128xf32> to vector<128x128xf32>
    %cst_169 = arith.constant dense<0.000000e+00> : vector<16x128xf32>
    %208 = tpu.matmul %205, %207, %cst_169 {dimension_numbers = #tpu.dot_dimension_numbers<[1], [0], [0], [1], [0, 0, 1, 1], [], []>} : vector<16x128xf32>, vector<128x128xf32>, vector<16x128xf32> -> vector<16x128xf32>
    %cst_170 = arith.constant 0.000000e+00 : f32
    %209 = vector.broadcast %cst_170 : f32 to vector<16x128xf32>
    %210 = arith.maximumf %208, %209 : vector<16x128xf32>
    %c1_171 = arith.constant 1 : index
    %c0_172 = arith.constant 0 : index
    %c0_173 = arith.constant 0 : index
    %211 = vector.load %arg13[%c1_171, %c0_172, %c0_173] : memref<2x128x128xf32, #tpu.memory_space<vmem>>, vector<1x128x128xf32>
    %212 = vector.shape_cast %211 : vector<1x128x128xf32> to vector<128x128xf32>
    %cst_174 = arith.constant dense<0.000000e+00> : vector<16x128xf32>
    %213 = tpu.matmul %210, %212, %cst_174 {dimension_numbers = #tpu.dot_dimension_numbers<[1], [0], [0], [1], [0, 0, 1, 1], [], []>} : vector<16x128xf32>, vector<128x128xf32>, vector<16x128xf32> -> vector<16x128xf32>
    %214 = arith.addf %205, %213 : vector<16x128xf32>
    %cst_175 = arith.constant dense<0.000000e+00> : vector<16x128xf32>
    %215 = tpu.matmul %6, %214, %cst_175 {dimension_numbers = #tpu.dot_dimension_numbers<[1], [0], [0], [1], [0, 0, 1, 1], [], []>} : vector<16x16xf32>, vector<16x128xf32>, vector<16x128xf32> -> vector<16x128xf32>
    %cst_176 = arith.constant dense<0.000000e+00> : vector<16xf32>
    %216 = vector.multi_reduction <add>, %215, %cst_176 [1] : vector<16x128xf32> to vector<16xf32>
    %217 = vector.shape_cast %216 : vector<16xf32> to vector<16x1xf32>
    %cst_177 = arith.constant 1.280000e+02 : f32
    %218 = vector.broadcast %cst_177 : f32 to vector<16x1xf32>
    %219 = arith.divf %217, %218 : vector<16x1xf32>
    %220 = vector.broadcast %219 : vector<16x1xf32> to vector<16x128xf32>
    %221 = arith.subf %215, %220 : vector<16x128xf32>
    %222 = arith.mulf %221, %221 : vector<16x128xf32>
    %cst_178 = arith.constant dense<0.000000e+00> : vector<16xf32>
    %223 = vector.multi_reduction <add>, %222, %cst_178 [1] : vector<16x128xf32> to vector<16xf32>
    %224 = vector.shape_cast %223 : vector<16xf32> to vector<16x1xf32>
    %cst_179 = arith.constant 1.280000e+02 : f32
    %225 = vector.broadcast %cst_179 : f32 to vector<16x1xf32>
    %226 = arith.divf %224, %225 : vector<16x1xf32>
    %227 = vector.broadcast %219 : vector<16x1xf32> to vector<16x128xf32>
    %228 = arith.subf %215, %227 : vector<16x128xf32>
    %cst_180 = arith.constant 9.99999974E-6 : f32
    %229 = vector.broadcast %cst_180 : f32 to vector<16x1xf32>
    %230 = arith.addf %226, %229 : vector<16x1xf32>
    %231 = math.rsqrt %230 : vector<16x1xf32>
    %232 = vector.broadcast %231 : vector<16x1xf32> to vector<16x128xf32>
    %233 = arith.mulf %228, %232 : vector<16x128xf32>
    %c0_181 = arith.constant 0 : index
    %c0_182 = arith.constant 0 : index
    %234 = vector.load %arg14[%c0_181, %c0_182] : memref<1x128xf32, #tpu.memory_space<vmem>>, vector<1x128xf32>
    %235 = vector.broadcast %234 : vector<1x128xf32> to vector<16x128xf32>
    %236 = arith.mulf %233, %235 : vector<16x128xf32>
    %c0_183 = arith.constant 0 : index
    %c0_184 = arith.constant 0 : index
    %237 = vector.load %arg15[%c0_183, %c0_184] : memref<1x128xf32, #tpu.memory_space<vmem>>, vector<1x128xf32>
    %238 = vector.broadcast %237 : vector<1x128xf32> to vector<16x128xf32>
    %239 = arith.addf %236, %238 : vector<16x128xf32>
    %cst_185 = arith.constant dense<0.000000e+00> : vector<128xf32>
    %240 = vector.multi_reduction <add>, %239, %cst_185 [0] : vector<16x128xf32> to vector<128xf32>
    %241 = vector.shape_cast %240 : vector<128xf32> to vector<1x128xf32>
    %cst_186 = arith.constant 1.600000e+01 : f32
    %242 = vector.broadcast %cst_186 : f32 to vector<1x128xf32>
    %243 = arith.divf %241, %242 : vector<1x128xf32>
    %244 = vector.broadcast %243 : vector<1x128xf32> to vector<16x128xf32>
    %245 = arith.subf %239, %244 : vector<16x128xf32>
    %cst_187 = arith.constant dense<0.000000e+00> : vector<128xf32>
    %246 = vector.multi_reduction <add>, %245, %cst_187 [0] : vector<16x128xf32> to vector<128xf32>
    %247 = vector.shape_cast %246 : vector<128xf32> to vector<1x128xf32>
    %cst_188 = arith.constant 1.600000e+01 : f32
    %248 = vector.broadcast %cst_188 : f32 to vector<1x128xf32>
    %249 = arith.divf %247, %248 : vector<1x128xf32>
    %c0_189 = arith.constant 0 : index
    %c0_190 = arith.constant 0 : index
    %250 = vector.load %arg16[%c0_189, %c0_190] : memref<128x8xf32, #tpu.memory_space<vmem>>, vector<128x8xf32>
    %cst_191 = arith.constant dense<0.000000e+00> : vector<1x8xf32>
    %251 = tpu.matmul %249, %250, %cst_191 {dimension_numbers = #tpu.dot_dimension_numbers<[1], [0], [0], [1], [0, 0, 1, 1], [], []>} : vector<1x128xf32>, vector<128x8xf32>, vector<1x8xf32> -> vector<1x8xf32>
    %c0_192 = arith.constant 0 : index
    %c0_193 = arith.constant 0 : index
    %252 = vector.load %arg17[%c0_192, %c0_193] : memref<1x8xf32, #tpu.memory_space<vmem>>, vector<1x8xf32>
    %253 = arith.addf %251, %252 : vector<1x8xf32>
    %c0_194 = arith.constant 0 : index
    %c0_195 = arith.constant 0 : index
    %c0_196 = arith.constant 0 : index
    %254 = vector.load %arg18[%c0_194, %c0_195, %c0_196] : memref<1x1x8xf32, #tpu.memory_space<vmem>>, vector<1x1x8xf32>
    %255 = vector.shape_cast %254 : vector<1x1x8xf32> to vector<1x8xf32>
    %256 = vector.shape_cast %253 : vector<1x8xf32> to vector<1x1x8xf32>
    tpu.vector_store %arg18[%c0_194, %c0_195, %c0_196], %256 {strides = array<i32>} : memref<1x1x8xf32, #tpu.memory_space<vmem>>, vector<1x1x8xf32>,
    return
  }
  func.func @transform_0(%arg0: i32) -> (i32, i32, i32) {
    %c0_i32 = arith.constant 0 : i32
    %c0_i32_0 = arith.constant 0 : i32
    %c0_i32_1 = arith.constant 0 : i32
    return %arg0, %c0_i32, %c0_i32_0 : i32, i32, i32
  }
  func.func @transform_1(%arg0: i32) -> (i32, i32, i32) {
    %c0_i32 = arith.constant 0 : i32
    %c0_i32_0 = arith.constant 0 : i32
    %c0_i32_1 = arith.constant 0 : i32
    %c0_i32_2 = arith.constant 0 : i32
    return %c0_i32, %c0_i32_0, %c0_i32_1 : i32, i32, i32
  }
  func.func @transform_2(%arg0: i32) -> (i32, i32, i32) {
    %c0_i32 = arith.constant 0 : i32
    %c0_i32_0 = arith.constant 0 : i32
    %c0_i32_1 = arith.constant 0 : i32
    %c0_i32_2 = arith.constant 0 : i32
    return %c0_i32, %c0_i32_0, %c0_i32_1 : i32, i32, i32
  }
  func.func @transform_3(%arg0: i32) -> (i32, i32) {
    %c0_i32 = arith.constant 0 : i32
    %c0_i32_0 = arith.constant 0 : i32
    %c0_i32_1 = arith.constant 0 : i32
    return %c0_i32, %c0_i32_0 : i32, i32
  }
  func.func @transform_4(%arg0: i32) -> (i32, i32) {
    %c0_i32 = arith.constant 0 : i32
    %c0_i32_0 = arith.constant 0 : i32
    %c0_i32_1 = arith.constant 0 : i32
    return %c0_i32, %c0_i32_0 : i32, i32
  }
  func.func @transform_5(%arg0: i32) -> (i32, i32, i32, i32) {
    %c0_i32 = arith.constant 0 : i32
    %c0_i32_0 = arith.constant 0 : i32
    %c0_i32_1 = arith.constant 0 : i32
    %c0_i32_2 = arith.constant 0 : i32
    %c0_i32_3 = arith.constant 0 : i32
    return %c0_i32, %c0_i32_0, %c0_i32_1, %c0_i32_2 : i32, i32, i32, i32
  }
  func.func @transform_6(%arg0: i32) -> (i32, i32) {
    %c0_i32 = arith.constant 0 : i32
    %c0_i32_0 = arith.constant 0 : i32
    %c0_i32_1 = arith.constant 0 : i32
    return %c0_i32, %c0_i32_0 : i32, i32
  }
  func.func @transform_7(%arg0: i32) -> (i32, i32) {
    %c0_i32 = arith.constant 0 : i32
    %c0_i32_0 = arith.constant 0 : i32
    %c0_i32_1 = arith.constant 0 : i32
    return %c0_i32, %c0_i32_0 : i32, i32
  }
  func.func @transform_8(%arg0: i32) -> (i32, i32, i32, i32) {
    %c0_i32 = arith.constant 0 : i32
    %c0_i32_0 = arith.constant 0 : i32
    %c0_i32_1 = arith.constant 0 : i32
    %c0_i32_2 = arith.constant 0 : i32
    %c0_i32_3 = arith.constant 0 : i32
    return %c0_i32, %c0_i32_0, %c0_i32_1, %c0_i32_2 : i32, i32, i32, i32
  }
  func.func @transform_9(%arg0: i32) -> (i32, i32, i32) {
    %c0_i32 = arith.constant 0 : i32
    %c0_i32_0 = arith.constant 0 : i32
    %c0_i32_1 = arith.constant 0 : i32
    %c0_i32_2 = arith.constant 0 : i32
    return %c0_i32, %c0_i32_0, %c0_i32_1 : i32, i32, i32
  }
  func.func @transform_10(%arg0: i32) -> (i32, i32) {
    %c0_i32 = arith.constant 0 : i32
    %c0_i32_0 = arith.constant 0 : i32
    %c0_i32_1 = arith.constant 0 : i32
    return %c0_i32, %c0_i32_0 : i32, i32
  }
  func.func @transform_11(%arg0: i32) -> (i32, i32, i32) {
    %c0_i32 = arith.constant 0 : i32
    %c0_i32_0 = arith.constant 0 : i32
    %c0_i32_1 = arith.constant 0 : i32
    %c0_i32_2 = arith.constant 0 : i32
    return %c0_i32, %c0_i32_0, %c0_i32_1 : i32, i32, i32
  }
  func.func @transform_12(%arg0: i32) -> (i32, i32, i32) {
    %c0_i32 = arith.constant 0 : i32
    %c0_i32_0 = arith.constant 0 : i32
    %c0_i32_1 = arith.constant 0 : i32
    %c0_i32_2 = arith.constant 0 : i32
    return %c0_i32, %c0_i32_0, %c0_i32_1 : i32, i32, i32
  }
  func.func @transform_13(%arg0: i32) -> (i32, i32) {
    %c0_i32 = arith.constant 0 : i32
    %c0_i32_0 = arith.constant 0 : i32
    %c0_i32_1 = arith.constant 0 : i32
    return %c0_i32, %c0_i32_0 : i32, i32
  }
  func.func @transform_14(%arg0: i32) -> (i32, i32) {
    %c0_i32 = arith.constant 0 : i32
    %c0_i32_0 = arith.constant 0 : i32
    %c0_i32_1 = arith.constant 0 : i32
    return %c0_i32, %c0_i32_0 : i32, i32
  }
  func.func @transform_15(%arg0: i32) -> (i32, i32) {
    %c0_i32 = arith.constant 0 : i32
    %c0_i32_0 = arith.constant 0 : i32
    %c0_i32_1 = arith.constant 0 : i32
    return %c0_i32, %c0_i32_0 : i32, i32
  }
  func.func @transform_16(%arg0: i32) -> (i32, i32) {
    %c0_i32 = arith.constant 0 : i32
    %c0_i32_0 = arith.constant 0 : i32
    %c0_i32_1 = arith.constant 0 : i32
    return %c0_i32, %c0_i32_0 : i32, i32
  }
  func.func @transform_17(%arg0: i32) -> (i32, i32, i32) {
    %c0_i32 = arith.constant 0 : i32
    %c0_i32_0 = arith.constant 0 : i32
    %c0_i32_1 = arith.constant 0 : i32
    return %arg0, %c0_i32, %c0_i32_0 : i32, i32, i32
  }
}

</mosaic_0001>

<bundles_post_ra>
// kernel: tpu_custom_call.1
= control target key start
LH: loop header
LB: loop body
LE: loop exit
PB: predicated region body
PF: predicated region fallthrough
CT: control target
= control target key end

     0   :  { %s8378_s0 = inlined_call_operand.hbm [shape: f32[2,16,128], index: 0, kind: input, shape index: {}]   ;;  %s8379_s1 = inlined_call_operand.hbm [shape: f32[2,128,128], index: 1, kind: input, shape index: {}]   ;;  %s8380_s2 = inlined_call_operand.hbm [shape: f32[2,1,128], index: 2, kind: input, shape index: {}]   ;;  %s8381_s3 = inlined_call_operand.hbm [shape: f32[4,16], index: 3, kind: input, shape index: {}]   ;;  %s8382_s4 = inlined_call_operand.hbm [shape: f32[4,16], index: 4, kind: input, shape index: {}]   ;;  %s8383_s5 = inlined_call_operand.hbm [shape: f32[2,4,256,256], index: 5, kind: input, shape index: {}]   ;;  %s8384_s6 = inlined_call_operand.vmem [shape: f32[16,4], index: 6, kind: input, shape index: {}]   ;;  %s8385_s7 = inlined_call_operand.vmem [shape: f32[16,4], index: 7, kind: input, shape index: {}]   ;;  %s8386_s8 = inlined_call_operand.hbm [shape: f32[2,8,16,128], index: 8, kind: input, shape index: {}]   ;;  %s8387_s9 = inlined_call_operand.hbm [shape: f32[2,1,128], index: 9, kind: input, shape index: {}]   ;;  %s8388_s10 = inlined_call_operand.hbm [shape: f32[16,16], index: 10, kind: input, shape index: {}]   ;;  %s8389_s11 = inlined_call_operand.hbm [shape: f32[2,128,128], index: 11, kind: input, shape index: {}]   ;;  %s8390_s12 = inlined_call_operand.hbm [shape: f32[2,128,128], index: 12, kind: input, shape index: {}]   ;;  %s8391_s13 = inlined_call_operand.hbm [shape: f32[1,128], index: 13, kind: input, shape index: {}]   ;;  %s8392_s14 = inlined_call_operand.hbm [shape: f32[1,128], index: 14, kind: input, shape index: {}]   ;;  %s8393_s15 = inlined_call_operand.vmem [shape: f32[128,8], index: 15, kind: input, shape index: {}]   ;;  %s8394_s16 = inlined_call_operand.hbm [shape: f32[1,8], index: 16, kind: input, shape index: {}]   ;;  %s8395_s17 = inlined_call_operand.hbm [shape: f32[2,1,8], index: 17, kind: output, shape index: {}]  }
   0x1   :  { %8417 = sst [smem:[#allocation39_spill]] %s8378_s0 }
   0x2   :  { %8418 = sst [smem:[#allocation40_spill]] %s8379_s1 }
   0x3   :  { %8419 = sst [smem:[#allocation41_spill]] %s8380_s2 }
   0x4   :  { %8420 = sst [smem:[#allocation42_spill]] %s8381_s3 }
   0x5   :  { %8421 = sst [smem:[#allocation43_spill]] %s8382_s4 }
   0x6   :  { %8422 = sst [smem:[#allocation44_spill]] %s8383_s5 }
   0x7   :  { %8423 = sst [smem:[#allocation45_spill]] %s8384_s6 }
   0x8   :  { %8424 = sst [smem:[#allocation46_spill]] %s8385_s7 }
   0x9   :  { %8425 = sst [smem:[#allocation47_spill]] %s8393_s15 }
   0xa   :  { %8426 = sst [smem:[#allocation48_spill]] %s8395_s17 }
   0xb   :  { %22 = vsyncpa [#allocation3], 0 }
   0xc   :  { %24 = vsyncpa [#allocation3 + $0x1], 0 }
   0xd   :  { %25 = vsyncpa [#allocation6], 0 }
   0xe   :  { %26 = vsyncpa [#allocation9], 0 }
   0xf   :  { %27 = vsyncpa [#allocation12], 0 }
  0x10   :  { %28 = vsyncpa [#allocation15], 0 }
  0x11   :  { %29 = vsyncpa [#allocation18], 0 }
  0x12   :  { %30 = vsyncpa [#allocation21], 0 }
  0x13   :  { %31 = vsyncpa [#allocation24], 0 }
  0x14   :  { %32 = vsyncpa [#allocation4], 0 }
  0x15   :  { %34 = vsyncpa [#allocation4 + $0x1], 0  ;;  %s7616_s24 = smov 0   ;;  %s7618_s25 = smov 0  }
  0x16   :  { %s7620_s26 = smov 0   ;;  %s7622_s27 = smov 0  }
  0x17 LB: > { %8427 = sst [smem:[#allocation35_spill]] %s7489_s24  ;;  %s7503_s28 = smov [#allocation5]   ;;  %s7501_s27 = sphi %s7622_s27, %s8483_s27   ;;  %s7497_s26 = sphi %s7620_s26, %s8482_s26   ;;  %s7493_s25 = sphi %s7618_s25, %s8481_s25   ;;  %s7489_s24 = sphi %s7616_s24, %s8479_s24  }
  0x18   : > { %8428 = sst [smem:[#allocation36_spill]] %s7493_s25  ;;  %s445_s29 = sshll.u32 %s7503_s28, 4  ;;  %s7642_s29 = int_to_ptr.vmem [resolvable:$true] %s445_s29 }
  0x19   : > { %s7637_s0 = sadd.s32 4294967295, %s7501_s27   ;;  %p5182_p0 = scmp.ge.s32.totalorder %s7501_s27, 1 }
  0x1a   : > { %8429 = sst [smem:[#allocation37_spill]] %s7637_s0  ;;  %p8407_p1 = scmp.eq.s32.totalorder %s7637_s0, 0 }
  0x1b   : > { %p433_p2 = scmp.lt.s32.totalorder %s7501_s27, 3  ;;  %s7504_s18 = smov [#allocation8]  }
  0x1c   : > { %s472_s19 = sshll.u32 %s7504_s18, 4  ;;  %s7505_s20 = smov [#allocation11]   ;;  %s7657_s19 = int_to_ptr.vmem [resolvable:$true] %s472_s19 }
  0x1d   : > { %p7644_p3 = pnand %p5182_p0, %p433_p2  ;;  %s7659_s21 = sshll.u32 %s7505_s20, 4  ;;  %s494_s21 = int_to_ptr.vmem [resolvable:$true] %s7659_s21 }
  0x1e   : > { %s8433_s28 = sld [smem:[#allocation40_spill]] }
  0x1f   : > { %s8430_s30 = scalar_select %p7644_p3, 1, 0 }
  0x20   : > { %p6871_p5 = pneg %p7644_p3 }
  0x21   : > { %8431 = sst [smem:[#allocation38_spill]] %s8430_s30 }
  0x22   : > { %p7653_p6 = pnand %p6871_p5, %p8407_p1 }
  0x24   : > { %s7013_s17 = scalar_lea.hbm %s8433_s28, 4096  ;;  %p7669_p8 = pneg %p7653_p6 }
  0x25   : > { %p7014_p7 = scmp.ne.s32.totalorder %s8433_s28, %s7013_s17  ;;  %p7020_p11 = scmp.lt.u32.totalorder %s7013_s17, %s8433_s28 }
  0x27   : > { %p7016_p9 = pnand %p7669_p8, %p7014_p7 }
  0x29   : > { %p7017_p10 = pneg %p7016_p9 }
  0x2b   : > { %p7022_p12 = pnand %p7020_p11, %p7017_p10 }
  0x2d   : > { %7025 = shalt.err (!%p7022_p12)
}
  0x2e   : > { %s7026_s6 = scalar_lea.vmem %s7642_s29, 4096  ;;  %p7034_p5 = scmp.lt.s32.totalorder %s7642_s29, %s7642_s29 }
  0x2f   : > { %p7027_p13 = scmp.ne.s32.totalorder %s7642_s29, %s7026_s6  ;;  %p7035_p4 = scmp.lt.s32.totalorder %s7026_s6, %s7026_s6 }
  0x31   : > { %p7029_p0 = pnand %p7027_p13, %p7669_p8  ;;  %p7036_p7 = por %p7035_p4, %p7034_p5 }
  0x33   : > { %p7030_p2 = pneg %p7029_p0 }
  0x35   : > { %p7037_p9 = pnand %p7036_p7, %p7030_p2 }
  0x37   : > { %7040 = shalt.err (!%p7037_p9)
}
  0x38   : > { %s8409_s15 = smov 128   ;;  %s8411_s7 = smov 8  }
  0x39   : > { %6874 = dma.hbm_to_vmem [thread:$0]  (!%p7653_p6), %s8433_s28, 4096, %s7642_s29, [#allocation6], %s8409_s15, %s8409_s15, %s8411_s7  }
  0x3a   : > { %s8435_s3 = sld [smem:[#allocation42_spill]] }
  0x40   : > { %s7041_s6 = scalar_lea.hbm %s8435_s3, 64 }
  0x41   : > { %p7042_p4 = scmp.ne.s32.totalorder %s8435_s3, %s7041_s6  ;;  %p7048_p12 = scmp.lt.u32.totalorder %s7041_s6, %s8435_s3 }
  0x43   : > { %p7044_p10 = pnand %p7042_p4, %p7669_p8 }
  0x45   : > { %p7045_p11 = pneg %p7044_p10 }
  0x47   : > { %p7050_p13 = pnand %p7048_p12, %p7045_p11 }
  0x49   : > { %7053 = shalt.err (!%p7050_p13)
}
  0x4a   : > { %s7054_s29 = scalar_lea.vmem %s7657_s19, 64  ;;  %p7062_p7 = scmp.lt.s32.totalorder %s7657_s19, %s7657_s19 }
  0x4b   : > { %p7055_p0 = scmp.ne.s32.totalorder %s7657_s19, %s7054_s29  ;;  %p7063_p9 = scmp.lt.s32.totalorder %s7054_s29, %s7054_s29 }
  0x4d   : > { %p7057_p2 = pnand %p7055_p0, %p7669_p8  ;;  %p7064_p4 = por %p7063_p9, %p7062_p7 }
  0x4f   : > { %p7058_p5 = pneg %p7057_p2 }
  0x51   : > { %p7065_p10 = pnand %p7064_p4, %p7058_p5 }
  0x53   : > { %7068 = shalt.err (!%p7065_p10)
}
  0x54   : > { %6880 = dma.hbm_to_vmem [thread:$0]  (!%p7653_p6), %s8435_s3, 64, %s7657_s19, [#allocation9]  }
  0x55   : > { %s8436_s5 = sld [smem:[#allocation44_spill]] }
  0x5b   : > { %s7069_s17 = scalar_lea.hbm %s8436_s5, 65536 }
  0x5c   : > { %p7070_p11 = scmp.ne.s32.totalorder %s8436_s5, %s7069_s17  ;;  %p7076_p0 = scmp.lt.u32.totalorder %s7069_s17, %s8436_s5 }
  0x5e   : > { %p7072_p12 = pnand %p7070_p11, %p7669_p8 }
  0x60   : > { %p7073_p13 = pneg %p7072_p12 }
  0x62   : > { %p7078_p2 = pnand %p7076_p0, %p7073_p13 }
  0x64   : > { %7081 = shalt.err (!%p7078_p2)
}
  0x65   : > { %s7082_s29 = scalar_lea.vmem %s494_s21, 65536  ;;  %p7090_p4 = scmp.lt.s32.totalorder %s494_s21, %s494_s21 }
  0x66   : > { %p7083_p5 = scmp.ne.s32.totalorder %s494_s21, %s7082_s29  ;;  %p7091_p10 = scmp.lt.s32.totalorder %s7082_s29, %s7082_s29 }
  0x68   : > { %p7085_p7 = pnand %p7083_p5, %p7669_p8  ;;  %p7092_p1 = por %p7091_p10, %p7090_p4 }
  0x6a   : > { %p7086_p9 = pneg %p7085_p7 }
  0x6c   : > { %p7093_p3 = pnand %p7092_p1, %p7086_p9 }
  0x6e   : > { %7096 = shalt.err (!%p7093_p3)
}
  0x6f   : > { %s7508_s19 = smov 256   ;;  %s8413_s24 = smov 16  }
  0x70   : > { %6886 = dma.hbm_to_vmem [thread:$0]  (!%p7653_p6), %s8436_s5, 65536, %s494_s21, [#allocation12], %s7508_s19, %s7508_s19, %s8413_s24  }
  0x71   : > { %s7510_s30 = smov [#allocation14]   ;;  %s7511_s22 = smov [#allocation17]  }
  0x72   : > { %s525_s17 = sshll.u32 %s7510_s30, 4  ;;  %s551_s23 = sshll.u32 %s7511_s22, 4  ;;  %s526_s17 = int_to_ptr.vmem [resolvable:$true] %s525_s17  ;;  %s7736_s23 = int_to_ptr.vmem [resolvable:$true] %s551_s23 }
  0x73   : > { %s7097_s29 = scalar_lea.hbm %s8387_s9, 32 }
  0x74   : > { %p7098_p1 = scmp.ne.s32.totalorder %s8387_s9, %s7097_s29  ;;  %p7104_p12 = scmp.lt.u32.totalorder %s7097_s29, %s8387_s9 }
  0x76   : > { %p7100_p3 = pnand %p7098_p1, %p7669_p8 }
  0x78   : > { %p7101_p11 = pneg %p7100_p3 }
  0x7a   : > { %p7106_p13 = pnand %p7104_p12, %p7101_p11 }
  0x7c   : > { %7109 = shalt.err (!%p7106_p13)
}
  0x7d   : > { %s7110_s19 = scalar_lea.vmem %s526_s17, 32  ;;  %p7118_p7 = scmp.lt.s32.totalorder %s526_s17, %s526_s17 }
  0x7e   : > { %p7111_p0 = scmp.ne.s32.totalorder %s526_s17, %s7110_s19  ;;  %p7119_p9 = scmp.lt.s32.totalorder %s7110_s19, %s7110_s19 }
  0x80   : > { %p7113_p2 = pnand %p7111_p0, %p7669_p8  ;;  %p7120_p4 = por %p7119_p9, %p7118_p7 }
  0x82   : > { %p7114_p5 = pneg %p7113_p2 }
  0x84   : > { %p7121_p10 = pnand %p7120_p4, %p7114_p5 }
  0x86   : > { %7124 = shalt.err (!%p7121_p10)
}
  0x87   : > { %s8414_s15 = smov 1   ;;  %s7125_s20 = scalar_lea.hbm %s8389_s11, 4096 }
  0x88   : > { %6892 = dma.hbm_to_vmem [thread:$0]  (!%p7653_p6), %s8387_s9, 32, %s526_s17, [#allocation15], %s8413_s24, %s8413_s24, %s8414_s15  }
  0x89   : > { %p7126_p1 = scmp.ne.s32.totalorder %s8389_s11, %s7125_s20  ;;  %p7132_p12 = scmp.lt.u32.totalorder %s7125_s20, %s8389_s11 }
  0x8b   : > { %p7128_p3 = pnand %p7126_p1, %p7669_p8 }
  0x8d   : > { %p7129_p11 = pneg %p7128_p3 }
  0x8f   : > { %p7134_p13 = pnand %p7132_p12, %p7129_p11 }
  0x91   : > { %7137 = shalt.err (!%p7134_p13)
}
  0x92   : > { %s7138_s17 = scalar_lea.vmem %s7736_s23, 4096  ;;  %p7146_p7 = scmp.lt.s32.totalorder %s7736_s23, %s7736_s23 }
  0x93   : > { %p7139_p0 = scmp.ne.s32.totalorder %s7736_s23, %s7138_s17  ;;  %p7147_p9 = scmp.lt.s32.totalorder %s7138_s17, %s7138_s17 }
  0x95   : > { %p7141_p2 = pnand %p7139_p0, %p7669_p8  ;;  %p7148_p4 = por %p7147_p9, %p7146_p7 }
  0x97   : > { %p7142_p5 = pneg %p7141_p2 }
  0x99   : > { %p7149_p10 = pnand %p7148_p4, %p7142_p5 }
  0x9b   : > { %7152 = shalt.err (!%p7149_p10)
}
  0x9c   : > { %s8437_s19 = smov 8   ;;  %s8438_s7 = smov 128  }
  0x9d   : > { %6898 = dma.hbm_to_vmem [thread:$0]  (!%p7653_p6), %s8389_s11, 4096, %s7736_s23, [#allocation18], %s8438_s7, %s8438_s7, %s8437_s19  }
  0x9e   : > { %s7513_s22 = smov [#allocation20]   ;;  %s7514_s6 = smov [#allocation7]  }
  0x9f   : > { %s578_s20 = sshll.u32 %s7513_s22, 4  ;;  %s458_s29 = sshll.u32 %s7514_s6, 4  ;;  %s579_s20 = int_to_ptr.vmem [resolvable:$true] %s578_s20  ;;  %s7785_s29 = int_to_ptr.vmem [resolvable:$true] %s458_s29 }
  0xa0   : > { %s7153_s17 = scalar_lea.hbm %s8391_s13, 16 }
  0xa1   : > { %p7154_p1 = scmp.ne.s32.totalorder %s8391_s13, %s7153_s17  ;;  %p7160_p12 = scmp.lt.u32.totalorder %s7153_s17, %s8391_s13 }
  0xa3   : > { %p7156_p3 = pnand %p7154_p1, %p7669_p8 }
  0xa5   : > { %p7157_p11 = pneg %p7156_p3 }
  0xa7   : > { %p7162_p13 = pnand %p7160_p12, %p7157_p11 }
  0xa9   : > { %7165 = shalt.err (!%p7162_p13)
}
  0xaa   : > { %s7166_s30 = scalar_lea.vmem %s579_s20, 16  ;;  %s7173_s22 = scalar_lea.vmem %s579_s20, 32 }
  0xab   : > { %p7167_p0 = scmp.ne.s32.totalorder %s579_s20, %s7166_s30  ;;  %p7174_p7 = scmp.lt.s32.totalorder %s579_s20, %s579_s20 }
  0xac   : > { %p7175_p9 = scmp.lt.s32.totalorder %s7173_s22, %s7166_s30 }
  0xad   : > { %p7169_p2 = pnand %p7167_p0, %p7669_p8 }
  0xae   : > { %p7176_p4 = por %p7175_p9, %p7174_p7 }
  0xaf   : > { %p7170_p5 = pneg %p7169_p2 }
  0xb1   : > { %p7177_p10 = pnand %p7176_p4, %p7170_p5 }
  0xb3   : > { %7180 = shalt.err (!%p7177_p10)
}
  0xb4   : > { %6904 = dma.hbm_to_vmem [thread:$0]  (!%p7653_p6), %s8391_s13, 16, %s579_s20, [#allocation21]  }
  0xb5   : > { %s8439_s2 = sld [smem:[#allocation41_spill]] }
  0xbb   : > { %s7181_s21 = scalar_lea.hbm %s8439_s2, 32 }
  0xbc   : > { %p7182_p1 = scmp.ne.s32.totalorder %s8439_s2, %s7181_s21  ;;  %p7188_p12 = scmp.lt.u32.totalorder %s7181_s21, %s8439_s2 }
  0xbe   : > { %p7184_p3 = pnand %p7182_p1, %p7669_p8 }
  0xc0   : > { %p7185_p11 = pneg %p7184_p3 }
  0xc2   : > { %p7190_p13 = pnand %p7188_p12, %p7185_p11 }
  0xc4   : > { %7193 = shalt.err (!%p7190_p13)
}
  0xc5   : > { %s7194_s20 = scalar_lea.vmem %s7785_s29, 32  ;;  %p7202_p7 = scmp.lt.s32.totalorder %s7785_s29, %s7785_s29 }
  0xc6   : > { %p7195_p0 = scmp.ne.s32.totalorder %s7785_s29, %s7194_s20  ;;  %p7203_p9 = scmp.lt.s32.totalorder %s7194_s20, %s7194_s20 }
  0xc8   : > { %p7197_p2 = pnand %p7195_p0, %p7669_p8  ;;  %p7204_p4 = por %p7203_p9, %p7202_p7 }
  0xca   : > { %p7198_p5 = pneg %p7197_p2 }
  0xcc   : > { %p7205_p10 = pnand %p7204_p4, %p7198_p5 }
  0xce   : > { %7208 = shalt.err (!%p7205_p10)
}
  0xcf   : > { %s8440_s22 = smov 1   ;;  %s8441_s24 = smov 16  }
  0xd0   : > { %6877 = dma.hbm_to_vmem [thread:$0]  (!%p7653_p6), %s8439_s2, 32, %s7785_s29, [#allocation6], %s8441_s24, %s8441_s24, %s8440_s22  }
  0xd1   : > { %s7515_s25 = smov [#allocation10]   ;;  %s7516_s17 = smov [#allocation13]  }
  0xd2   : > { %s483_s21 = sshll.u32 %s7515_s25, 4  ;;  %s512_s0 = sshll.u32 %s7516_s17, 4  ;;  %s484_s21 = int_to_ptr.vmem [resolvable:$true] %s483_s21  ;;  %s7831_s0 = int_to_ptr.vmem [resolvable:$true] %s512_s0 }
  0xd3   : > { %s8442_s4 = sld [smem:[#allocation43_spill]] }
  0xd9   : > { %s7209_s20 = scalar_lea.hbm %s8442_s4, 64 }
  0xda   : > { %p7210_p1 = scmp.ne.s32.totalorder %s8442_s4, %s7209_s20  ;;  %p7216_p12 = scmp.lt.u32.totalorder %s7209_s20, %s8442_s4 }
  0xdc   : > { %p7212_p3 = pnand %p7210_p1, %p7669_p8 }
  0xde   : > { %p7213_p11 = pneg %p7212_p3 }
  0xe0   : > { %p7218_p13 = pnand %p7216_p12, %p7213_p11 }
  0xe2   : > { %7221 = shalt.err (!%p7218_p13)
}
  0xe3   : > { %s7222_s22 = scalar_lea.vmem %s484_s21, 64  ;;  %p7230_p7 = scmp.lt.s32.totalorder %s484_s21, %s484_s21 }
  0xe4   : > { %p7223_p0 = scmp.ne.s32.totalorder %s484_s21, %s7222_s22  ;;  %p7231_p9 = scmp.lt.s32.totalorder %s7222_s22, %s7222_s22 }
  0xe6   : > { %p7225_p2 = pnand %p7223_p0, %p7669_p8  ;;  %p7232_p4 = por %p7231_p9, %p7230_p7 }
  0xe8   : > { %p7226_p5 = pneg %p7225_p2 }
  0xea   : > { %p7233_p10 = pnand %p7232_p4, %p7226_p5 }
  0xec   : > { %7236 = shalt.err (!%p7233_p10)
}
  0xed   : > { %6883 = dma.hbm_to_vmem [thread:$0]  (!%p7653_p6), %s8442_s4, 64, %s484_s21, [#allocation9]  }
  0xee   : > { %s7237_s25 = scalar_lea.hbm %s8386_s8, 4096 }
  0xef   : > { %p7238_p1 = scmp.ne.s32.totalorder %s8386_s8, %s7237_s25  ;;  %p7244_p12 = scmp.lt.u32.totalorder %s7237_s25, %s8386_s8 }
  0xf1   : > { %p7240_p3 = pnand %p7238_p1, %p7669_p8 }
  0xf3   : > { %p7241_p11 = pneg %p7240_p3 }
  0xf5   : > { %p7246_p13 = pnand %p7244_p12, %p7241_p11 }
  0xf7   : > { %7249 = shalt.err (!%p7246_p13)
}
  0xf8   : > { %s7250_s21 = scalar_lea.vmem %s7831_s0, 4096  ;;  %p7258_p7 = scmp.lt.s32.totalorder %s7831_s0, %s7831_s0 }
  0xf9   : > { %p7251_p0 = scmp.ne.s32.totalorder %s7831_s0, %s7250_s21  ;;  %p7259_p9 = scmp.lt.s32.totalorder %s7250_s21, %s7250_s21 }
  0xfb   : > { %p7253_p2 = pnand %p7251_p0, %p7669_p8  ;;  %p7260_p4 = por %p7259_p9, %p7258_p7 }
  0xfd   : > { %p7254_p5 = pneg %p7253_p2 }
  0xff   : > { %p7261_p10 = pnand %p7260_p4, %p7254_p5 }
 0x101   : > { %7264 = shalt.err (!%p7261_p10)
}
 0x102   : > { %6889 = dma.hbm_to_vmem [thread:$0]  (!%p7653_p6), %s8386_s8, 4096, %s7831_s0, [#allocation12], %s8438_s7, %s8438_s7, %s8437_s19  }
 0x103   : > { %s7517_s22 = smov [#allocation16]   ;;  %s7518_s5 = smov [#allocation19]  }
 0x104   : > { %s538_s3 = sshll.u32 %s7517_s22, 4  ;;  %s564_s24 = sshll.u32 %s7518_s5, 4  ;;  %s539_s3 = int_to_ptr.vmem [resolvable:$true] %s538_s3  ;;  %s7877_s24 = int_to_ptr.vmem [resolvable:$true] %s564_s24 }
 0x105   : > { %s7265_s17 = scalar_lea.hbm %s8388_s10, 256 }
 0x106   : > { %p7266_p1 = scmp.ne.s32.totalorder %s8388_s10, %s7265_s17  ;;  %p7272_p12 = scmp.lt.u32.totalorder %s7265_s17, %s8388_s10 }
 0x108   : > { %p7268_p3 = pnand %p7266_p1, %p7669_p8 }
 0x10a   : > { %p7269_p11 = pneg %p7268_p3 }
 0x10c   : > { %p7274_p13 = pnand %p7272_p12, %p7269_p11 }
 0x10e   : > { %7277 = shalt.err (!%p7274_p13)
}
 0x10f   : > { %s7278_s21 = scalar_lea.vmem %s539_s3, 256  ;;  %p7286_p7 = scmp.lt.s32.totalorder %s539_s3, %s539_s3 }
 0x110   : > { %p7279_p0 = scmp.ne.s32.totalorder %s539_s3, %s7278_s21  ;;  %p7287_p9 = scmp.lt.s32.totalorder %s7278_s21, %s7278_s21 }
 0x112   : > { %p7281_p2 = pnand %p7279_p0, %p7669_p8  ;;  %p7288_p4 = por %p7287_p9, %p7286_p7 }
 0x114   : > { %p7282_p5 = pneg %p7281_p2 }
 0x116   : > { %p7289_p10 = pnand %p7288_p4, %p7282_p5 }
 0x118   : > { %7292 = shalt.err (!%p7289_p10)
}
 0x119   : > { %6895 = dma.hbm_to_vmem [thread:$0]  (!%p7653_p6), %s8388_s10, 256, %s539_s3, [#allocation15], %s8438_s7, %s8438_s7, %s8437_s19  }
 0x11a   : > { %s7293_s6 = scalar_lea.hbm %s8390_s12, 4096 }
 0x11b   : > { %p7294_p1 = scmp.ne.s32.totalorder %s8390_s12, %s7293_s6  ;;  %p7300_p12 = scmp.lt.u32.totalorder %s7293_s6, %s8390_s12 }
 0x11d   : > { %p7296_p3 = pnand %p7294_p1, %p7669_p8 }
 0x11f   : > { %p7297_p11 = pneg %p7296_p3 }
 0x121   : > { %p7302_p13 = pnand %p7300_p12, %p7297_p11 }
 0x123   : > { %7305 = shalt.err (!%p7302_p13)
}
 0x124   : > { %s7306_s3 = scalar_lea.vmem %s7877_s24, 4096  ;;  %p7314_p7 = scmp.lt.s32.totalorder %s7877_s24, %s7877_s24 }
 0x125   : > { %p7307_p0 = scmp.ne.s32.totalorder %s7877_s24, %s7306_s3  ;;  %p7315_p9 = scmp.lt.s32.totalorder %s7306_s3, %s7306_s3 }
 0x127   : > { %p7309_p2 = pnand %p7307_p0, %p7669_p8  ;;  %p7316_p4 = por %p7315_p9, %p7314_p7 }
 0x129   : > { %p7310_p5 = pneg %p7309_p2 }
 0x12b   : > { %p7317_p10 = pnand %p7316_p4, %p7310_p5 }
 0x12d   : > { %7320 = shalt.err (!%p7317_p10)
}
 0x12e   : > { %6901 = dma.hbm_to_vmem [thread:$0]  (!%p7653_p6), %s8390_s12, 4096, %s7877_s24, [#allocation18], %s8438_s7, %s8438_s7, %s8437_s19  }
 0x12f   : > { %s7519_s21 = smov [#allocation22]   ;;  %s7520_s29 = smov [#allocation23]  }
 0x130   : > { %s589_s15 = sshll.u32 %s7519_s21, 4  ;;  %s603_s22 = sshll.u32 %s7520_s29, 4  ;;  %s590_s15 = int_to_ptr.vmem [resolvable:$true] %s589_s15  ;;  %s7926_s22 = int_to_ptr.vmem [resolvable:$true] %s603_s22 }
 0x131   : > { %s7321_s25 = scalar_lea.hbm %s8392_s14, 16 }
 0x132   : > { %p7322_p1 = scmp.ne.s32.totalorder %s8392_s14, %s7321_s25  ;;  %p7328_p12 = scmp.lt.u32.totalorder %s7321_s25, %s8392_s14 }
 0x134   : > { %p7324_p3 = pnand %p7322_p1, %p7669_p8 }
 0x136   : > { %p7325_p11 = pneg %p7324_p3 }
 0x138   : > { %p7330_p13 = pnand %p7328_p12, %p7325_p11 }
 0x13a   : > { %7333 = shalt.err (!%p7330_p13)
}
 0x13b   : > { %s7334_s3 = scalar_lea.vmem %s590_s15, 16  ;;  %s7341_s20 = scalar_lea.vmem %s590_s15, 32 }
 0x13c   : > { %p7335_p0 = scmp.ne.s32.totalorder %s590_s15, %s7334_s3  ;;  %p7342_p7 = scmp.lt.s32.totalorder %s590_s15, %s590_s15 }
 0x13d   : > { %p7343_p9 = scmp.lt.s32.totalorder %s7341_s20, %s7334_s3 }
 0x13e   : > { %p7337_p2 = pnand %p7335_p0, %p7669_p8 }
 0x13f   : > { %p7344_p4 = por %p7343_p9, %p7342_p7 }
 0x140   : > { %p7338_p5 = pneg %p7337_p2 }
 0x142   : > { %p7345_p10 = pnand %p7344_p4, %p7338_p5 }
 0x144   : > { %7348 = shalt.err (!%p7345_p10)
}
 0x145   : > { %6907 = dma.hbm_to_vmem [thread:$0]  (!%p7653_p6), %s8392_s14, 16, %s590_s15, [#allocation21]  }
 0x146   : > { %s7349_s6 = scalar_lea.hbm %s8394_s16, 16 }
 0x147   : > { %p7350_p1 = scmp.ne.s32.totalorder %s8394_s16, %s7349_s6  ;;  %p7356_p12 = scmp.lt.u32.totalorder %s7349_s6, %s8394_s16 }
 0x149   : > { %p7352_p3 = pnand %p7350_p1, %p7669_p8 }
 0x14b   : > { %p7353_p11 = pneg %p7352_p3 }
 0x14d   : > { %p7358_p13 = pnand %p7356_p12, %p7353_p11 }
 0x14f   : > { %7361 = shalt.err (!%p7358_p13)
}
 0x150   : > { %s7362_s15 = scalar_lea.vmem %s7926_s22, 16  ;;  %s7369_s24 = scalar_lea.vmem %s7926_s22, 32 }
 0x151   : > { %p7363_p0 = scmp.ne.s32.totalorder %s7926_s22, %s7362_s15  ;;  %p7370_p7 = scmp.lt.s32.totalorder %s7926_s22, %s7926_s22 }
 0x152   : > { %p7371_p9 = scmp.lt.s32.totalorder %s7369_s24, %s7362_s15 }
 0x153   : > { %p7365_p2 = pnand %p7363_p0, %p7669_p8 }
 0x154   : > { %p7372_p4 = por %p7371_p9, %p7370_p7 }
 0x155   : > { %p7366_p5 = pneg %p7365_p2 }
 0x157   : > { %p7373_p10 = pnand %p7372_p4, %p7366_p5 }
 0x159   : > { %7376 = shalt.err (!%p7373_p10)
}
 0x15a   : > { %s8443_s18 = sld [smem:[#allocation36_spill]]  ;;  %s8444_s0 = sld [smem:[#allocation35_spill]] }
 0x15b   : > { %s8445_s21 = sld [smem:[#allocation37_spill]]  ;;  %s5181_s1 = sadd.s32 4294967294, %s7501_s27  }
 0x15c   : > { %6910 = dma.hbm_to_vmem [thread:$0]  (!%p7653_p6), %s8394_s16, 16, %s7926_s22, [#allocation24]  }
 0x15d   : > { %s7972_s29 = sadd.s32 1, %s7501_s27   ;;  %s47_s6 = sadd.s32 1, %s7497_s26 }
 0x15e   : > { %s44_s5 = ssub.s32 %s7501_s27, %s7972_s29  ;;  %p55_p3 = scmp.eq.s32.totalorder %s7501_s27, 0 }
 0x15f   : > { %p45_p8 = scmp.eq.s32.totalorder %s44_s5, 0  ;;  %p426_p2 = scmp.eq.s32.totalorder %s5181_s1, 1 }
 0x160   : > { %p54_p1 = scmp.ne.s32.totalorder %s7497_s26, %s8443_s18  ;;  %p60_p11 = scmp.ne.s32.totalorder %s8443_s18, %s8444_s0 }
 0x161   : > { %s7983_s25 = scalar_select %p45_p8, %s7497_s26, %s47_s6  }
 0x162   : > { %p7985_p12 = por %p55_p3, %p54_p1  ;;  %p8447_p13 = scmp.eq.s32.totalorder %s8445_s21, 0 }
 0x163   : > { %p420_p0 = scmp.eq.s32.totalorder %s8445_s21, 1  ;;  %p6932_p5 = scmp.lt.s32.totalorder %s7501_s27, 2 }
 0x164   : > { %p7991_p6 = por %p8447_p13, %p60_p11  ;;  %s614_s23 = sand.u32 1, %s7497_s26  }
 0x165   : > { %p7998_p7 = por %p420_p0, %p54_p1  ;;  %p8002_p9 = por %p426_p2, %p60_p11 }
 0x166   : > { %s5197_s24 = sshll.u32 %s614_s23, 4  ;;  %s5284_s3 = sshll.u32 %s7501_s27, 8 }
 0x167   : > { %s8449_s30 = scalar_select %p7998_p7, 1, 0 }
 0x168   : > { %s8450_s15 = scalar_select %p8002_p9, 1, 0 }
 0x169   : > { %s8451_s0 = sld [smem:[#allocation39_spill]]  ;;  %s618_s21 = scalar_lea.vmem [#allocation2], %s5197_s24 }
 0x16a   : > { %s625_s1 = sshll.u32 %s618_s21, 4  ;;  %p8016_p4 = pnand %p6932_p5, %p7985_p12  ;;  %s8012_s1 = int_to_ptr.vmem [resolvable:$true] %s625_s1 }
 0x16b   : > { %s8020_s2 = scalar_lea.sflag [#allocation3], %s614_s23 }
 0x16c   : > { %p7379_p8 = pneg %p8016_p4 }
 0x16f   : > { %s8010_s5 = scalar_lea.hbm %s8451_s0, %s5284_s3  ;;  %s7382_s17 = scalar_lea.hbm %s8451_s0, 512 }
 0x170   : > { %s7377_s20 = scalar_lea.hbm %s8010_s5, 256  ;;  %p7383_p11 = scmp.lt.u32.totalorder %s8010_s5, %s8451_s0 }
 0x171   : > { %p7378_p10 = scmp.ne.s32.totalorder %s8010_s5, %s7377_s20  ;;  %p7384_p12 = scmp.lt.u32.totalorder %s7382_s17, %s7377_s20 }
 0x172   : > { %p7386_p0 = scmp.lt.u32.totalorder %s7377_s20, %s8010_s5 }
 0x173   : > { %p7380_p1 = pnand %p7379_p8, %p7378_p10  ;;  %p7385_p13 = por %p7384_p12, %p7383_p11 }
 0x175   : > { %p7381_p3 = pneg %p7380_p1  ;;  %p7387_p2 = por %p7386_p0, %p7385_p13 }
 0x177   : > { %p7388_p5 = pnand %p7387_p2, %p7381_p3 }
 0x179   : > { %7391 = shalt.err (!%p7388_p5)
}
 0x17a   : > { %s7392_s23 = scalar_lea.vmem %s8012_s1, 256  ;;  %s7521_s24 = smov [#allocation2]  }
 0x17b   : > { %p7393_p10 = scmp.ne.s32.totalorder %s8012_s1, %s7392_s23  ;;  %s7397_s3 = sshll.u32 %s7521_s24, 4  ;;  %s7398_s3 = int_to_ptr.vmem [resolvable:$false] %s7397_s3 }
 0x17c   : > { %s7399_s18 = scalar_lea.vmem %s7398_s3, 512  ;;  %p7400_p7 = scmp.lt.s32.totalorder %s8012_s1, %s7398_s3 }
 0x17d   : > { %p7395_p1 = pnand %p7393_p10, %p7379_p8  ;;  %p7401_p11 = scmp.lt.s32.totalorder %s7399_s18, %s7392_s23 }
 0x17f   : > { %p7396_p9 = pneg %p7395_p1  ;;  %p7402_p12 = por %p7401_p11, %p7400_p7 }
 0x181   : > { %p7403_p13 = pnand %p7402_p12, %p7396_p9 }
 0x183   : > { %7406 = shalt.err (!%p7403_p13)
}
 0x184   : > { %6914 = dma.hbm_to_vmem [thread:$0]  (!%p8016_p4), %s8010_s5, 256, %s8012_s1, %s8020_s2, %s8438_s7, %s8438_s7, %s8437_s19  }
 0x185   : > { %s8453_s20 = sld [smem:[#allocation38_spill]] }
 0x18b   : > { %p8454_p8 = scmp.ne.s32.totalorder %s8453_s20, 0 }
 0x18c   : > { %s8455_s17 = sld [smem:[#allocation36_spill]] (!%p8454_p8) }
 0x18d   : > { %637 = sbr.rel (%p8454_p8) target bundleno = 5733 (0x1665), region = 88 }
 0x192   : > { %s8054_s21 = sand.u32 (!%p8454_p8), 1, %s8455_s17  }
 0x193   : > { %s5201_s23 = sshll.u32 (!%p8454_p8), %s8054_s21, 4  ;;  %s640_s24 = scalar_lea.sflag (!%p8454_p8), [#allocation3], %s8054_s21 }
 0x194   : > { %s8058_s3 = scalar_lea.vmem [#allocation2], %s5201_s23 }
 0x195   : > { %7452 = dma.done.wait (%p7991_p6), %s640_s24, 256  }
 0x196   : > { %7454 = vsyncadd (%p7991_p6), %s640_s24, 4294967040  ;;  %s8456_s6 = sld [smem:[#allocation37_spill]] }
 0x19c   : > { %p8457_p7 = scmp.eq.s32.totalorder %s8456_s6, 0 }
 0x19e   : > { %7456 = dma.done.wait (%p8457_p7), [#allocation6], 4128   ;;  %p8458_p9 = pmov %p8457_p7 }
 0x19f   : > { %p8459_p4 = pmov %p8457_p7 }
 0x1a0   : > { %7458 = vsyncadd (%p8458_p9), [#allocation6], 4294963168 }
 0x1a1   : > { %7460 = dma.done.wait (%p8459_p4), [#allocation9], 128   ;;  %p8460_p3 = pmov %p8459_p4 }
 0x1a3   : > { %7462 = vsyncadd (%p8460_p3), [#allocation9], 4294967168  ;;  %p8461_p0 = pmov %p8460_p3 }
 0x1a5   : > { %7464 = dma.done.wait (%p8461_p0), [#allocation12], 69632   ;;  %p8462_p2 = pmov %p8461_p0 }
 0x1a6   : > { %p8463_p6 = pmov %p8461_p0 }
 0x1a7   : > { %7466 = vsyncadd (%p8462_p2), [#allocation12], 4294897664 }
 0x1a8   : > { %7468 = dma.done.wait (%p8463_p6), [#allocation15], 288   ;;  %p8464_p5 = pmov %p8461_p0 }
 0x1a9   : > { %p8465_p10 = pmov %p8461_p0 }
 0x1aa   : > { %7470 = vsyncadd (%p8464_p5), [#allocation15], 4294967008 }
 0x1ab   : > { %7472 = dma.done.wait (%p8465_p10), [#allocation18], 8192   ;;  %p8466_p1 = pmov %p8461_p0 }
 0x1ac   : > { %p8467_p11 = pmov %p8461_p0 }
 0x1ad   : > { %7474 = vsyncadd (%p8466_p1), [#allocation18], 4294959104 }
 0x1ae   : > { %7476 = dma.done.wait (%p8467_p11), [#allocation21], 32   ;;  %p8468_p12 = pmov %p8461_p0 }
 0x1af   : > { %p8469_p13 = pmov %p8461_p0 }
 0x1b0   : > { %7478 = vsyncadd (%p8468_p12), [#allocation21], 4294967264 }
 0x1b1   : > { %7480 = dma.done.wait (%p8469_p13), [#allocation24], 16   ;;  %p8470_p8 = pmov %p8461_p0 }
 0x1b2   : > { %v769_v0 = vld [vmem:[#allocation5] sm:$0xff]  ;;  %v770_v1 = vld [vmem:[#allocation5 + $0x8] sm:$0xff]  ;;  %v771_v2 = vld [vmem:[#allocation5 + $0x10] sm:$0xff]  ;;  %v7522_v26 = vmov 0.0|0.0   ;;  %vm7523_vm0 = vmmov 0   ;;  %v7524_v27 = vmov 0.0  }
 0x1b3   : > { %7482 = vsyncadd (%p8470_p8), [#allocation24], 4294967280  ;;  %v5947_v3 = vpack.c.bf16 %v770_v1, %v769_v0  ;;  %v772_v4 = vld [vmem:[#allocation5 + $0x18] sm:$0xff]  ;;  %v773_v6 = vld [vmem:[#allocation5 + $0x20] sm:$0xff]  ;;  %5979 = vmatprep.subr.bf16.mxu1 %v7522_v26  ;;  %5553 = vmatprep.mubr.msk.f32.mxu1 %vm7523_vm0, %v7524_v27  ;;  %vm867_vm1 = vcmask 130048   ;;  %s8471_s7 = sld [smem:[#allocation46_spill]] }
 0x1b4   : > { %v5951_v5 = vpack.c.bf16 %v772_v4, %v771_v2  ;;  %v774_v7 = vld [vmem:[#allocation5 + $0x28] sm:$0xff]  ;;  %v745_v9 = vld [vmem:[%s8058_s3] sm:$0xff]  ;;  %v776_v11 = vld [vmem:[#allocation5 + $0x38] sm:$0xff]  ;;  %vm1569_vm6 = vcmask 31744   ;;  %vm1576_vm7 = vcmask 1043456   ;;  %s8472_s20 = sld [smem:[#allocation45_spill]] }
 0x1b5   : > { %5948 = vmatprep.subr.bf16.mxu0 %v5947_v3  ;;  %v5955_v8 = vpack.c.bf16 %v774_v7, %v773_v6  ;;  %v775_v10 = vld [vmem:[#allocation5 + $0x30] sm:$0xff]  ;;  %5546 = vmatprep.mubr.f32.mxu0 %v745_v9  ;;  %v777_v13 = vld [vmem:[#allocation5 + $0x40] sm:$0xff]  ;;  %v778_v14 = vld [vmem:[#allocation5 + $0x48] sm:$0xff]  ;;  %s8473_s17 = sld [smem:[#allocation47_spill]]  ;;  %s5281_s2 = sshll.u32 %s8456_s6, 4  ;;  %vm4976_vm8 = vcmask 57344  }
 0x1b6   : > { %5950 = vmatpush3.bf16.msra.mxu0 %v5947_v3  ;;  %v5959_v12 = vpack.c.bf16 %v776_v11, %v775_v10  ;;  %v5963_v15 = vpack.c.bf16 %v778_v14, %v777_v13  ;;  %v779_v16 = vld [vmem:[#allocation5 + $0x50] sm:$0xff]  ;;  %v780_v17 = vld [vmem:[#allocation5 + $0x58] sm:$0xff]  ;;  %v781_v19 = vld [vmem:[#allocation5 + $0x60] sm:$0xff]  ;;  %s744_s19 = scalar_lea.vmem [#allocation25], %s8054_s21  ;;  %s8474_s18 = sld [smem:[#allocation48_spill]] }
 0x1b7   : > { %5952 = vmatprep.subr.bf16.mxu0 %v5951_v5  ;;  %v5967_v18 = vpack.c.bf16 %v780_v17, %v779_v16  ;;  %v782_v20 = vld [vmem:[#allocation5 + $0x68] sm:$0xff]  ;;  %v783_v22 = vld [vmem:[#allocation5 + $0x70] sm:$0xff]  ;;  %v784_v23 = vld [vmem:[#allocation5 + $0x78] sm:$0xff]  ;;  %s4991_s22 = sshll.u32 %s744_s19, 4  ;;  %s4979_s24 = scalar_lea.sflag [#allocation4], %s8054_s21  ;;  %s8336_s22 = int_to_ptr.vmem [resolvable:$true] %s4991_s22 }
 0x1b8   : > { %v5971_v21 = vpack.c.bf16 %v782_v20, %v781_v19  ;;  %v5975_v24 = vpack.c.bf16 %v784_v23, %v783_v22  ;;  %v746_v25 = vld [vmem:[%s8058_s3 + $0x8] sm:$0xff]  ;;  %v5219_v28 = vld [vmem:[#allocation7] ss:$0 sm:$0xff]  ;;  %v747_v36 = vld [vmem:[#allocation8] sm:$0xf]  ;;  %p8475_p9 = scmp.ne.s32.totalorder %s8449_s30, 0 }
 0x1b9   : > { %v1084_v34 = vld [vmem:[#allocation11 + $0x208] sm:$0xff]  ;;  %v1086_v35 = vld [vmem:[#allocation11 + $0x218] sm:$0xff]  ;;  %v1083_v38 = vld [vmem:[#allocation11 + $0x200] sm:$0xff]  ;;  %s7525_s6 = smov [#allocation25]  }
 0x1ba   : > { %5954 = vmatpush3.bf16.msra.mxu0 %v5951_v5  ;;  %v5985_v37 = vpack.c.bf16 %v1086_v35, %v1084_v34  ;;  %v1085_v39 = vld [vmem:[#allocation11 + $0x210] sm:$0xff]  ;;  %v1088_v40 = vld [vmem:[#allocation11 + $0x228] sm:$0xff]  ;;  %v1090_v41 = vld [vmem:[#allocation11 + $0x238] sm:$0xff]  ;;  %s7411_s0 = sshll.u32 %s7525_s6, 4  ;;  %s7412_s0 = int_to_ptr.vmem [resolvable:$false] %s7411_s0 }
 0x1bb   : > { %5956 = vmatprep.subr.bf16.mxu0 %v5955_v8  ;;  %v748_v42 = vld [vmem:[#allocation10] sm:$0xf]  ;;  %v5987_v43 = vpack.c.bf16 %v1085_v39, %v1083_v38  ;;  %v5989_v44 = vpack.c.bf16 %v1090_v41, %v1088_v40  ;;  %v1087_v45 = vld [vmem:[#allocation11 + $0x220] sm:$0xff]  ;;  %v1089_v46 = vld [vmem:[#allocation11 + $0x230] sm:$0xff]  ;;  %s7413_s4 = scalar_lea.vmem %s7412_s0, 32  ;;  %p7414_p0 = scmp.lt.s32.totalorder %s8336_s22, %s7412_s0 }
 0x1bc   : > { %v1092_v47 = vld [vmem:[#allocation11 + $0x248] sm:$0xff]  ;;  %v1094_v48 = vld [vmem:[#allocation11 + $0x258] sm:$0xff]  ;;  %v5991_v49 = vpack.c.bf16 %v1089_v46, %v1087_v45  ;;  %v1091_v51 = vld [vmem:[#allocation11 + $0x240] sm:$0xff]  ;;  %s8334_s23 = scalar_lea.hbm %s8474_s18, %s5281_s2 }
 0x1bd   : > { %v5993_v50 = vpack.c.bf16 %v1094_v48, %v1092_v47  ;;  %v1093_v52 = vld [vmem:[#allocation11 + $0x250] sm:$0xff]  ;;  %v1096_v53 = vld [vmem:[#allocation11 + $0x268] sm:$0xff]  ;;  %v1098_v54 = vld [vmem:[#allocation11 + $0x278] sm:$0xff] }
 0x1be   : > { %5958 = vmatpush3.bf16.msra.mxu0 %v5955_v8  ;;  %v5995_v55 = vpack.c.bf16 %v1093_v52, %v1091_v51  ;;  %v5997_v56 = vpack.c.bf16 %v1098_v54, %v1096_v53  ;;  %v1095_v57 = vld [vmem:[#allocation11 + $0x260] sm:$0xff]  ;;  %v1097_v58 = vld [vmem:[#allocation11 + $0x270] sm:$0xff]  ;;  %v1100_v59 = vld [vmem:[#allocation11 + $0x288] sm:$0xff] }
 0x1bf   : > { %5960 = vmatprep.subr.bf16.mxu0 %v5959_v12  ;;  %v1102_v60 = vld [vmem:[#allocation11 + $0x298] sm:$0xff]  ;;  %v5999_v61 = vpack.c.bf16 %v1097_v58, %v1095_v57  ;;  %v1099_v63 = vld [vmem:[#allocation11 + $0x280] sm:$0xff]  ;;  %v1101_v0 = vld [vmem:[#allocation11 + $0x290] sm:$0xff] }
 0x1c0   : > { %v6001_v62 = vpack.c.bf16 %v1102_v60, %v1100_v59  ;;  %v1104_v1 = vld [vmem:[#allocation11 + $0x2a8] sm:$0xff]  ;;  %v1106_v2 = vld [vmem:[#allocation11 + $0x2b8] sm:$0xff]  ;;  %v6003_v3 = vpack.c.bf16 %v1101_v0, %v1099_v63  ;;  %v1103_v5 = vld [vmem:[#allocation11 + $0x2a0] sm:$0xff] }
 0x1c1   : > { %v6005_v4 = vpack.c.bf16 %v1106_v2, %v1104_v1  ;;  %v1105_v6 = vld [vmem:[#allocation11 + $0x2b0] sm:$0xff]  ;;  %v1108_v7 = vld [vmem:[#allocation11 + $0x2c8] sm:$0xff]  ;;  %v1110_v8 = vld [vmem:[#allocation11 + $0x2d8] sm:$0xff] }
 0x1c2   : > { %5962 = vmatpush3.bf16.msra.mxu0 %v5959_v12  ;;  %v6007_v9 = vpack.c.bf16 %v1105_v6, %v1103_v5  ;;  %v6009_v10 = vpack.c.bf16 %v1110_v8, %v1108_v7  ;;  %v1107_v11 = vld [vmem:[#allocation11 + $0x2c0] sm:$0xff]  ;;  %v1109_v12 = vld [vmem:[#allocation11 + $0x2d0] sm:$0xff]  ;;  %v1112_v13 = vld [vmem:[#allocation11 + $0x2e8] sm:$0xff] }
 0x1c3   : > { %5964 = vmatprep.subr.bf16.mxu0 %v5963_v15  ;;  %v1114_v14 = vld [vmem:[#allocation11 + $0x2f8] sm:$0xff]  ;;  %v1111_v17 = vld [vmem:[#allocation11 + $0x2e0] sm:$0xff]  ;;  %v1116_v19 = vld [vmem:[#allocation11 + $0x308] sm:$0xff] }
 0x1c4   : > { %v6013_v16 = vpack.c.bf16 %v1114_v14, %v1112_v13  ;;  %v1118_v20 = vld [vmem:[#allocation11 + $0x318] sm:$0xff]  ;;  %v1115_v23 = vld [vmem:[#allocation11 + $0x300] sm:$0xff]  ;;  %v1125_v38 = vld [vmem:[#allocation11 + $0x350] sm:$0xff] }
 0x1c5   : > { %v6017_v22 = vpack.c.bf16 %v1118_v20, %v1116_v19  ;;  %v1126_v34 = vld [vmem:[#allocation11 + $0x358] sm:$0xff]  ;;  %v1128_v39 = vld [vmem:[#allocation11 + $0x368] sm:$0xff]  ;;  %v1016_v13 = vld [vmem:[#allocation11] sm:$0xff] }
 0x1c6   : > { %5966 = vmatpush3.bf16.msra.mxu0 %v5963_v15  ;;  %v6011_v15 = vpack.c.bf16 %v1109_v12, %v1107_v11  ;;  %v1130_v40 = vld [vmem:[#allocation11 + $0x378] sm:$0xff]  ;;  %v1132_v45 = vld [vmem:[#allocation11 + $0x388] sm:$0xff]  ;;  %v1018_v14 = vld [vmem:[#allocation11 + $0x10] sm:$0xff] }
 0x1c7   : > { %5968 = vmatprep.subr.bf16.mxu0 %v5967_v18  ;;  %v1134_v46 = vld [vmem:[#allocation11 + $0x398] sm:$0xff]  ;;  %v1136_v51 = vld [vmem:[#allocation11 + $0x3a8] sm:$0xff] }
 0x1c8   : > { %v6033_v48 = vpack.c.bf16 %v1134_v46, %v1132_v45  ;;  %v1138_v52 = vld [vmem:[#allocation11 + $0x3b8] sm:$0xff]  ;;  %v1140_v57 = vld [vmem:[#allocation11 + $0x3c8] sm:$0xff]  ;;  %v1032_v46 = vld [vmem:[#allocation11 + $0x80] sm:$0xff] }
 0x1c9   : > { %v6037_v54 = vpack.c.bf16 %v1138_v52, %v1136_v51  ;;  %v1142_v58 = vld [vmem:[#allocation11 + $0x3d8] sm:$0xff]  ;;  %v1144_v0 = vld [vmem:[#allocation11 + $0x3e8] sm:$0xff]  ;;  %v1036_v52 = vld [vmem:[#allocation11 + $0xa0] sm:$0xff] }
 0x1ca   : > { %5970 = vmatpush3.bf16.msra.mxu0 %v5967_v18  ;;  %v1113_v18 = vld [vmem:[#allocation11 + $0x2f0] sm:$0xff]  ;;  %v6041_v60 = vpack.c.bf16 %v1142_v58, %v1140_v57  ;;  %v1146_v1 = vld [vmem:[#allocation11 + $0x3f8] sm:$0xff]  ;;  %v1017_v6 = vld [vmem:[#allocation11 + $0x8] sm:$0xff] }
 0x1cb   : > { %5972 = vmatprep.subr.bf16.mxu0 %v5971_v21  ;;  %v6045_v2 = vpack.c.bf16 %v1146_v1, %v1144_v0  ;;  %v1019_v7 = vld [vmem:[#allocation11 + $0x18] sm:$0xff]  ;;  %v1040_v58 = vld [vmem:[#allocation11 + $0xc0] sm:$0xff]  ;;  %v1046_v1 = vld [vmem:[#allocation11 + $0xf0] sm:$0xff] }
 0x1cc   : > { %v6049_v8 = vpack.c.bf16 %v1019_v7, %v1017_v6  ;;  %v1044_v0 = vld [vmem:[#allocation11 + $0xe0] sm:$0xff]  ;;  %v1050_v7 = vld [vmem:[#allocation11 + $0x110] sm:$0xff] }
 0x1cd   : > { %v1048_v6 = vld [vmem:[#allocation11 + $0x100] sm:$0xff] }
 0x1ce   : > { %5974 = vmatpush3.bf16.msra.mxu0 %v5971_v21  ;;  %v6015_v21 = vpack.c.bf16 %v1113_v18, %v1111_v17  ;;  %v1023_v17 = vld [vmem:[#allocation11 + $0x38] sm:$0xff] }
 0x1cf   : > { %5976 = vmatprep.subr.bf16.mxu0 %v5975_v24 }
 0x1d2   : > { %5978 = vmatpush3.bf16.msra.mxu0 %v5975_v24  ;;  %v1117_v24 = vld [vmem:[#allocation11 + $0x310] sm:$0xff] }
 0x1d5   : > { %5547 = vmatmul.mubr.f32.vlgmr.msra.gmra.mrb[0].mxu0 %v746_v25  ;;  %v1120_v25 = vld [vmem:[#allocation11 + $0x328] sm:$0xff] }
 0x2a8   : > { %v5548_v29 = vpop.f32.mrb[0].mxu0 }
 0x2a9   : > { %v864_v30 = vadd.f32 %v5548_v29, %v5219_v28  ;;  %v858_v31 = vpop.f32.mrb[1].mxu0  ;;  %v6019_v29 = vpack.c.bf16 %v1117_v24, %v1115_v23 }
 0x2aa   : > { %v859_v32 = vadd.f32 %v5219_v28, %v858_v31  ;;  %v1122_v28 = vld [vmem:[#allocation11 + $0x338] sm:$0xff]  ;;  %v1119_v31 = vld [vmem:[#allocation11 + $0x320] sm:$0xff] }
 0x2ac   : > { %v5980_v33 = vpack.c.bf16 %v864_v30, %v859_v32  ;;  %v6021_v30 = vpack.c.bf16 %v1122_v28, %v1120_v25  ;;  %v1121_v32 = vld [vmem:[#allocation11 + $0x330] sm:$0xff]  ;;  %v1020_v25 = vld [vmem:[#allocation11 + $0x20] sm:$0xff] }
 0x2ad   : > { %v6023_v35 = vpack.c.bf16 %v1121_v32, %v1119_v31  ;;  %v1022_v28 = vld [vmem:[#allocation11 + $0x30] sm:$0xff]  ;;  %v1027_v31 = vld [vmem:[#allocation11 + $0x58] sm:$0xff] }
 0x2ae   : > { %5981 = vmatpush3.bf16.msra.mxu1 %v5980_v33  ;;  %v6055_v32 = vpack.c.bf16 %v1022_v28, %v1020_v25  ;;  %v1061_v25 = vld [vmem:[#allocation11 + $0x168] sm:$0xff]  ;;  %v1063_v28 = vld [vmem:[#allocation11 + $0x178] sm:$0xff] }
 0x2af   : > { %5982 = vmatprep.subr.bf16.mxu1 %v7522_v26 }
 0x2b1   : > { %5554 = vmatmul.mubr.msk.f32.vlgmr.msra.gmra.mrb[0].mxu1 %vm867_vm1, %v747_v36 }
 0x2b2   : > { %5984 = vmatpush3.bf16.msra.mxu1 %v5980_v33  ;;  %5560 = vmatprep.mubr.msk.f32.mxu1 %vm7523_vm0, %v7524_v27  ;;  %v1124_v33 = vld [vmem:[#allocation11 + $0x348] sm:$0xff] }
 0x2b3   : > { %5986 = vmatprep.subr.bf16.mxu1 %v5985_v37  ;;  %v6025_v36 = vpack.c.bf16 %v1126_v34, %v1124_v33  ;;  %v1123_v37 = vld [vmem:[#allocation11 + $0x340] sm:$0xff] }
 0x2b4   : > { %v6027_v41 = vpack.c.bf16 %v1125_v38, %v1123_v37  ;;  %v1024_v34 = vld [vmem:[#allocation11 + $0x40] sm:$0xff]  ;;  %v1031_v37 = vld [vmem:[#allocation11 + $0x78] sm:$0xff] }
 0x2b5   : > { %5561 = vmatmul.mubr.msk.f32.vlgmr.msra.gmra.mrb[2].mxu1 %vm867_vm1, %v748_v42  ;;  %v6029_v42 = vpack.c.bf16 %v1130_v40, %v1128_v39  ;;  %v1028_v40 = vld [vmem:[#allocation11 + $0x60] sm:$0xff] }
 0x2b6   : > { %5988 = vmatpush1.bf16.msra.mxu1 %v5987_v43  ;;  %v1127_v43 = vld [vmem:[#allocation11 + $0x360] sm:$0xff] }
 0x2b7   : > { %5990 = vmatprep.subr.bf16.mxu1 %v5989_v44  ;;  %v1129_v44 = vld [vmem:[#allocation11 + $0x370] sm:$0xff] }
 0x2b8   : > { %v6031_v47 = vpack.c.bf16 %v1129_v44, %v1127_v43  ;;  %v1035_v43 = vld [vmem:[#allocation11 + $0x98] sm:$0xff] }
 0x2ba   : > { %5992 = vmatpush1.bf16.msra.mxu1 %v5991_v49  ;;  %v1131_v49 = vld [vmem:[#allocation11 + $0x380] sm:$0xff] }
 0x2bb   : > { %5994 = vmatprep.subr.bf16.mxu1 %v5993_v50  ;;  %v1133_v50 = vld [vmem:[#allocation11 + $0x390] sm:$0xff] }
 0x2bc   : > { %v6035_v53 = vpack.c.bf16 %v1133_v50, %v1131_v49  ;;  %v1039_v49 = vld [vmem:[#allocation11 + $0xb8] sm:$0xff] }
 0x2be   : > { %5996 = vmatpush1.bf16.msra.mxu1 %v5995_v55  ;;  %v1135_v55 = vld [vmem:[#allocation11 + $0x3a0] sm:$0xff] }
 0x2bf   : > { %5998 = vmatprep.subr.bf16.mxu1 %v5997_v56  ;;  %v1137_v56 = vld [vmem:[#allocation11 + $0x3b0] sm:$0xff] }
 0x2c0   : > { %v6039_v59 = vpack.c.bf16 %v1137_v56, %v1135_v55  ;;  %v1043_v55 = vld [vmem:[#allocation11 + $0xd8] sm:$0xff] }
 0x2c2   : > { %6000 = vmatpush1.bf16.msra.mxu1 %v5999_v61  ;;  %v1139_v61 = vld [vmem:[#allocation11 + $0x3c0] sm:$0xff] }
 0x2c3   : > { %6002 = vmatprep.subr.bf16.mxu1 %v6001_v62  ;;  %v1141_v62 = vld [vmem:[#allocation11 + $0x3d0] sm:$0xff] }
 0x2c4   : > { %v6043_v63 = vpack.c.bf16 %v1141_v62, %v1139_v61  ;;  %v1047_v61 = vld [vmem:[#allocation11 + $0xf8] sm:$0xff] }
 0x2c6   : > { %6004 = vmatpush1.bf16.msra.mxu1 %v6003_v3  ;;  %v1143_v3 = vld [vmem:[#allocation11 + $0x3e0] sm:$0xff] }
 0x2c7   : > { %6006 = vmatprep.subr.bf16.mxu1 %v6005_v4  ;;  %v1145_v4 = vld [vmem:[#allocation11 + $0x3f0] sm:$0xff] }
 0x2c8   : > { %v6047_v5 = vpack.c.bf16 %v1145_v4, %v1143_v3  ;;  %v1051_v3 = vld [vmem:[#allocation11 + $0x118] sm:$0xff]  ;;  %v6079_v4 = vpack.c.bf16 %v1046_v1, %v1044_v0 }
 0x2c9   : > { %v1299_v0 = vld [vmem:[#allocation11 + $0x438] sm:$0xff] }
 0x2ca   : > { %6008 = vmatpush1.bf16.msra.mxu1 %v6007_v9  ;;  %v755_v9 = vlaneseq }
 0x2cb   : > { %6010 = vmatprep.subr.bf16.mxu1 %v6009_v10 }
 0x2cc   : > { %v8102_v10 = vshrl.u32 %v755_v9, 7  ;;  %v1055_v9 = vld [vmem:[#allocation11 + $0x138] sm:$0xff] }
 0x2ce   : > { %6012 = vmatpush1.bf16.msra.mxu1 %v6011_v15  ;;  %vm760_vm2 = vcmp.eq.s32.totalorder %v8102_v10, 1  ;;  %vm757_vm3 = vcmp.eq.s32.totalorder %v8102_v10, 0  ;;  %vm763_vm4 = vcmp.eq.s32.totalorder %v8102_v10, 2  ;;  %vm766_vm5 = vcmp.eq.s32.totalorder %v8102_v10, 3 }
 0x2cf   : > { %6014 = vmatprep.subr.bf16.mxu1 %v6013_v16  ;;  %v8109_v15 = vsel %vm760_vm2, 1.0, %v7524_v27  ;;  %v1021_v16 = vld [vmem:[#allocation11 + $0x28] sm:$0xff] }
 0x2d0   : > { %v6053_v24 = vpack.c.bf16 %v1023_v17, %v1021_v16  ;;  %v1054_v16 = vld [vmem:[#allocation11 + $0x130] sm:$0xff]  ;;  %v1057_v17 = vld [vmem:[#allocation11 + $0x148] sm:$0xff] }
 0x2d2   : > { %6016 = vmatpush1.bf16.msra.mxu1 %v6015_v21  ;;  %v6051_v21 = vpack.c.bf16 %v1018_v14, %v1016_v13  ;;  %v1052_v14 = vld [vmem:[#allocation11 + $0x120] sm:$0xff] }
 0x2d3   : > { %6018 = vmatprep.subr.bf16.mxu1 %v6017_v22  ;;  %v8116_v22 = vsel %vm757_vm3, 1.0, %v7524_v27 }
 0x2d6   : > { %6020 = vmatpush1.bf16.msra.mxu1 %v6019_v29 }
 0x2d7   : > { %6022 = vmatprep.subr.bf16.mxu1 %v6021_v30  ;;  %v1025_v30 = vld [vmem:[#allocation11 + $0x48] sm:$0xff] }
 0x2d8   : > { %v6057_v33 = vpack.c.bf16 %v1027_v31, %v1025_v30  ;;  %v6093_v30 = vpack.c.bf16 %v1063_v28, %v1061_v25  ;;  %v1060_v31 = vld [vmem:[#allocation11 + $0x160] sm:$0xff]  ;;  %v1309_v25 = vld [vmem:[#allocation11 + $0x488] sm:$0xff]  ;;  %v1311_v28 = vld [vmem:[#allocation11 + $0x498] sm:$0xff] }
 0x2da   : > { %6024 = vmatpush1.bf16.msra.mxu1 %v6023_v35  ;;  %v1026_v35 = vld [vmem:[#allocation11 + $0x50] sm:$0xff] }
 0x2db   : > { %6026 = vmatprep.subr.bf16.mxu1 %v6025_v36  ;;  %v1029_v36 = vld [vmem:[#allocation11 + $0x68] sm:$0xff]  ;;  %v6059_v38 = vpack.c.bf16 %v1026_v35, %v1024_v34  ;;  %v1067_v34 = vld [vmem:[#allocation11 + $0x198] sm:$0xff] }
 0x2dc   : > { %v6061_v39 = vpack.c.bf16 %v1031_v37, %v1029_v36  ;;  %v1064_v37 = vld [vmem:[#allocation11 + $0x180] sm:$0xff] }
 0x2de   : > { %6028 = vmatpush1.bf16.msra.mxu1 %v6027_v41  ;;  %v1030_v41 = vld [vmem:[#allocation11 + $0x70] sm:$0xff] }
 0x2df   : > { %6030 = vmatprep.subr.bf16.mxu1 %v6029_v42  ;;  %v1033_v42 = vld [vmem:[#allocation11 + $0x88] sm:$0xff]  ;;  %v6063_v44 = vpack.c.bf16 %v1030_v41, %v1028_v40  ;;  %v1071_v40 = vld [vmem:[#allocation11 + $0x1b8] sm:$0xff] }
 0x2e0   : > { %v6065_v45 = vpack.c.bf16 %v1035_v43, %v1033_v42  ;;  %v1068_v43 = vld [vmem:[#allocation11 + $0x1a0] sm:$0xff] }
 0x2e2   : > { %6032 = vmatpush1.bf16.msra.mxu1 %v6031_v47  ;;  %v1034_v47 = vld [vmem:[#allocation11 + $0x90] sm:$0xff] }
 0x2e3   : > { %6034 = vmatprep.subr.bf16.mxu1 %v6033_v48  ;;  %v1037_v48 = vld [vmem:[#allocation11 + $0xa8] sm:$0xff]  ;;  %v6067_v50 = vpack.c.bf16 %v1034_v47, %v1032_v46  ;;  %v1075_v46 = vld [vmem:[#allocation11 + $0x1d8] sm:$0xff] }
 0x2e4   : > { %v6069_v51 = vpack.c.bf16 %v1039_v49, %v1037_v48  ;;  %v1072_v49 = vld [vmem:[#allocation11 + $0x1c0] sm:$0xff] }
 0x2e6   : > { %6036 = vmatpush1.bf16.msra.mxu1 %v6035_v53  ;;  %v1038_v53 = vld [vmem:[#allocation11 + $0xb0] sm:$0xff] }
 0x2e7   : > { %6038 = vmatprep.subr.bf16.mxu1 %v6037_v54  ;;  %v1041_v54 = vld [vmem:[#allocation11 + $0xc8] sm:$0xff]  ;;  %v6071_v56 = vpack.c.bf16 %v1038_v53, %v1036_v52  ;;  %v1079_v52 = vld [vmem:[#allocation11 + $0x1f8] sm:$0xff] }
 0x2e8   : > { %v6073_v57 = vpack.c.bf16 %v1043_v55, %v1041_v54  ;;  %v1076_v55 = vld [vmem:[#allocation11 + $0x1e0] sm:$0xff] }
 0x2ea   : > { %6040 = vmatpush1.bf16.msra.mxu1 %v6039_v59  ;;  %v1042_v59 = vld [vmem:[#allocation11 + $0xd0] sm:$0xff] }
 0x2eb   : > { %6042 = vmatprep.subr.bf16.mxu1 %v6041_v60  ;;  %v1045_v60 = vld [vmem:[#allocation11 + $0xe8] sm:$0xff]  ;;  %v6075_v62 = vpack.c.bf16 %v1042_v59, %v1040_v58  ;;  %v1295_v58 = vld [vmem:[#allocation11 + $0x418] sm:$0xff] }
 0x2ee   : > { %6044 = vmatpush1.bf16.msra.mxu1 %v6043_v63  ;;  %v6077_v63 = vpack.c.bf16 %v1047_v61, %v1045_v60  ;;  %v1292_v61 = vld [vmem:[#allocation11 + $0x400] sm:$0xff] }
 0x2ef   : > { %6046 = vmatprep.subr.bf16.mxu1 %v6045_v2  ;;  %v1049_v2 = vld [vmem:[#allocation11 + $0x108] sm:$0xff] }
 0x2f2   : > { %6048 = vmatpush1.bf16.msra.mxu1 %v6047_v5  ;;  %v6081_v5 = vpack.c.bf16 %v1051_v3, %v1049_v2  ;;  %v8124_v2 = vsel %vm763_vm4, 1.0, %v7524_v27 }
 0x2f3   : > { %6050 = vmatprep.subr.bf16.mxu1 %v6049_v8  ;;  %v1053_v8 = vld [vmem:[#allocation11 + $0x128] sm:$0xff] }
 0x2f4   : > { %v6085_v13 = vpack.c.bf16 %v1055_v9, %v1053_v8  ;;  %v1301_v8 = vld [vmem:[#allocation11 + $0x448] sm:$0xff]  ;;  %v1303_v9 = vld [vmem:[#allocation11 + $0x458] sm:$0xff] }
 0x384   : > { %v8105_v11 = vpop.f32.mrb[0].mxu1 }
 0x385   : > { %v5555_v12 = vpop.f32.mrb[1].mxu1  ;;  %v1080_v23 = vmul.f32 %v8109_v15, %v8105_v11  ;;  %v1014_v3 = vmul.f32 %v8116_v22, %v8105_v11 }
 0x386   : > { %v6083_v12 = vpack.c.bf16 %v1050_v7, %v1048_v6  ;;  %v1298_v6 = vld [vmem:[#allocation11 + $0x430] sm:$0xff] }
 0x388   : > { %v8111_v18 = vpop.f32.mrb[2].mxu1 }
 0x389   : > { %v5562_v19 = vpop.f32.mrb[3].mxu1  ;;  %v1081_v20 = vmul.f32 %v8109_v15, %v8111_v18  ;;  %v1015_v29 = vmul.f32 %v8116_v22, %v8111_v18  ;;  %v1290_v7 = vmul.f32 %v8124_v2, %v8111_v18 }
 0x38a   : > { %v1059_v19 = vld [vmem:[#allocation11 + $0x158] sm:$0xff] }
 0x38b   : > { %1211 = vmatprep.mubr.f32.mxu1 %v1081_v20  ;;  %v6087_v20 = vpack.c.bf16 %v1054_v16, %v1052_v14  ;;  %v1300_v14 = vld [vmem:[#allocation11 + $0x440] sm:$0xff]  ;;  %v1302_v16 = vld [vmem:[#allocation11 + $0x450] sm:$0xff] }
 0x38c   : > { %1212 = vmatmul.mubr.f32.vlgmr.msra.gmra.mrb[4].mxu1 %v1080_v23  ;;  %v1056_v23 = vld [vmem:[#allocation11 + $0x140] sm:$0xff] }
 0x38d   : > { %6052 = vmatpush1.bf16.msra.mxu1 %v6051_v21  ;;  %1282 = vmatprep.mubr.f32.mxu1 %v1015_v29  ;;  %v6089_v21 = vpack.c.bf16 %v1059_v19, %v1057_v17  ;;  %v1305_v17 = vld [vmem:[#allocation11 + $0x468] sm:$0xff]  ;;  %v1307_v19 = vld [vmem:[#allocation11 + $0x478] sm:$0xff] }
 0x38e   : > { %6054 = vmatprep.subr.bf16.mxu1 %v6053_v24  ;;  %v1058_v24 = vld [vmem:[#allocation11 + $0x150] sm:$0xff] }
 0x38f   : > { %v6091_v29 = vpack.c.bf16 %v1058_v24, %v1056_v23  ;;  %v1304_v23 = vld [vmem:[#allocation11 + $0x460] sm:$0xff]  ;;  %v1306_v24 = vld [vmem:[#allocation11 + $0x470] sm:$0xff] }
 0x391   : > { %6056 = vmatpush1.bf16.msra.mxu1 %v6055_v32  ;;  %v1062_v32 = vld [vmem:[#allocation11 + $0x170] sm:$0xff] }
 0x392   : > { %6058 = vmatprep.subr.bf16.mxu1 %v6057_v33  ;;  %v1065_v33 = vld [vmem:[#allocation11 + $0x188] sm:$0xff]  ;;  %v6095_v35 = vpack.c.bf16 %v1062_v32, %v1060_v31  ;;  %v1308_v31 = vld [vmem:[#allocation11 + $0x480] sm:$0xff]  ;;  %v1310_v32 = vld [vmem:[#allocation11 + $0x490] sm:$0xff] }
 0x393   : > { %v6097_v36 = vpack.c.bf16 %v1067_v34, %v1065_v33  ;;  %v1313_v33 = vld [vmem:[#allocation11 + $0x4a8] sm:$0xff]  ;;  %v1315_v34 = vld [vmem:[#allocation11 + $0x4b8] sm:$0xff] }
 0x395   : > { %6060 = vmatpush1.bf16.msra.mxu1 %v6059_v38  ;;  %v1066_v38 = vld [vmem:[#allocation11 + $0x190] sm:$0xff] }
 0x396   : > { %6062 = vmatprep.subr.bf16.mxu1 %v6061_v39  ;;  %v1069_v39 = vld [vmem:[#allocation11 + $0x1a8] sm:$0xff]  ;;  %v6099_v41 = vpack.c.bf16 %v1066_v38, %v1064_v37  ;;  %v1312_v37 = vld [vmem:[#allocation11 + $0x4a0] sm:$0xff]  ;;  %v1314_v38 = vld [vmem:[#allocation11 + $0x4b0] sm:$0xff] }
 0x397   : > { %v6101_v42 = vpack.c.bf16 %v1071_v40, %v1069_v39  ;;  %v1317_v39 = vld [vmem:[#allocation11 + $0x4c8] sm:$0xff]  ;;  %v1319_v40 = vld [vmem:[#allocation11 + $0x4d8] sm:$0xff] }
 0x399   : > { %6064 = vmatpush1.bf16.msra.mxu1 %v6063_v44  ;;  %v1070_v44 = vld [vmem:[#allocation11 + $0x1b0] sm:$0xff] }
 0x39a   : > { %6066 = vmatprep.subr.bf16.mxu1 %v6065_v45  ;;  %v1073_v45 = vld [vmem:[#allocation11 + $0x1c8] sm:$0xff]  ;;  %v6103_v47 = vpack.c.bf16 %v1070_v44, %v1068_v43  ;;  %v1316_v43 = vld [vmem:[#allocation11 + $0x4c0] sm:$0xff]  ;;  %v1318_v44 = vld [vmem:[#allocation11 + $0x4d0] sm:$0xff] }
 0x39b   : > { %v6105_v48 = vpack.c.bf16 %v1075_v46, %v1073_v45  ;;  %v1321_v45 = vld [vmem:[#allocation11 + $0x4e8] sm:$0xff]  ;;  %v1323_v46 = vld [vmem:[#allocation11 + $0x4f8] sm:$0xff] }
 0x39d   : > { %6068 = vmatpush1.bf16.msra.mxu1 %v6067_v50  ;;  %v1074_v50 = vld [vmem:[#allocation11 + $0x1d0] sm:$0xff] }
 0x39e   : > { %6070 = vmatprep.subr.bf16.mxu1 %v6069_v51  ;;  %v1077_v51 = vld [vmem:[#allocation11 + $0x1e8] sm:$0xff]  ;;  %v6107_v53 = vpack.c.bf16 %v1074_v50, %v1072_v49  ;;  %v1320_v49 = vld [vmem:[#allocation11 + $0x4e0] sm:$0xff]  ;;  %v1322_v50 = vld [vmem:[#allocation11 + $0x4f0] sm:$0xff] }
 0x39f   : > { %v6109_v54 = vpack.c.bf16 %v1079_v52, %v1077_v51  ;;  %v1325_v51 = vld [vmem:[#allocation11 + $0x508] sm:$0xff]  ;;  %v1327_v52 = vld [vmem:[#allocation11 + $0x518] sm:$0xff] }
 0x3a1   : > { %6072 = vmatpush1.bf16.msra.mxu1 %v6071_v56  ;;  %v1078_v56 = vld [vmem:[#allocation11 + $0x1f0] sm:$0xff] }
 0x3a2   : > { %6074 = vmatprep.subr.bf16.mxu1 %v6073_v57  ;;  %v1293_v57 = vld [vmem:[#allocation11 + $0x408] sm:$0xff]  ;;  %v6111_v59 = vpack.c.bf16 %v1078_v56, %v1076_v55  ;;  %v1324_v55 = vld [vmem:[#allocation11 + $0x500] sm:$0xff]  ;;  %v1326_v56 = vld [vmem:[#allocation11 + $0x510] sm:$0xff] }
 0x3a3   : > { %v6113_v60 = vpack.c.bf16 %v1295_v58, %v1293_v57  ;;  %v1329_v57 = vld [vmem:[#allocation11 + $0x528] sm:$0xff]  ;;  %v1331_v58 = vld [vmem:[#allocation11 + $0x538] sm:$0xff] }
 0x3a5   : > { %6076 = vmatpush1.bf16.msra.mxu1 %v6075_v62  ;;  %v1294_v62 = vld [vmem:[#allocation11 + $0x410] sm:$0xff] }
 0x3a6   : > { %6078 = vmatprep.subr.bf16.mxu1 %v6077_v63  ;;  %v1297_v63 = vld [vmem:[#allocation11 + $0x428] sm:$0xff]  ;;  %v6115_v1 = vpack.c.bf16 %v1294_v62, %v1292_v61  ;;  %v1328_v61 = vld [vmem:[#allocation11 + $0x520] sm:$0xff]  ;;  %v1330_v62 = vld [vmem:[#allocation11 + $0x530] sm:$0xff] }
 0x3a9   : > { %6080 = vmatpush1.bf16.msra.mxu1 %v6079_v4  ;;  %v6117_v4 = vpack.c.bf16 %v1299_v0, %v1297_v63  ;;  %v1333_v63 = vld [vmem:[#allocation11 + $0x548] sm:$0xff]  ;;  %v1335_v0 = vld [vmem:[#allocation11 + $0x558] sm:$0xff] }
 0x3aa   : > { %6082 = vmatprep.subr.bf16.mxu1 %v6081_v5  ;;  %v1296_v5 = vld [vmem:[#allocation11 + $0x420] sm:$0xff] }
 0x3ad   : > { %6084 = vmatpush1.bf16.msra.mxu1 %v6083_v12  ;;  %v6119_v12 = vpack.c.bf16 %v1298_v6, %v1296_v5  ;;  %v1334_v5 = vld [vmem:[#allocation11 + $0x550] sm:$0xff]  ;;  %v1337_v6 = vld [vmem:[#allocation11 + $0x568] sm:$0xff] }
 0x3ae   : > { %6086 = vmatprep.subr.bf16.mxu1 %v6085_v13  ;;  %v6121_v13 = vpack.c.bf16 %v1303_v9, %v1301_v8 }
 0x3b1   : > { %6088 = vmatpush1.bf16.msra.mxu1 %v6087_v20  ;;  %v6123_v20 = vpack.c.bf16 %v1302_v16, %v1300_v14  ;;  %v1341_v14 = vld [vmem:[#allocation11 + $0x588] sm:$0xff]  ;;  %v1343_v16 = vld [vmem:[#allocation11 + $0x598] sm:$0xff] }
 0x3b2   : > { %6090 = vmatprep.subr.bf16.mxu1 %v6089_v21  ;;  %v6125_v21 = vpack.c.bf16 %v1307_v19, %v1305_v17  ;;  %v6161_v19 = vpack.c.bf16 %v1343_v16, %v1341_v14  ;;  %v1455_v14 = vld [vmem:[#allocation11 + $0x6b8] sm:$0xff] }
 0x3b5   : > { %6092 = vmatpush1.bf16.msra.mxu1 %v6091_v29  ;;  %v6127_v29 = vpack.c.bf16 %v1306_v24, %v1304_v23  ;;  %v1345_v23 = vld [vmem:[#allocation11 + $0x5a8] sm:$0xff]  ;;  %v1347_v24 = vld [vmem:[#allocation11 + $0x5b8] sm:$0xff] }
 0x3b6   : > { %6094 = vmatprep.subr.bf16.mxu1 %v6093_v30  ;;  %v6129_v30 = vpack.c.bf16 %v1311_v28, %v1309_v25  ;;  %v6165_v28 = vpack.c.bf16 %v1347_v24, %v1345_v23  ;;  %v1459_v23 = vld [vmem:[#allocation11 + $0x6d8] sm:$0xff] }
 0x3b9   : > { %6096 = vmatpush1.bf16.msra.mxu1 %v6095_v35  ;;  %v6131_v35 = vpack.c.bf16 %v1310_v32, %v1308_v31  ;;  %v1349_v31 = vld [vmem:[#allocation11 + $0x5c8] sm:$0xff]  ;;  %v1351_v32 = vld [vmem:[#allocation11 + $0x5d8] sm:$0xff] }
 0x3ba   : > { %6098 = vmatprep.subr.bf16.mxu1 %v6097_v36  ;;  %v6133_v36 = vpack.c.bf16 %v1315_v34, %v1313_v33  ;;  %v6169_v34 = vpack.c.bf16 %v1351_v32, %v1349_v31  ;;  %v1463_v31 = vld [vmem:[#allocation11 + $0x6f8] sm:$0xff] }
 0x3bd   : > { %6100 = vmatpush1.bf16.msra.mxu1 %v6099_v41  ;;  %v6135_v41 = vpack.c.bf16 %v1314_v38, %v1312_v37  ;;  %v1353_v37 = vld [vmem:[#allocation11 + $0x5e8] sm:$0xff]  ;;  %v1355_v38 = vld [vmem:[#allocation11 + $0x5f8] sm:$0xff] }
 0x3be   : > { %6102 = vmatprep.subr.bf16.mxu1 %v6101_v42  ;;  %v6137_v42 = vpack.c.bf16 %v1319_v40, %v1317_v39  ;;  %v6173_v40 = vpack.c.bf16 %v1355_v38, %v1353_v37  ;;  %v1467_v37 = vld [vmem:[#allocation11 + $0x718] sm:$0xff] }
 0x3c1   : > { %6104 = vmatpush1.bf16.msra.mxu1 %v6103_v47  ;;  %v6139_v47 = vpack.c.bf16 %v1318_v44, %v1316_v43  ;;  %v1433_v43 = vld [vmem:[#allocation11 + $0x608] sm:$0xff]  ;;  %v1435_v44 = vld [vmem:[#allocation11 + $0x618] sm:$0xff] }
 0x3c2   : > { %6106 = vmatprep.subr.bf16.mxu1 %v6105_v48  ;;  %v6141_v48 = vpack.c.bf16 %v1323_v46, %v1321_v45  ;;  %v6177_v46 = vpack.c.bf16 %v1435_v44, %v1433_v43  ;;  %v1471_v43 = vld [vmem:[#allocation11 + $0x738] sm:$0xff] }
 0x3c5   : > { %6108 = vmatpush1.bf16.msra.mxu1 %v6107_v53  ;;  %v6143_v53 = vpack.c.bf16 %v1322_v50, %v1320_v49  ;;  %v1437_v49 = vld [vmem:[#allocation11 + $0x628] sm:$0xff]  ;;  %v1439_v50 = vld [vmem:[#allocation11 + $0x638] sm:$0xff] }
 0x3c6   : > { %6110 = vmatprep.subr.bf16.mxu1 %v6109_v54  ;;  %v6145_v54 = vpack.c.bf16 %v1327_v52, %v1325_v51  ;;  %v8132_v52 = vsel %vm766_vm5, 1.0, %v7524_v27 }
 0x3c9   : > { %6112 = vmatpush1.bf16.msra.mxu1 %v6111_v59  ;;  %v6147_v59 = vpack.c.bf16 %v1326_v56, %v1324_v55  ;;  %v1436_v55 = vld [vmem:[#allocation11 + $0x620] sm:$0xff]  ;;  %v1438_v56 = vld [vmem:[#allocation11 + $0x630] sm:$0xff] }
 0x3ca   : > { %6114 = vmatprep.subr.bf16.mxu1 %v6113_v60  ;;  %v6149_v60 = vpack.c.bf16 %v1331_v58, %v1329_v57  ;;  %v1430_v57 = vmul.f32 %v8132_v52, %v8111_v18  ;;  %v1441_v58 = vld [vmem:[#allocation11 + $0x648] sm:$0xff]  ;;  %v6183_v10 = vpack.c.bf16 %v1438_v56, %v1436_v55  ;;  %v1451_v18 = vld [vmem:[#allocation11 + $0x698] sm:$0xff] }
 0x3cb   : > { %v1477_v55 = vld [vmem:[#allocation11 + $0x768] sm:$0xff]  ;;  %v1479_v56 = vld [vmem:[#allocation11 + $0x778] sm:$0xff] }
 0x3cc   : > { %1283 = vmatmul.mubr.f32.vlgmr.msra.gmra.mrb[4].mxu1 %v1014_v3  ;;  %v6153_v3 = vpack.c.bf16 %v1335_v0, %v1333_v63  ;;  %v1445_v63 = vld [vmem:[#allocation11 + $0x668] sm:$0xff]  ;;  %v1447_v0 = vld [vmem:[#allocation11 + $0x678] sm:$0xff] }
 0x3cd   : > { %6116 = vmatpush1.bf16.msra.mxu1 %v6115_v1  ;;  %1420 = vmatprep.mubr.f32.mxu1 %v1290_v7  ;;  %v6151_v1 = vpack.c.bf16 %v1330_v62, %v1328_v61  ;;  %v1339_v7 = vld [vmem:[#allocation11 + $0x578] sm:$0xff]  ;;  %v1440_v61 = vld [vmem:[#allocation11 + $0x640] sm:$0xff]  ;;  %v1442_v62 = vld [vmem:[#allocation11 + $0x650] sm:$0xff] }
 0x3ce   : > { %6118 = vmatprep.subr.bf16.mxu1 %v6117_v4  ;;  %v1332_v4 = vld [vmem:[#allocation11 + $0x540] sm:$0xff]  ;;  %v6157_v9 = vpack.c.bf16 %v1339_v7, %v1337_v6  ;;  %v1449_v6 = vld [vmem:[#allocation11 + $0x688] sm:$0xff] }
 0x3cf   : > { %v6155_v8 = vpack.c.bf16 %v1334_v5, %v1332_v4  ;;  %v1444_v4 = vld [vmem:[#allocation11 + $0x660] sm:$0xff]  ;;  %v1446_v5 = vld [vmem:[#allocation11 + $0x670] sm:$0xff] }
 0x3d0   : > { %v6191_v7 = vpack.c.bf16 %v1446_v5, %v1444_v4  ;;  %v1487_v4 = vld [vmem:[#allocation11 + $0x7b8] sm:$0xff] }
 0x3d1   : > { %6120 = vmatpush1.bf16.msra.mxu1 %v6119_v12  ;;  %v1336_v12 = vld [vmem:[#allocation11 + $0x560] sm:$0xff] }
 0x3d2   : > { %6122 = vmatprep.subr.bf16.mxu1 %v6121_v13  ;;  %v1338_v13 = vld [vmem:[#allocation11 + $0x570] sm:$0xff] }
 0x3d3   : > { %v6159_v17 = vpack.c.bf16 %v1338_v13, %v1336_v12  ;;  %v1450_v12 = vld [vmem:[#allocation11 + $0x690] sm:$0xff]  ;;  %v1453_v13 = vld [vmem:[#allocation11 + $0x6a8] sm:$0xff] }
 0x3d5   : > { %6124 = vmatpush1.bf16.msra.mxu1 %v6123_v20  ;;  %v1340_v20 = vld [vmem:[#allocation11 + $0x580] sm:$0xff] }
 0x3d6   : > { %6126 = vmatprep.subr.bf16.mxu1 %v6125_v21  ;;  %v1342_v21 = vld [vmem:[#allocation11 + $0x590] sm:$0xff] }
 0x3d7   : > { %v6163_v25 = vpack.c.bf16 %v1342_v21, %v1340_v20  ;;  %v1454_v20 = vld [vmem:[#allocation11 + $0x6b0] sm:$0xff]  ;;  %v1457_v21 = vld [vmem:[#allocation11 + $0x6c8] sm:$0xff] }
 0x3d9   : > { %6128 = vmatpush1.bf16.msra.mxu1 %v6127_v29  ;;  %v1344_v29 = vld [vmem:[#allocation11 + $0x5a0] sm:$0xff] }
 0x3da   : > { %6130 = vmatprep.subr.bf16.mxu1 %v6129_v30  ;;  %v1346_v30 = vld [vmem:[#allocation11 + $0x5b0] sm:$0xff] }
 0x3db   : > { %v6167_v33 = vpack.c.bf16 %v1346_v30, %v1344_v29  ;;  %v1458_v29 = vld [vmem:[#allocation11 + $0x6d0] sm:$0xff]  ;;  %v1461_v30 = vld [vmem:[#allocation11 + $0x6e8] sm:$0xff] }
 0x3dd   : > { %6132 = vmatpush1.bf16.msra.mxu1 %v6131_v35  ;;  %v1348_v35 = vld [vmem:[#allocation11 + $0x5c0] sm:$0xff] }
 0x3de   : > { %6134 = vmatprep.subr.bf16.mxu1 %v6133_v36  ;;  %v1350_v36 = vld [vmem:[#allocation11 + $0x5d0] sm:$0xff] }
 0x3df   : > { %v6171_v39 = vpack.c.bf16 %v1350_v36, %v1348_v35  ;;  %v1462_v35 = vld [vmem:[#allocation11 + $0x6f0] sm:$0xff]  ;;  %v1465_v36 = vld [vmem:[#allocation11 + $0x708] sm:$0xff] }
 0x3e1   : > { %6136 = vmatpush1.bf16.msra.mxu1 %v6135_v41  ;;  %v1352_v41 = vld [vmem:[#allocation11 + $0x5e0] sm:$0xff] }
 0x3e2   : > { %6138 = vmatprep.subr.bf16.mxu1 %v6137_v42  ;;  %v1354_v42 = vld [vmem:[#allocation11 + $0x5f0] sm:$0xff] }
 0x3e3   : > { %v6175_v45 = vpack.c.bf16 %v1354_v42, %v1352_v41  ;;  %v1466_v41 = vld [vmem:[#allocation11 + $0x710] sm:$0xff]  ;;  %v1469_v42 = vld [vmem:[#allocation11 + $0x728] sm:$0xff] }
 0x3e5   : > { %6140 = vmatpush1.bf16.msra.mxu1 %v6139_v47  ;;  %v1432_v47 = vld [vmem:[#allocation11 + $0x600] sm:$0xff] }
 0x3e6   : > { %6142 = vmatprep.subr.bf16.mxu1 %v6141_v48  ;;  %v1434_v48 = vld [vmem:[#allocation11 + $0x610] sm:$0xff] }
 0x3e7   : > { %v6179_v51 = vpack.c.bf16 %v1434_v48, %v1432_v47  ;;  %v1470_v47 = vld [vmem:[#allocation11 + $0x730] sm:$0xff]  ;;  %v1473_v48 = vld [vmem:[#allocation11 + $0x748] sm:$0xff] }
 0x3e9   : > { %6144 = vmatpush1.bf16.msra.mxu1 %v6143_v53  ;;  %v1289_v53 = vmul.f32 %v8124_v2, %v8105_v11 }
 0x3ea   : > { %6146 = vmatprep.subr.bf16.mxu1 %v6145_v54  ;;  %v6181_v54 = vpack.c.bf16 %v1439_v50, %v1437_v49  ;;  %v1475_v49 = vld [vmem:[#allocation11 + $0x758] sm:$0xff] }
 0x3ed   : > { %6148 = vmatpush1.bf16.msra.mxu1 %v6147_v59  ;;  %v1443_v59 = vld [vmem:[#allocation11 + $0x658] sm:$0xff] }
 0x3ee   : > { %6150 = vmatprep.subr.bf16.mxu1 %v6149_v60  ;;  %v6185_v60 = vpack.c.bf16 %v1443_v59, %v1441_v58  ;;  %v6221_v58 = vpack.c.bf16 %v1479_v56, %v1477_v55  ;;  %v1476_v59 = vld [vmem:[#allocation11 + $0x760] sm:$0xff]  ;;  %v2123_v55 = vld [vmem:[#allocation13 + $0x48] sm:$0xff] }
 0x3f1   : > { %6152 = vmatpush1.bf16.msra.mxu1 %v6151_v1  ;;  %v6187_v1 = vpack.c.bf16 %v1442_v62, %v1440_v61  ;;  %v1483_v61 = vld [vmem:[#allocation11 + $0x798] sm:$0xff] }
 0x3f2   : > { %6154 = vmatprep.subr.bf16.mxu1 %v6153_v3  ;;  %v6189_v3 = vpack.c.bf16 %v1447_v0, %v1445_v63  ;;  %v1480_v0 = vld [vmem:[#allocation11 + $0x780] sm:$0xff] }
 0x3f5   : > { %6156 = vmatpush1.bf16.msra.mxu1 %v6155_v8  ;;  %v6193_v8 = vpack.c.bf16 %v1451_v18, %v1449_v6  ;;  %v1484_v18 = vld [vmem:[#allocation11 + $0x7a0] sm:$0xff] }
 0x3f6   : > { %6158 = vmatprep.subr.bf16.mxu1 %v6157_v9  ;;  %v1448_v9 = vld [vmem:[#allocation11 + $0x680] sm:$0xff] }
 0x3f7   : > { %v6195_v16 = vpack.c.bf16 %v1450_v12, %v1448_v9  ;;  %v1491_v9 = vld [vmem:[#allocation11 + $0x7d8] sm:$0xff] }
 0x3f9   : > { %6160 = vmatpush1.bf16.msra.mxu1 %v6159_v17  ;;  %v6197_v17 = vpack.c.bf16 %v1455_v14, %v1453_v13  ;;  %v1488_v14 = vld [vmem:[#allocation11 + $0x7c0] sm:$0xff] }
 0x3fa   : > { %6162 = vmatprep.subr.bf16.mxu1 %v6161_v19  ;;  %v1452_v19 = vld [vmem:[#allocation11 + $0x6a0] sm:$0xff] }
 0x3fb   : > { %v6199_v24 = vpack.c.bf16 %v1454_v20, %v1452_v19  ;;  %v1495_v19 = vld [vmem:[#allocation11 + $0x7f8] sm:$0xff] }
 0x3fd   : > { %6164 = vmatpush1.bf16.msra.mxu1 %v6163_v25  ;;  %v6201_v25 = vpack.c.bf16 %v1459_v23, %v1457_v21  ;;  %v1492_v23 = vld [vmem:[#allocation11 + $0x7e0] sm:$0xff] }
 0x3fe   : > { %6166 = vmatprep.subr.bf16.mxu1 %v6165_v28  ;;  %v1456_v28 = vld [vmem:[#allocation11 + $0x6c0] sm:$0xff] }
 0x3ff   : > { %v6203_v32 = vpack.c.bf16 %v1458_v29, %v1456_v28  ;;  %v1429_v28 = vmul.f32 %v8132_v52, %v8105_v11  ;;  %v751_v29 = vld [vmem:[%s8471_s7] sm:$0xff] }
 0x400   : > { %v749_v11 = vld [vmem:[%s8472_s20] sm:$0xff] }
 0x401   : > { %6168 = vmatpush1.bf16.msra.mxu1 %v6167_v33  ;;  %v6205_v33 = vpack.c.bf16 %v1463_v31, %v1461_v30 }
 0x402   : > { %6170 = vmatprep.subr.bf16.mxu1 %v6169_v34  ;;  %v1460_v34 = vld [vmem:[#allocation11 + $0x6e0] sm:$0xff] }
 0x403   : > { %v6207_v38 = vpack.c.bf16 %v1462_v35, %v1460_v34  ;;  %v1772_v35 = vld [vmem:[#allocation13] sm:$0xff] }
 0x405   : > { %6172 = vmatpush1.bf16.msra.mxu1 %v6171_v39  ;;  %v6209_v39 = vpack.c.bf16 %v1467_v37, %v1465_v36  ;;  %v1773_v36 = vld [vmem:[#allocation13 + $0x8] sm:$0xff] }
 0x406   : > { %6174 = vmatprep.subr.bf16.mxu1 %v6173_v40  ;;  %v1464_v40 = vld [vmem:[#allocation11 + $0x700] sm:$0xff] }
 0x407   : > { %v6211_v44 = vpack.c.bf16 %v1466_v41, %v1464_v40  ;;  %v1865_v40 = vld [vmem:[#allocation13 + $0x18] sm:$0xff] }
 0x409   : > { %6176 = vmatpush1.bf16.msra.mxu1 %v6175_v45  ;;  %v6213_v45 = vpack.c.bf16 %v1471_v43, %v1469_v42  ;;  %v1950_v42 = vld [vmem:[#allocation13 + $0x20] sm:$0xff]  ;;  %v1951_v43 = vld [vmem:[#allocation13 + $0x28] sm:$0xff] }
 0x40a   : > { %6178 = vmatprep.subr.bf16.mxu1 %v6177_v46  ;;  %v1468_v46 = vld [vmem:[#allocation11 + $0x720] sm:$0xff] }
 0x40b   : > { %v6215_v50 = vpack.c.bf16 %v1470_v47, %v1468_v46  ;;  %v2037_v46 = vld [vmem:[#allocation13 + $0x38] sm:$0xff] }
 0x40c   : > { %1421 = vmatmul.mubr.f32.vlgmr.msra.gmra.mrb[4].mxu1 %v1289_v53  ;;  %v1472_v53 = vld [vmem:[#allocation11 + $0x740] sm:$0xff] }
 0x40d   : > { %6180 = vmatpush1.bf16.msra.mxu1 %v6179_v51  ;;  %1560 = vmatprep.mubr.f32.mxu1 %v1430_v57  ;;  %v6217_v51 = vpack.c.bf16 %v1475_v49, %v1473_v48 }
 0x40e   : > { %6182 = vmatprep.subr.bf16.mxu1 %v6181_v54  ;;  %v1474_v54 = vld [vmem:[#allocation11 + $0x750] sm:$0xff] }
 0x40f   : > { %v6219_v57 = vpack.c.bf16 %v1474_v54, %v1472_v53  ;;  %v2122_v54 = vld [vmem:[#allocation13 + $0x40] sm:$0xff] }
 0x410   : > { %v6257_v56 = vpack.c.bf16 %v2123_v55, %v2122_v54  ;;  %v2561_v54 = vld [vmem:[#allocation17 + $0x68] sm:$0xff] }
 0x411   : > { %6184 = vmatpush1.bf16.msra.mxu1 %v6183_v10  ;;  %v1478_v10 = vld [vmem:[#allocation11 + $0x770] sm:$0xff] }
 0x412   : > { %6186 = vmatprep.subr.bf16.mxu1 %v6185_v60  ;;  %v1481_v60 = vld [vmem:[#allocation11 + $0x788] sm:$0xff]  ;;  %v6223_v62 = vpack.c.bf16 %v1478_v10, %v1476_v59  ;;  %v2208_v59 = vld [vmem:[#allocation13 + $0x50] sm:$0xff]  ;;  %v2209_v10 = vld [vmem:[#allocation13 + $0x58] sm:$0xff] }
 0x413   : > { %v6225_v63 = vpack.c.bf16 %v1483_v61, %v1481_v60  ;;  %v6261_v60 = vpack.c.bf16 %v2209_v10, %v2208_v59  ;;  %v2641_v59 = vld [vmem:[#allocation19] sm:$0xff]  ;;  %v2642_v10 = vld [vmem:[#allocation19 + $0x8] sm:$0xff] }
 0x415   : > { %6188 = vmatpush1.bf16.msra.mxu1 %v6187_v1  ;;  %v1482_v1 = vld [vmem:[#allocation11 + $0x790] sm:$0xff] }
 0x416   : > { %6190 = vmatprep.subr.bf16.mxu1 %v6189_v3  ;;  %v1485_v3 = vld [vmem:[#allocation11 + $0x7a8] sm:$0xff]  ;;  %v6227_v5 = vpack.c.bf16 %v1482_v1, %v1480_v0 }
 0x417   : > { %v6229_v6 = vpack.c.bf16 %v1487_v4, %v1485_v3  ;;  %v2295_v0 = vld [vmem:[#allocation13 + $0x68] sm:$0xff] }
 0x419   : > { %6192 = vmatpush1.bf16.msra.mxu1 %v6191_v7  ;;  %v1486_v7 = vld [vmem:[#allocation11 + $0x7b0] sm:$0xff] }
 0x41a   : > { %6194 = vmatprep.subr.bf16.mxu1 %v6193_v8  ;;  %v1489_v8 = vld [vmem:[#allocation11 + $0x7c8] sm:$0xff]  ;;  %v6231_v12 = vpack.c.bf16 %v1486_v7, %v1484_v18 }
 0x41b   : > { %v6233_v13 = vpack.c.bf16 %v1491_v9, %v1489_v8 }
 0x41d   : > { %6196 = vmatpush1.bf16.msra.mxu1 %v6195_v16  ;;  %v1490_v16 = vld [vmem:[#allocation11 + $0x7d0] sm:$0xff] }
 0x41e   : > { %6198 = vmatprep.subr.bf16.mxu1 %v6197_v17  ;;  %v1493_v17 = vld [vmem:[#allocation11 + $0x7e8] sm:$0xff]  ;;  %v6235_v20 = vpack.c.bf16 %v1490_v16, %v1488_v14 }
 0x41f   : > { %v6237_v21 = vpack.c.bf16 %v1495_v19, %v1493_v17  ;;  %v8177_v14 = vld [vmem:[#allocation16] sm:$0xff]  ;;  %v5230_v19 = vld [vmem:[#allocation14] ss:$0 sm:$0xff] }
 0x421   : > { %6200 = vmatpush1.bf16.msra.mxu1 %v6199_v24  ;;  %v1494_v24 = vld [vmem:[#allocation11 + $0x7f0] sm:$0xff] }
 0x422   : > { %6202 = vmatprep.subr.bf16.mxu1 %v6201_v25  ;;  %v6239_v25 = vpack.c.bf16 %v1494_v24, %v1492_v23 }
 0x425   : > { %6204 = vmatpush1.bf16.msra.mxu1 %v6203_v32  ;;  %v752_v32 = vld [vmem:[%s8471_s7 + $0x8] sm:$0xff] }
 0x426   : > { %6206 = vmatprep.subr.bf16.mxu1 %v6205_v33  ;;  %v750_v33 = vld [vmem:[%s8472_s20 + $0x8] sm:$0xff] }
 0x429   : > { %6208 = vmatpush1.bf16.msra.mxu1 %v6207_v38  ;;  %v6241_v38 = vpack.c.bf16 %v1773_v36, %v1772_v35  ;;  %v2550_v36 = vld [vmem:[#allocation17 + $0x10] sm:$0xff] }
 0x42a   : > { %6210 = vmatprep.subr.bf16.mxu1 %v6209_v39  ;;  %v1864_v39 = vld [vmem:[#allocation13 + $0x10] sm:$0xff] }
 0x42b   : > { %v6245_v41 = vpack.c.bf16 %v1865_v40, %v1864_v39  ;;  %v2552_v40 = vld [vmem:[#allocation17 + $0x20] sm:$0xff] }
 0x42d   : > { %6212 = vmatpush1.bf16.msra.mxu1 %v6211_v44  ;;  %v6249_v44 = vpack.c.bf16 %v1951_v43, %v1950_v42  ;;  %v2554_v43 = vld [vmem:[#allocation17 + $0x30] sm:$0xff] }
 0x42e   : > { %6214 = vmatprep.subr.bf16.mxu1 %v6213_v45  ;;  %v2036_v45 = vld [vmem:[#allocation13 + $0x30] sm:$0xff] }
 0x42f   : > { %6250 = vmatprep.subr.bf16.mxu0 %v6249_v44  ;;  %v6253_v47 = vpack.c.bf16 %v2037_v46, %v2036_v45  ;;  %v2556_v46 = vld [vmem:[#allocation17 + $0x40] sm:$0xff] }
 0x430   : > { %6252 = vmatpush3.bf16.msra.mxu0 %v6249_v44  ;;  %v2555_v44 = vld [vmem:[#allocation17 + $0x38] sm:$0xff] }
 0x431   : > { %6216 = vmatpush1.bf16.msra.mxu1 %v6215_v50  ;;  %6254 = vmatprep.subr.bf16.mxu0 %v6253_v47  ;;  %v6289_v45 = vpack.c.bf16 %v2555_v44, %v2554_v43  ;;  %v2814_v43 = vld [vmem:[#allocation5 + $0xa0] sm:$0xff]  ;;  %v2815_v44 = vld [vmem:[#allocation5 + $0xa8] sm:$0xff] }
 0x432   : > { %6218 = vmatprep.subr.bf16.mxu1 %v6217_v51 }
 0x435   : > { %6220 = vmatpush1.bf16.msra.mxu1 %v6219_v57 }
 0x436   : > { %6222 = vmatprep.subr.bf16.mxu1 %v6221_v58 }
 0x439   : > { %6224 = vmatpush1.bf16.msra.mxu1 %v6223_v62 }
 0x43a   : > { %6226 = vmatprep.subr.bf16.mxu1 %v6225_v63  ;;  %v2294_v63 = vld [vmem:[#allocation13 + $0x60] sm:$0xff] }
 0x43b   : > { %v6265_v1 = vpack.c.bf16 %v2295_v0, %v2294_v63 }
 0x43d   : > { %6228 = vmatpush1.bf16.msra.mxu1 %v6227_v5  ;;  %v2380_v5 = vld [vmem:[#allocation13 + $0x70] sm:$0xff] }
 0x43e   : > { %6230 = vmatprep.subr.bf16.mxu1 %v6229_v6  ;;  %v2381_v6 = vld [vmem:[#allocation13 + $0x78] sm:$0xff] }
 0x43f   : > { %v6269_v18 = vpack.c.bf16 %v2381_v6, %v2380_v5  ;;  %v2647_v6 = vld [vmem:[#allocation19 + $0x30] sm:$0xff] }
 0x441   : > { %6232 = vmatpush1.bf16.msra.mxu1 %v6231_v12 }
 0x442   : > { %6234 = vmatprep.subr.bf16.mxu1 %v6233_v13 }
 0x445   : > { %6236 = vmatpush1.bf16.msra.mxu1 %v6235_v20 }
 0x446   : > { %6238 = vmatprep.subr.bf16.mxu1 %v6237_v21 }
 0x449   : > { %6240 = vmatpush1.bf16.msra.mxu1 %v6239_v25 }
 0x44c   : > { %1561 = vmatmul.mubr.f32.vlgmr.msra.gmra.mrb[4].mxu1 %v1429_v28 }
 0x44d   : > { %5565 = vmatprep.mubr.msk.f32.mxu1 %vm1569_vm6, %v751_v29 }
 0x51f   : > { %v1562_v30 = vpop.f32.mrb[4].mxu1 }
 0x520   : > { %v1564_v31 = vpop.f32.mrb[5].mxu1 }
 0x521   : > { %5563 = vmatprep.subr.msk.mxu1 %vm1576_vm7, %v1564_v31 }
 0x522   : > { %5564 = vmatpush3.msk.msra.mxu1 %vm1576_vm7, %v1564_v31  ;;  %v2548_v31 = vld [vmem:[#allocation17] sm:$0xff] }
 0x523   : > { %5566 = vmatmul.mubr.msk.f32.vlgmr.msra.gmra.mrb[6].mxu1 %vm1569_vm6, %v752_v32  ;;  %5568 = vmatprep.subr.msk.mxu1 %vm1576_vm7, %v1562_v30  ;;  %v2549_v32 = vld [vmem:[#allocation17 + $0x8] sm:$0xff] }
 0x524   : > { %5569 = vmatpush3.msk.msra.mxu1 %vm1576_vm7, %v1562_v30  ;;  %5570 = vmatprep.mubr.msk.f32.mxu1 %vm1569_vm6, %v749_v11  ;;  %v7005_v11 = vld [vmem:[%s8058_s3] sm:$0xff]  ;;  %v6277_v35 = vpack.c.bf16 %v2549_v32, %v2548_v31 }
 0x525   : > { %6242 = vmatprep.subr.bf16.mxu1 %v6241_v38 }
 0x52b   : > { %5571 = vmatmul.mubr.msk.f32.vlgmr.msra.gmra.mrb[6].mxu1 %vm1569_vm6, %v750_v33 }
 0x52c   : > { %6244 = vmatpush3.bf16.msra.mxu1 %v6241_v38  ;;  %v8183_v38 = vld [vmem:[#allocation16 + $0x8] sm:$0xff] }
 0x52d   : > { %6246 = vmatprep.subr.bf16.mxu1 %v6245_v41 }
 0x5fe   : > { %v5572_v34 = vpop.f32.mrb[6].mxu1 }
 0x5ff   : > { %v1730_v37 = vpop.f32.mrb[7].mxu1 }
 0x600   : > { %1739 = vxpose.xlu0.b32.start [1/2] (short) %v1730_v37, 128  ;;  %v2551_v37 = vld [vmem:[#allocation17 + $0x18] sm:$0xff] }
 0x601   : > { %v6281_v39 = vpack.c.bf16 %v2551_v37, %v2550_v36 }
 0x604   : > { %1740 = vxpose.xlu0.b32.end [2/2] (short) %v5572_v34, 128 }
 0x680   : > { %v1755_v48 = vpop.trf.xlu0 }
 0x681   : > { %5577 = vmatprep.mubr.msk.f32.mxu1 %vm867_vm1, %v1755_v48 }
 0x684   : > { %v1756_v49 = vpop.trf.xlu0 }
 0x685   : > { %5578 = vmatmul.mubr.msk.f32.vlgmr.msra.gmra.mrb[8].mxu1 %vm867_vm1, %v1756_v49  ;;  %v2558_v49 = vld [vmem:[#allocation17 + $0x50] sm:$0xff] }
 0x686   : > { %6248 = vmatpush3.bf16.msra.mxu1 %v6245_v41  ;;  %v2553_v41 = vld [vmem:[#allocation17 + $0x28] sm:$0xff] }
 0x687   : > { %v6285_v42 = vpack.c.bf16 %v2553_v41, %v2552_v40  ;;  %v2812_v40 = vld [vmem:[#allocation5 + $0x90] sm:$0xff]  ;;  %v2813_v41 = vld [vmem:[#allocation5 + $0x98] sm:$0xff] }
 0x688   : > { %v1757_v50 = vpop.trf.xlu0 }
 0x689   : > { %5584 = vmatprep.mubr.msk.f32.mxu1 %vm867_vm1, %v1757_v50  ;;  %v2559_v50 = vld [vmem:[#allocation17 + $0x58] sm:$0xff] }
 0x68c   : > { %v1758_v51 = vpop.trf.xlu0 }
 0x68d   : > { %5585 = vmatmul.mubr.msk.f32.vlgmr.msra.gmra.mrb[8].mxu1 %vm867_vm1, %v1758_v51  ;;  %v6297_v51 = vpack.c.bf16 %v2559_v50, %v2558_v49  ;;  %v2819_v49 = vld [vmem:[#allocation5 + $0xc8] sm:$0xff] }
 0x68e   : > { %5764 = vmatprep.mubr.msk.f32.mxu1 %vm1569_vm6, %v751_v29  ;;  %v7004_v29 = vld [vmem:[%s8058_s3 + $0x8] sm:$0xff]  ;;  %s7407_s3 = scalar_lea.vmem %s8336_s22, 16 }
 0x68f   : > { %p7408_p7 = scmp.ne.s32.totalorder %s8336_s22, %s7407_s3  ;;  %p7415_p2 = scmp.lt.s32.totalorder %s7413_s4, %s7407_s3 }
 0x690   : > { %v1759_v53 = vpop.trf.xlu0 }
 0x691   : > { %5591 = vmatprep.mubr.msk.f32.mxu0 %vm867_vm1, %v1759_v53  ;;  %v2560_v53 = vld [vmem:[#allocation17 + $0x60] sm:$0xff]  ;;  %p7409_p4 = pnand %p7408_p7, %p8475_p9  ;;  %p7416_p6 = por %p7415_p2, %p7414_p0 }
 0x692   : > { %v6301_v55 = vpack.c.bf16 %v2561_v54, %v2560_v53  ;;  %v2821_v53 = vld [vmem:[#allocation5 + $0xd8] sm:$0xff] }
 0x693   : > { %p7410_p3 = pneg %p7409_p4 }
 0x694   : > { %v1760_v57 = vpop.trf.xlu0 }
 0x695   : > { %5592 = vmatmul.mubr.msk.f32.vlgmr.msra.gmra.mrb[2].mxu0 %vm867_vm1, %v1760_v57  ;;  %v2563_v57 = vld [vmem:[#allocation17 + $0x78] sm:$0xff]  ;;  %p7417_p5 = pnand %p7416_p6, %p7410_p3 }
 0x696   : > { %6256 = vmatpush3.bf16.msra.mxu0 %v6253_v47  ;;  %v2557_v47 = vld [vmem:[#allocation17 + $0x48] sm:$0xff] }
 0x697   : > { %6258 = vmatprep.subr.bf16.mxu0 %v6257_v56  ;;  %v6293_v48 = vpack.c.bf16 %v2557_v47, %v2556_v46  ;;  %v2817_v46 = vld [vmem:[#allocation5 + $0xb8] sm:$0xff] }
 0x698   : > { %v1761_v58 = vpop.trf.xlu0 }
 0x699   : > { %5598 = vmatprep.mubr.msk.f32.mxu0 %vm867_vm1, %v1761_v58 }
 0x69c   : > { %v1762_v61 = vpop.trf.xlu0 }
 0x69d   : > { %5599 = vmatmul.mubr.msk.f32.vlgmr.msra.gmra.mrb[2].mxu0 %vm867_vm1, %v1762_v61  ;;  %v2643_v61 = vld [vmem:[#allocation19 + $0x10] sm:$0xff] }
 0x69e   : > { %6260 = vmatpush3.bf16.msra.mxu0 %v6257_v56  ;;  %v2562_v56 = vld [vmem:[#allocation17 + $0x70] sm:$0xff] }
 0x69f   : > { %6262 = vmatprep.subr.bf16.mxu0 %v6261_v60  ;;  %v6305_v58 = vpack.c.bf16 %v2563_v57, %v2562_v56  ;;  %v2824_v57 = vld [vmem:[#allocation5 + $0xf0] sm:$0xff] }
 0x6a0   : > { %v1763_v62 = vpop.trf.xlu0 }
 0x6a1   : > { %5605 = vmatprep.mubr.msk.f32.mxu0 %vm867_vm1, %v1763_v62  ;;  %v2644_v62 = vld [vmem:[#allocation19 + $0x18] sm:$0xff] }
 0x6a4   : > { %v1764_v3 = vpop.trf.xlu0 }
 0x6a5   : > { %5606 = vmatmul.mubr.msk.f32.vlgmr.msra.gmra.mrb[2].mxu0 %vm867_vm1, %v1764_v3  ;;  %v2645_v3 = vld [vmem:[#allocation19 + $0x20] sm:$0xff] }
 0x6a6   : > { %6264 = vmatpush3.bf16.msra.mxu0 %v6261_v60  ;;  %v6309_v60 = vpack.c.bf16 %v2642_v10, %v2641_v59 }
 0x6a7   : > { %6266 = vmatprep.subr.bf16.mxu0 %v6265_v1 }
 0x6a8   : > { %v1765_v4 = vpop.trf.xlu0 }
 0x6a9   : > { %5612 = vmatprep.mubr.msk.f32.mxu0 %vm867_vm1, %v1765_v4  ;;  %v2646_v4 = vld [vmem:[#allocation19 + $0x28] sm:$0xff] }
 0x6aa   : > { %v6317_v5 = vpack.c.bf16 %v2646_v4, %v2645_v3  ;;  %v3120_v4 = vld [vmem:[#allocation11 + $0xa08] sm:$0xff] }
 0x6ac   : > { %v1766_v7 = vpop.trf.xlu0 }
 0x6ad   : > { %5613 = vmatmul.mubr.msk.f32.vlgmr.msra.gmra.mrb[2].mxu0 %vm867_vm1, %v1766_v7 }
 0x6ae   : > { %6268 = vmatpush3.bf16.msra.mxu0 %v6265_v1  ;;  %v6313_v1 = vpack.c.bf16 %v2644_v62, %v2643_v61  ;;  %v5249_v61 = vld [vmem:[#allocation7 + $0x1] ss:$0 sm:$0xff] }
 0x6af   : > { %6270 = vmatprep.subr.bf16.mxu0 %v6269_v18 }
 0x6b0   : > { %v1767_v8 = vpop.trf.xlu0 }
 0x6b1   : > { %5619 = vmatprep.mubr.msk.f32.mxu0 %vm867_vm1, %v1767_v8  ;;  %v2649_v8 = vld [vmem:[#allocation19 + $0x40] sm:$0xff] }
 0x6b4   : > { %v1768_v9 = vpop.trf.xlu0 }
 0x6b5   : > { %5620 = vmatmul.mubr.msk.f32.vlgmr.msra.gmra.mrb[2].mxu0 %vm867_vm1, %v1768_v9  ;;  %v2650_v9 = vld [vmem:[#allocation19 + $0x48] sm:$0xff] }
 0x6b6   : > { %6272 = vmatpush3.bf16.msra.mxu0 %v6269_v18  ;;  %v2648_v18 = vld [vmem:[#allocation19 + $0x38] sm:$0xff] }
 0x6b7   : > { %v6321_v7 = vpack.c.bf16 %v2648_v18, %v2647_v6  ;;  %v3119_v18 = vld [vmem:[#allocation11 + $0xa00] sm:$0xff] }
 0x6b8   : > { %v1769_v12 = vpop.trf.xlu0 }
 0x6b9   : > { %5626 = vmatprep.mubr.msk.f32.mxu0 %vm867_vm1, %v1769_v12  ;;  %v6325_v12 = vpack.c.bf16 %v2650_v9, %v2649_v8  ;;  %v3124_v8 = vld [vmem:[#allocation11 + $0xa28] sm:$0xff]  ;;  %v3126_v9 = vld [vmem:[#allocation11 + $0xa38] sm:$0xff] }
 0x6bc   : > { %v1770_v13 = vpop.trf.xlu0 }
 0x6bd   : > { %5627 = vmatmul.mubr.msk.f32.vlgmr.msra.gmra.mrb[2].mxu0 %vm867_vm1, %v1770_v13  ;;  %v2651_v13 = vld [vmem:[#allocation19 + $0x50] sm:$0xff] }
 0x6be   : > { %5633 = vmatprep.mubr.msk.f32.mxu0 %vm867_vm1, %v8177_v14 }
 0x760   : > { %v5586_v16 = vpop.f32.mrb[8].mxu1 }
 0x761   : > { %v1938_v17 = vpop.f32.mrb[9].mxu1  ;;  %v6767_v20 = vadd.f32 %v5586_v16, %v5230_v19  ;;  %v2652_v16 = vld [vmem:[#allocation19 + $0x58] sm:$0xff] }
 0x762   : > { %v6769_v21 = vadd.f32 %v5230_v19, %v1938_v17  ;;  %v6329_v17 = vpack.c.bf16 %v2652_v16, %v2651_v13  ;;  %v2653_v19 = vld [vmem:[#allocation19 + $0x60] sm:$0xff]  ;;  %v6387_v16 = vpack.c.bf16 %v3126_v9, %v3124_v8  ;;  %v3160_v8 = vld [vmem:[#allocation11 + $0xb48] sm:$0xff] }
 0x763   : > { %v3162_v9 = vld [vmem:[#allocation11 + $0xb58] sm:$0xff] }
 0x790   : > { %v5628_v23 = vpop.f32.mrb[2].mxu0 }
 0x791   : > { %v6768_v24 = vadd.f32 %v6767_v20, %v5628_v23  ;;  %v2454_v25 = vpop.f32.mrb[3].mxu0  ;;  %v2654_v20 = vld [vmem:[#allocation19 + $0x68] sm:$0xff]  ;;  %v2655_v23 = vld [vmem:[#allocation19 + $0x70] sm:$0xff] }
 0x792   : > { %v6770_v28 = vadd.f32 %v6769_v21, %v2454_v25  ;;  %v6333_v21 = vpack.c.bf16 %v2654_v20, %v2653_v19  ;;  %v3125_v19 = vld [vmem:[#allocation11 + $0xa30] sm:$0xff]  ;;  %v3128_v20 = vld [vmem:[#allocation11 + $0xa48] sm:$0xff] }
 0x793   : > { %v2466_v30 = vadd.f32 %v7004_v29, %v6768_v24  ;;  %v2656_v24 = vld [vmem:[#allocation19 + $0x78] sm:$0xff] }
 0x794   : > { %v2465_v33 = vadd.f32 %v7005_v11, %v6770_v28  ;;  %v6337_v25 = vpack.c.bf16 %v2656_v24, %v2655_v23  ;;  %v7007_v23 = vld [vmem:[#allocation10] sm:$0xf] }
 0x796   : > { %v6273_v34 = vpack.c.bf16 %v2466_v30, %v2465_v33 }
 0x798   : > { %6274 = vmatprep.subr.bf16.mxu0 %v6273_v34 }
 0x799   : > { %6276 = vmatpush3.bf16.msra.mxu0 %v6273_v34  ;;  %v2810_v34 = vld [vmem:[#allocation5 + $0x80] sm:$0xff] }
 0x79a   : > { %6278 = vmatprep.subr.bf16.mxu0 %v6277_v35 }
 0x79c   : > { %5634 = vmatmul.mubr.msk.f32.vlgmr.msra.gmra.mrb[4].mxu0 %vm867_vm1, %v8183_v38 }
 0x79d   : > { %6280 = vmatpush3.bf16.msra.mxu0 %v6277_v35  ;;  %v2811_v35 = vld [vmem:[#allocation5 + $0x88] sm:$0xff] }
 0x79e   : > { %6282 = vmatprep.subr.bf16.mxu0 %v6281_v39 }
 0x7a1   : > { %6284 = vmatpush3.bf16.msra.mxu0 %v6281_v39  ;;  %v6345_v39 = vpack.c.bf16 %v2811_v35, %v2810_v34  ;;  %v3133_v34 = vld [vmem:[#allocation11 + $0xa70] sm:$0xff]  ;;  %v3136_v35 = vld [vmem:[#allocation11 + $0xa88] sm:$0xff] }
 0x7a2   : > { %6286 = vmatprep.subr.bf16.mxu0 %v6285_v42 }
 0x7a5   : > { %6288 = vmatpush3.bf16.msra.mxu0 %v6285_v42  ;;  %v6349_v42 = vpack.c.bf16 %v2813_v41, %v2812_v40  ;;  %v3135_v40 = vld [vmem:[#allocation11 + $0xa80] sm:$0xff]  ;;  %v3137_v41 = vld [vmem:[#allocation11 + $0xa90] sm:$0xff] }
 0x7a6   : > { %6290 = vmatprep.subr.bf16.mxu0 %v6289_v45 }
 0x7a9   : > { %6292 = vmatpush3.bf16.msra.mxu0 %v6289_v45  ;;  %v2816_v45 = vld [vmem:[#allocation5 + $0xb0] sm:$0xff] }
 0x7aa   : > { %6294 = vmatprep.subr.bf16.mxu0 %v6293_v48  ;;  %v6357_v47 = vpack.c.bf16 %v2817_v46, %v2816_v45  ;;  %v3139_v45 = vld [vmem:[#allocation11 + $0xaa0] sm:$0xff]  ;;  %v3141_v46 = vld [vmem:[#allocation11 + $0xab0] sm:$0xff] }
 0x7ad   : > { %6296 = vmatpush3.bf16.msra.mxu0 %v6293_v48  ;;  %v2818_v48 = vld [vmem:[#allocation5 + $0xc0] sm:$0xff] }
 0x7ae   : > { %6298 = vmatprep.subr.bf16.mxu0 %v6297_v51  ;;  %v6361_v50 = vpack.c.bf16 %v2819_v49, %v2818_v48  ;;  %v3146_v48 = vld [vmem:[#allocation11 + $0xad8] sm:$0xff]  ;;  %v6405_v49 = vpack.c.bf16 %v3141_v46, %v3139_v45  ;;  %v3180_v46 = vld [vmem:[#allocation11 + $0xbe8] sm:$0xff] }
 0x7b1   : > { %6300 = vmatpush3.bf16.msra.mxu0 %v6297_v51  ;;  %v2820_v51 = vld [vmem:[#allocation5 + $0xd0] sm:$0xff] }
 0x7b2   : > { %6302 = vmatprep.subr.bf16.mxu0 %v6301_v55  ;;  %v6365_v54 = vpack.c.bf16 %v2821_v53, %v2820_v51  ;;  %v3143_v51 = vld [vmem:[#allocation11 + $0xac0] sm:$0xff]  ;;  %v3145_v53 = vld [vmem:[#allocation11 + $0xad0] sm:$0xff] }
 0x7b5   : > { %6304 = vmatpush3.bf16.msra.mxu0 %v6301_v55  ;;  %v2822_v55 = vld [vmem:[#allocation5 + $0xe0] sm:$0xff] }
 0x7b6   : > { %6306 = vmatprep.subr.bf16.mxu0 %v6305_v58 }
 0x7b9   : > { %6308 = vmatpush3.bf16.msra.mxu0 %v6305_v58  ;;  %v2825_v58 = vld [vmem:[#allocation5 + $0xf8] sm:$0xff] }
 0x7ba   : > { %6310 = vmatprep.subr.bf16.mxu0 %v6309_v60  ;;  %v6373_v59 = vpack.c.bf16 %v2825_v58, %v2824_v57  ;;  %v3147_v57 = vld [vmem:[#allocation11 + $0xae0] sm:$0xff]  ;;  %v3149_v58 = vld [vmem:[#allocation11 + $0xaf0] sm:$0xff] }
 0x86f   : > { %v5635_v63 = vpop.f32.mrb[4].mxu0 }
 0x870   : > { %v2539_v0 = vpop.f32.mrb[5].mxu0 }
 0x871   : > { %5668 = vmatprep.mubr.f32.mxu0 %v2539_v0 }
 0x872   : > { %5669 = vmatmul.mubr.f32.vlgmr.msra.gmra.mrb[6].mxu0 %v5635_v63 }
 0x873   : > { %6312 = vmatpush3.bf16.msra.mxu0 %v6309_v60 }
 0x874   : > { %6314 = vmatprep.subr.bf16.mxu0 %v6313_v1 }
 0x877   : > { %6316 = vmatpush3.bf16.msra.mxu0 %v6313_v1 }
 0x878   : > { %6318 = vmatprep.subr.bf16.mxu0 %v6317_v5 }
 0x87b   : > { %6320 = vmatpush3.bf16.msra.mxu0 %v6317_v5  ;;  %v3122_v5 = vld [vmem:[#allocation11 + $0xa18] sm:$0xff] }
 0x87c   : > { %6322 = vmatprep.subr.bf16.mxu0 %v6321_v7  ;;  %v6383_v6 = vpack.c.bf16 %v3122_v5, %v3120_v4  ;;  %v3158_v4 = vld [vmem:[#allocation11 + $0xb38] sm:$0xff] }
 0x87f   : > { %6324 = vmatpush3.bf16.msra.mxu0 %v6321_v7  ;;  %v3121_v7 = vld [vmem:[#allocation11 + $0xa10] sm:$0xff] }
 0x880   : > { %6326 = vmatprep.subr.bf16.mxu0 %v6325_v12  ;;  %v6385_v13 = vpack.c.bf16 %v3121_v7, %v3119_v18  ;;  %v3155_v18 = vld [vmem:[#allocation11 + $0xb20] sm:$0xff]  ;;  %v3157_v7 = vld [vmem:[#allocation11 + $0xb30] sm:$0xff] }
 0x883   : > { %6328 = vmatpush3.bf16.msra.mxu0 %v6325_v12  ;;  %v7006_v12 = vld [vmem:[#allocation8] sm:$0xf] }
 0x884   : > { %6330 = vmatprep.subr.bf16.mxu0 %v6329_v17 }
 0x887   : > { %6332 = vmatpush3.bf16.msra.mxu0 %v6329_v17  ;;  %v3123_v17 = vld [vmem:[#allocation11 + $0xa20] sm:$0xff] }
 0x888   : > { %6334 = vmatprep.subr.bf16.mxu0 %v6333_v21  ;;  %v6389_v24 = vpack.c.bf16 %v3125_v19, %v3123_v17  ;;  %v3161_v17 = vld [vmem:[#allocation11 + $0xb50] sm:$0xff]  ;;  %v3164_v19 = vld [vmem:[#allocation11 + $0xb68] sm:$0xff] }
 0x88b   : > { %6336 = vmatpush3.bf16.msra.mxu0 %v6333_v21  ;;  %v3130_v21 = vld [vmem:[#allocation11 + $0xa58] sm:$0xff] }
 0x88c   : > { %6338 = vmatprep.subr.bf16.mxu0 %v6337_v25 }
 0x88f   : > { %6340 = vmatpush3.bf16.msra.mxu0 %v6337_v25  ;;  %v6391_v25 = vpack.c.bf16 %v3130_v21, %v3128_v20  ;;  %v3166_v20 = vld [vmem:[#allocation11 + $0xb78] sm:$0xff] }
 0x945   : > { %v5670_v28 = vpop.f32.mrb[6].mxu0 }
 0x946   : > { %v2630_v29 = vpop.f32.mrb[7].mxu0  ;;  %v2640_v31 = vmax.f32 %v5670_v28, 0.0  ;;  %v3127_v28 = vld [vmem:[#allocation11 + $0xa40] sm:$0xff] }
 0x947   : > { %v2639_v30 = vmax.f32 %v2630_v29, 0.0  ;;  %v3129_v29 = vld [vmem:[#allocation11 + $0xa50] sm:$0xff] }
 0x949   : > { %5703 = vmatprep.mubr.f32.mxu0 %v2639_v30  ;;  %v3132_v30 = vld [vmem:[#allocation11 + $0xa68] sm:$0xff] }
 0x94a   : > { %5704 = vmatmul.mubr.f32.vlgmr.msra.gmra.mrb[8].mxu0 %v2640_v31  ;;  %v3134_v31 = vld [vmem:[#allocation11 + $0xa78] sm:$0xff] }
 0x94b   : > { %5710 = vmatprep.mubr.msk.f32.mxu0 %vm867_vm1, %v8177_v14  ;;  %v6353_v14 = vpack.c.bf16 %v2815_v44, %v2814_v43  ;;  %v3142_v43 = vld [vmem:[#allocation11 + $0xab8] sm:$0xff]  ;;  %v6401_v44 = vpack.c.bf16 %v3137_v41, %v3135_v40  ;;  %v3176_v40 = vld [vmem:[#allocation11 + $0xbc8] sm:$0xff] }
 0x94c   : > { %v3178_v41 = vld [vmem:[#allocation11 + $0xbd8] sm:$0xff] }
 0xa1d   : > { %v5705_v32 = vpop.f32.mrb[8].mxu0 }
 0xa1e   : > { %v2733_v11 = vadd.f32 %v5705_v32, %v5635_v63  ;;  %v2723_v33 = vpop.f32.mrb[9].mxu0  ;;  %v6393_v32 = vpack.c.bf16 %v3129_v29, %v3127_v28  ;;  %v3168_v28 = vld [vmem:[#allocation11 + $0xb88] sm:$0xff]  ;;  %v3170_v29 = vld [vmem:[#allocation11 + $0xb98] sm:$0xff] }
 0xa1f   : > { %v2732_v36 = vadd.f32 %v2723_v33, %v2539_v0  ;;  %v3131_v33 = vld [vmem:[#allocation11 + $0xa60] sm:$0xff] }
 0xa21   : > { %v6341_v37 = vpack.c.bf16 %v2733_v11, %v2732_v36  ;;  %v6395_v11 = vpack.c.bf16 %v3134_v31, %v3132_v30  ;;  %v3138_v36 = vld [vmem:[#allocation11 + $0xa98] sm:$0xff]  ;;  %v6431_v31 = vpack.c.bf16 %v3170_v29, %v3168_v28 }
 0xa23   : > { %6342 = vmatprep.subr.bf16.mxu0 %v6341_v37 }
 0xa24   : > { %6344 = vmatpush3.bf16.msra.mxu0 %v6341_v37  ;;  %v6397_v37 = vpack.c.bf16 %v3133_v34, %v3131_v33  ;;  %v3172_v33 = vld [vmem:[#allocation11 + $0xba8] sm:$0xff]  ;;  %v3174_v34 = vld [vmem:[#allocation11 + $0xbb8] sm:$0xff] }
 0xa25   : > { %6346 = vmatprep.subr.bf16.mxu0 %v6345_v39 }
 0xa27   : > { %5711 = vmatmul.mubr.msk.f32.vlgmr.msra.gmra.mrb[10].mxu0 %vm867_vm1, %v8183_v38  ;;  %v2823_v38 = vld [vmem:[#allocation5 + $0xe8] sm:$0xff] }
 0xa28   : > { %6348 = vmatpush3.bf16.msra.mxu0 %v6345_v39  ;;  %v6369_v56 = vpack.c.bf16 %v2823_v38, %v2822_v55  ;;  %v6399_v39 = vpack.c.bf16 %v3138_v36, %v3136_v35  ;;  %v3150_v55 = vld [vmem:[#allocation11 + $0xaf8] sm:$0xff]  ;;  %v6409_v38 = vpack.c.bf16 %v3145_v53, %v3143_v51  ;;  %v6435_v36 = vpack.c.bf16 %v3174_v34, %v3172_v33  ;;  %v3053_v53 = vld [vmem:[#allocation11 + $0x808] sm:$0xff] }
 0xa29   : > { %6350 = vmatprep.subr.bf16.mxu0 %v6349_v42 }
 0xa2c   : > { %6352 = vmatpush3.bf16.msra.mxu0 %v6349_v42  ;;  %v3140_v42 = vld [vmem:[#allocation11 + $0xaa8] sm:$0xff] }
 0xa2d   : > { %6354 = vmatprep.subr.bf16.mxu0 %v6353_v14 }
 0xa30   : > { %6356 = vmatpush3.bf16.msra.mxu0 %v6353_v14  ;;  %v6403_v14 = vpack.c.bf16 %v3142_v43, %v3140_v42  ;;  %v6439_v43 = vpack.c.bf16 %v3178_v41, %v3176_v40 }
 0xa31   : > { %6358 = vmatprep.subr.bf16.mxu0 %v6357_v47 }
 0xa34   : > { %6360 = vmatpush3.bf16.msra.mxu0 %v6357_v47  ;;  %v3144_v47 = vld [vmem:[#allocation11 + $0xac8] sm:$0xff] }
 0xa35   : > { %6362 = vmatprep.subr.bf16.mxu0 %v6361_v50 }
 0xa38   : > { %6364 = vmatpush3.bf16.msra.mxu0 %v6361_v50  ;;  %v6407_v50 = vpack.c.bf16 %v3146_v48, %v3144_v47  ;;  %v3182_v47 = vld [vmem:[#allocation11 + $0xbf8] sm:$0xff] }
 0xa39   : > { %6366 = vmatprep.subr.bf16.mxu0 %v6365_v54  ;;  %v6443_v48 = vpack.c.bf16 %v3182_v47, %v3180_v46  ;;  %v3080_v47 = vld [vmem:[#allocation11 + $0x8e0] sm:$0xff] }
 0xa3c   : > { %6368 = vmatpush3.bf16.msra.mxu0 %v6365_v54  ;;  %v3148_v54 = vld [vmem:[#allocation11 + $0xae8] sm:$0xff] }
 0xa3d   : > { %6370 = vmatprep.subr.bf16.mxu0 %v6369_v56 }
 0xa40   : > { %6372 = vmatpush3.bf16.msra.mxu0 %v6369_v56  ;;  %v6411_v56 = vpack.c.bf16 %v3150_v55, %v3148_v54  ;;  %v3055_v54 = vld [vmem:[#allocation11 + $0x818] sm:$0xff] }
 0xa41   : > { %6374 = vmatprep.subr.bf16.mxu0 %v6373_v59  ;;  %v6447_v55 = vpack.c.bf16 %v3055_v54, %v3053_v53  ;;  %v3084_v54 = vld [vmem:[#allocation11 + $0x900] sm:$0xff] }
 0xa44   : > { %6376 = vmatpush3.bf16.msra.mxu0 %v6373_v59  ;;  %v3152_v59 = vld [vmem:[#allocation11 + $0xb08] sm:$0xff] }
 0xa45   : > { %6377 = vmatprep.subr.bf16.mxu0 %v7522_v26 }
 0xafa   : > { %v8192_v10 = vpop.f32.mrb[10].mxu0 }
 0xafb   : > { %v8194_v60 = vpop.f32.mrb[11].mxu0 }
 0xafc   : > { %5745 = vmatprep.mubr.f32.mxu0 %v8194_v60 }
 0xafd   : > { %5746 = vmatmul.mubr.f32.vlgmr.msra.gmra.mrb[12].mxu0 %v8192_v10 }
 0xafe   : > { %5752 = vmatprep.mubr.msk.f32.mxu0 %vm7523_vm0, %v7524_v27 }
 0xbd0   : > { %v5747_v62 = vpop.f32.mrb[12].mxu0 }
 0xbd1   : > { %v2906_v63 = vadd.f32 %v5747_v62, %v5249_v61  ;;  %v2900_v0 = vpop.f32.mrb[13].mxu0  ;;  %v6413_v62 = vpack.c.bf16 %v3149_v58, %v3147_v57  ;;  %v3052_v57 = vld [vmem:[#allocation11 + $0x800] sm:$0xff]  ;;  %v3054_v58 = vld [vmem:[#allocation11 + $0x810] sm:$0xff] }
 0xbd2   : > { %v2901_v1 = vadd.f32 %v5249_v61, %v2900_v0  ;;  %v3154_v61 = vld [vmem:[#allocation11 + $0xb18] sm:$0xff]  ;;  %v3151_v0 = vld [vmem:[#allocation11 + $0xb00] sm:$0xff] }
 0xbd4   : > { %v6378_v3 = vpack.c.bf16 %v2906_v63, %v2901_v1  ;;  %v6415_v63 = vpack.c.bf16 %v3154_v61, %v3152_v59  ;;  %v3153_v1 = vld [vmem:[#allocation11 + $0xb10] sm:$0xff]  ;;  %v3057_v59 = vld [vmem:[#allocation11 + $0x828] sm:$0xff]  ;;  %v3059_v61 = vld [vmem:[#allocation11 + $0x838] sm:$0xff] }
 0xbd5   : > { %v6417_v5 = vpack.c.bf16 %v3153_v1, %v3151_v0  ;;  %v6449_v1 = vpack.c.bf16 %v3054_v58, %v3052_v57  ;;  %v3091_v57 = vld [vmem:[#allocation11 + $0x938] sm:$0xff] }
 0xbd6   : > { %6379 = vmatpush3.bf16.msra.mxu0 %v6378_v3 }
 0xbd7   : > { %6380 = vmatprep.subr.bf16.mxu0 %v7522_v26 }
 0xbd9   : > { %5753 = vmatmul.mubr.msk.f32.vlgmr.msra.gmra.mrb[14].mxu0 %vm867_vm1, %v7006_v12  ;;  %v6421_v12 = vpack.c.bf16 %v3157_v7, %v3155_v18  ;;  %v3061_v7 = vld [vmem:[#allocation11 + $0x848] sm:$0xff] }
 0xbda   : > { %6382 = vmatpush3.bf16.msra.mxu0 %v6378_v3  ;;  %5759 = vmatprep.mubr.msk.f32.mxu0 %vm7523_vm0, %v7524_v27  ;;  %v3156_v3 = vld [vmem:[#allocation11 + $0xb28] sm:$0xff] }
 0xbdb   : > { %6384 = vmatprep.subr.bf16.mxu0 %v6383_v6  ;;  %v6419_v6 = vpack.c.bf16 %v3158_v4, %v3156_v3  ;;  %v6451_v4 = vpack.c.bf16 %v3059_v61, %v3057_v59  ;;  %v3088_v61 = vld [vmem:[#allocation11 + $0x920] sm:$0xff] }
 0xbdd   : > { %5760 = vmatmul.mubr.msk.f32.vlgmr.msra.gmra.mrb[16].mxu0 %vm867_vm1, %v7007_v23  ;;  %v6427_v23 = vpack.c.bf16 %v3166_v20, %v3164_v19  ;;  %v3067_v19 = vld [vmem:[#allocation11 + $0x878] sm:$0xff] }
 0xbde   : > { %6386 = vmatpush1.bf16.msra.mxu0 %v6385_v13  ;;  %v6423_v13 = vpack.c.bf16 %v3162_v9, %v3160_v8  ;;  %v3063_v8 = vld [vmem:[#allocation11 + $0x858] sm:$0xff] }
 0xbdf   : > { %6388 = vmatprep.subr.bf16.mxu0 %v6387_v16  ;;  %v3159_v16 = vld [vmem:[#allocation11 + $0xb40] sm:$0xff] }
 0xbe0   : > { %v6425_v21 = vpack.c.bf16 %v3161_v17, %v3159_v16  ;;  %v3062_v16 = vld [vmem:[#allocation11 + $0x850] sm:$0xff]  ;;  %v3065_v17 = vld [vmem:[#allocation11 + $0x868] sm:$0xff] }
 0xbe1   : > { %v6459_v20 = vpack.c.bf16 %v3067_v19, %v3065_v17  ;;  %v3103_v17 = vld [vmem:[#allocation11 + $0x998] sm:$0xff] }
 0xbe2   : > { %6390 = vmatpush1.bf16.msra.mxu0 %v6389_v24  ;;  %v3163_v24 = vld [vmem:[#allocation11 + $0xb60] sm:$0xff] }
 0xbe3   : > { %6392 = vmatprep.subr.bf16.mxu0 %v6391_v25  ;;  %v3165_v25 = vld [vmem:[#allocation11 + $0xb70] sm:$0xff] }
 0xbe4   : > { %v6429_v30 = vpack.c.bf16 %v3165_v25, %v3163_v24  ;;  %v3069_v24 = vld [vmem:[#allocation11 + $0x888] sm:$0xff]  ;;  %v3071_v25 = vld [vmem:[#allocation11 + $0x898] sm:$0xff] }
 0xbe5   : > { %v6463_v29 = vpack.c.bf16 %v3071_v25, %v3069_v24  ;;  %v3107_v24 = vld [vmem:[#allocation11 + $0x9b8] sm:$0xff] }
 0xbe6   : > { %6394 = vmatpush1.bf16.msra.mxu0 %v6393_v32  ;;  %v3167_v32 = vld [vmem:[#allocation11 + $0xb80] sm:$0xff] }
 0xbe7   : > { %6396 = vmatprep.subr.bf16.mxu0 %v6395_v11  ;;  %v3169_v11 = vld [vmem:[#allocation11 + $0xb90] sm:$0xff] }
 0xbe8   : > { %v6433_v35 = vpack.c.bf16 %v3169_v11, %v3167_v32  ;;  %v3073_v32 = vld [vmem:[#allocation11 + $0x8a8] sm:$0xff]  ;;  %v3075_v11 = vld [vmem:[#allocation11 + $0x8b8] sm:$0xff] }
 0xbe9   : > { %v6467_v34 = vpack.c.bf16 %v3075_v11, %v3073_v32  ;;  %v3111_v32 = vld [vmem:[#allocation11 + $0x9d8] sm:$0xff] }
 0xbea   : > { %6398 = vmatpush1.bf16.msra.mxu0 %v6397_v37  ;;  %v3171_v37 = vld [vmem:[#allocation11 + $0xba0] sm:$0xff] }
 0xbeb   : > { %6400 = vmatprep.subr.bf16.mxu0 %v6399_v39  ;;  %v3173_v39 = vld [vmem:[#allocation11 + $0xbb0] sm:$0xff] }
 0xbec   : > { %v6437_v42 = vpack.c.bf16 %v3173_v39, %v3171_v37  ;;  %v3077_v37 = vld [vmem:[#allocation11 + $0x8c8] sm:$0xff]  ;;  %v3079_v39 = vld [vmem:[#allocation11 + $0x8d8] sm:$0xff] }
 0xbed   : > { %v6471_v41 = vpack.c.bf16 %v3079_v39, %v3077_v37  ;;  %v3115_v37 = vld [vmem:[#allocation11 + $0x9f8] sm:$0xff] }
 0xbee   : > { %6402 = vmatpush1.bf16.msra.mxu0 %v6401_v44  ;;  %v3175_v44 = vld [vmem:[#allocation11 + $0xbc0] sm:$0xff] }
 0xbef   : > { %6404 = vmatprep.subr.bf16.mxu0 %v6403_v14  ;;  %v3177_v14 = vld [vmem:[#allocation11 + $0xbd0] sm:$0xff] }
 0xbf0   : > { %v6441_v45 = vpack.c.bf16 %v3177_v14, %v3175_v44  ;;  %v3081_v44 = vld [vmem:[#allocation11 + $0x8e8] sm:$0xff]  ;;  %v3083_v14 = vld [vmem:[#allocation11 + $0x8f8] sm:$0xff] }
 0xbf1   : > { %v6475_v46 = vpack.c.bf16 %v3083_v14, %v3081_v44  ;;  %v3331_v44 = vld [vmem:[#allocation11 + $0xc18] sm:$0xff] }
 0xbf2   : > { %6406 = vmatpush1.bf16.msra.mxu0 %v6405_v49  ;;  %v3179_v49 = vld [vmem:[#allocation11 + $0xbe0] sm:$0xff] }
 0xbf3   : > { %6408 = vmatprep.subr.bf16.mxu0 %v6407_v50  ;;  %v3181_v50 = vld [vmem:[#allocation11 + $0xbf0] sm:$0xff] }
 0xbf4   : > { %v6445_v51 = vpack.c.bf16 %v3181_v50, %v3179_v49  ;;  %v3085_v49 = vld [vmem:[#allocation11 + $0x908] sm:$0xff]  ;;  %v3087_v50 = vld [vmem:[#allocation11 + $0x918] sm:$0xff] }
 0xbf5   : > { %v6479_v53 = vpack.c.bf16 %v3087_v50, %v3085_v49  ;;  %v3335_v49 = vld [vmem:[#allocation11 + $0xc38] sm:$0xff] }
 0xbf6   : > { %6410 = vmatpush1.bf16.msra.mxu0 %v6409_v38 }
 0xbf7   : > { %6412 = vmatprep.subr.bf16.mxu0 %v6411_v56 }
 0xbfa   : > { %6414 = vmatpush1.bf16.msra.mxu0 %v6413_v62 }
 0xbfb   : > { %6416 = vmatprep.subr.bf16.mxu0 %v6415_v63 }
 0xbfe   : > { %6418 = vmatpush1.bf16.msra.mxu0 %v6417_v5  ;;  %v3056_v5 = vld [vmem:[#allocation11 + $0x820] sm:$0xff] }
 0xbff   : > { %6420 = vmatprep.subr.bf16.mxu0 %v6419_v6  ;;  %v3058_v6 = vld [vmem:[#allocation11 + $0x830] sm:$0xff] }
 0xc00   : > { %v6453_v9 = vpack.c.bf16 %v3058_v6, %v3056_v5  ;;  %v3092_v5 = vld [vmem:[#allocation11 + $0x940] sm:$0xff]  ;;  %v3094_v6 = vld [vmem:[#allocation11 + $0x950] sm:$0xff] }
 0xc02   : > { %6422 = vmatpush1.bf16.msra.mxu0 %v6421_v12  ;;  %v6455_v12 = vpack.c.bf16 %v3063_v8, %v3061_v7  ;;  %v3099_v7 = vld [vmem:[#allocation11 + $0x978] sm:$0xff]  ;;  %v6489_v8 = vpack.c.bf16 %v3094_v6, %v3092_v5  ;;  %v3340_v5 = vld [vmem:[#allocation11 + $0xc60] sm:$0xff]  ;;  %v3342_v6 = vld [vmem:[#allocation11 + $0xc70] sm:$0xff] }
 0xc03   : > { %6424 = vmatprep.subr.bf16.mxu0 %v6423_v13  ;;  %v3060_v13 = vld [vmem:[#allocation11 + $0x840] sm:$0xff] }
 0xc06   : > { %6426 = vmatpush1.bf16.msra.mxu0 %v6425_v21  ;;  %v3064_v21 = vld [vmem:[#allocation11 + $0x860] sm:$0xff] }
 0xc07   : > { %6428 = vmatprep.subr.bf16.mxu0 %v6427_v23  ;;  %v3066_v23 = vld [vmem:[#allocation11 + $0x870] sm:$0xff] }
 0xc08   : > { %v6461_v28 = vpack.c.bf16 %v3066_v23, %v3064_v21  ;;  %v3102_v21 = vld [vmem:[#allocation11 + $0x990] sm:$0xff]  ;;  %v3105_v23 = vld [vmem:[#allocation11 + $0x9a8] sm:$0xff] }
 0xc0a   : > { %6430 = vmatpush1.bf16.msra.mxu0 %v6429_v30  ;;  %v3068_v30 = vld [vmem:[#allocation11 + $0x880] sm:$0xff] }
 0xc0b   : > { %6432 = vmatprep.subr.bf16.mxu0 %v6431_v31  ;;  %v3070_v31 = vld [vmem:[#allocation11 + $0x890] sm:$0xff] }
 0xc0c   : > { %v6465_v33 = vpack.c.bf16 %v3070_v31, %v3068_v30  ;;  %v3106_v30 = vld [vmem:[#allocation11 + $0x9b0] sm:$0xff]  ;;  %v3109_v31 = vld [vmem:[#allocation11 + $0x9c8] sm:$0xff] }
 0xc0e   : > { %6434 = vmatpush1.bf16.msra.mxu0 %v6433_v35  ;;  %v3072_v35 = vld [vmem:[#allocation11 + $0x8a0] sm:$0xff] }
 0xc0f   : > { %6436 = vmatprep.subr.bf16.mxu0 %v6435_v36  ;;  %v3074_v36 = vld [vmem:[#allocation11 + $0x8b0] sm:$0xff] }
 0xc10   : > { %v6469_v40 = vpack.c.bf16 %v3074_v36, %v3072_v35  ;;  %v3110_v35 = vld [vmem:[#allocation11 + $0x9d0] sm:$0xff]  ;;  %v3113_v36 = vld [vmem:[#allocation11 + $0x9e8] sm:$0xff] }
 0xc12   : > { %6438 = vmatpush1.bf16.msra.mxu0 %v6437_v42  ;;  %v3076_v42 = vld [vmem:[#allocation11 + $0x8c0] sm:$0xff] }
 0xc13   : > { %6440 = vmatprep.subr.bf16.mxu0 %v6439_v43  ;;  %v3078_v43 = vld [vmem:[#allocation11 + $0x8d0] sm:$0xff] }
 0xc16   : > { %6442 = vmatpush1.bf16.msra.mxu0 %v6441_v45  ;;  %v6473_v45 = vpack.c.bf16 %v3078_v43, %v3076_v42  ;;  %v3114_v42 = vld [vmem:[#allocation11 + $0x9f0] sm:$0xff]  ;;  %v3329_v43 = vld [vmem:[#allocation11 + $0xc08] sm:$0xff] }
 0xc17   : > { %6444 = vmatprep.subr.bf16.mxu0 %v6443_v48  ;;  %v3082_v48 = vld [vmem:[#allocation11 + $0x8f0] sm:$0xff] }
 0xc1a   : > { %6446 = vmatpush1.bf16.msra.mxu0 %v6445_v51  ;;  %v6477_v51 = vpack.c.bf16 %v3082_v48, %v3080_v47  ;;  %v3330_v47 = vld [vmem:[#allocation11 + $0xc10] sm:$0xff]  ;;  %v3333_v48 = vld [vmem:[#allocation11 + $0xc28] sm:$0xff] }
 0xc1b   : > { %6448 = vmatprep.subr.bf16.mxu0 %v6447_v55  ;;  %v3086_v55 = vld [vmem:[#allocation11 + $0x910] sm:$0xff] }
 0xc1c   : > { %v6481_v58 = vpack.c.bf16 %v3086_v55, %v3084_v54  ;;  %v3332_v54 = vld [vmem:[#allocation11 + $0xc20] sm:$0xff]  ;;  %v3334_v55 = vld [vmem:[#allocation11 + $0xc30] sm:$0xff] }
 0xcac   : > { %v8205_v38 = vpop.f32.mrb[14].mxu0 }
 0xcad   : > { %v5754_v56 = vpop.f32.mrb[15].mxu0  ;;  %v3116_v3 = vmul.f32 %v8109_v15, %v8205_v38 }
 0xcae   : > { %v3089_v56 = vld [vmem:[#allocation11 + $0x928] sm:$0xff] }
 0xcaf   : > { %v6483_v59 = vpack.c.bf16 %v3091_v57, %v3089_v56  ;;  %v3337_v57 = vld [vmem:[#allocation11 + $0xc48] sm:$0xff] }
 0xcb0   : > { %v8207_v62 = vpop.f32.mrb[16].mxu0 }
 0xcb1   : > { %v5761_v63 = vpop.f32.mrb[17].mxu0  ;;  %v3117_v0 = vmul.f32 %v8109_v15, %v8207_v62  ;;  %v3050_v18 = vmul.f32 %v8116_v22, %v8207_v62  ;;  %v6457_v15 = vpack.c.bf16 %v3062_v16, %v3060_v13  ;;  %v3098_v13 = vld [vmem:[#allocation11 + $0x970] sm:$0xff]  ;;  %v3101_v16 = vld [vmem:[#allocation11 + $0x988] sm:$0xff]  ;;  %v3326_v56 = vmul.f32 %v8124_v2, %v8207_v62 }
 0xcb2   : > { %v3090_v63 = vld [vmem:[#allocation11 + $0x930] sm:$0xff] }
 0xcb3   : > { %3247 = vmatprep.mubr.f32.mxu0 %v3117_v0  ;;  %v3093_v0 = vld [vmem:[#allocation11 + $0x948] sm:$0xff] }
 0xcb4   : > { %3248 = vmatmul.mubr.f32.vlgmr.msra.gmra.mrb[18].mxu0 %v3116_v3  ;;  %v6485_v3 = vpack.c.bf16 %v3090_v63, %v3088_v61  ;;  %v3336_v63 = vld [vmem:[#allocation11 + $0xc40] sm:$0xff] }
 0xcb5   : > { %6450 = vmatpush1.bf16.msra.mxu0 %v6449_v1  ;;  %3318 = vmatprep.mubr.f32.mxu0 %v3050_v18  ;;  %v3095_v1 = vld [vmem:[#allocation11 + $0x958] sm:$0xff]  ;;  %v3097_v18 = vld [vmem:[#allocation11 + $0x968] sm:$0xff] }
 0xcb6   : > { %6452 = vmatprep.subr.bf16.mxu0 %v6451_v4  ;;  %v6487_v4 = vpack.c.bf16 %v3095_v1, %v3093_v0  ;;  %v3338_v0 = vld [vmem:[#allocation11 + $0xc50] sm:$0xff]  ;;  %v3341_v1 = vld [vmem:[#allocation11 + $0xc68] sm:$0xff] }
 0xcb9   : > { %6454 = vmatpush1.bf16.msra.mxu0 %v6453_v9  ;;  %v6491_v9 = vpack.c.bf16 %v3099_v7, %v3097_v18  ;;  %v3345_v18 = vld [vmem:[#allocation11 + $0xc88] sm:$0xff]  ;;  %v3347_v7 = vld [vmem:[#allocation11 + $0xc98] sm:$0xff] }
 0xcba   : > { %6456 = vmatprep.subr.bf16.mxu0 %v6455_v12  ;;  %v3096_v12 = vld [vmem:[#allocation11 + $0x960] sm:$0xff] }
 0xcbb   : > { %v6493_v19 = vpack.c.bf16 %v3098_v13, %v3096_v12  ;;  %v3344_v12 = vld [vmem:[#allocation11 + $0xc80] sm:$0xff]  ;;  %v3346_v13 = vld [vmem:[#allocation11 + $0xc90] sm:$0xff] }
 0xcbd   : > { %6458 = vmatpush1.bf16.msra.mxu0 %v6457_v15  ;;  %v6495_v15 = vpack.c.bf16 %v3103_v17, %v3101_v16  ;;  %v3349_v16 = vld [vmem:[#allocation11 + $0xca8] sm:$0xff]  ;;  %v3351_v17 = vld [vmem:[#allocation11 + $0xcb8] sm:$0xff] }
 0xcbe   : > { %6460 = vmatprep.subr.bf16.mxu0 %v6459_v20  ;;  %v3100_v20 = vld [vmem:[#allocation11 + $0x980] sm:$0xff] }
 0xcbf   : > { %v6497_v25 = vpack.c.bf16 %v3102_v21, %v3100_v20  ;;  %v3348_v20 = vld [vmem:[#allocation11 + $0xca0] sm:$0xff]  ;;  %v3350_v21 = vld [vmem:[#allocation11 + $0xcb0] sm:$0xff] }
 0xcc1   : > { %6462 = vmatpush1.bf16.msra.mxu0 %v6461_v28  ;;  %v6499_v28 = vpack.c.bf16 %v3107_v24, %v3105_v23  ;;  %v3353_v23 = vld [vmem:[#allocation11 + $0xcc8] sm:$0xff]  ;;  %v3355_v24 = vld [vmem:[#allocation11 + $0xcd8] sm:$0xff] }
 0xcc2   : > { %6464 = vmatprep.subr.bf16.mxu0 %v6463_v29  ;;  %v3104_v29 = vld [vmem:[#allocation11 + $0x9a0] sm:$0xff] }
 0xcc3   : > { %v6501_v11 = vpack.c.bf16 %v3106_v30, %v3104_v29  ;;  %v3352_v29 = vld [vmem:[#allocation11 + $0xcc0] sm:$0xff]  ;;  %v3354_v30 = vld [vmem:[#allocation11 + $0xcd0] sm:$0xff] }
 0xcc5   : > { %6466 = vmatpush1.bf16.msra.mxu0 %v6465_v33  ;;  %v6503_v33 = vpack.c.bf16 %v3111_v32, %v3109_v31  ;;  %v3357_v31 = vld [vmem:[#allocation11 + $0xce8] sm:$0xff]  ;;  %v3359_v32 = vld [vmem:[#allocation11 + $0xcf8] sm:$0xff] }
 0xcc6   : > { %6468 = vmatprep.subr.bf16.mxu0 %v6467_v34  ;;  %v3108_v34 = vld [vmem:[#allocation11 + $0x9c0] sm:$0xff] }
 0xcc7   : > { %v6505_v39 = vpack.c.bf16 %v3110_v35, %v3108_v34  ;;  %v3356_v34 = vld [vmem:[#allocation11 + $0xce0] sm:$0xff]  ;;  %v3358_v35 = vld [vmem:[#allocation11 + $0xcf0] sm:$0xff] }
 0xcc9   : > { %6470 = vmatpush1.bf16.msra.mxu0 %v6469_v40  ;;  %v6507_v40 = vpack.c.bf16 %v3115_v37, %v3113_v36  ;;  %v3361_v36 = vld [vmem:[#allocation11 + $0xd08] sm:$0xff]  ;;  %v3363_v37 = vld [vmem:[#allocation11 + $0xd18] sm:$0xff] }
 0xcca   : > { %6472 = vmatprep.subr.bf16.mxu0 %v6471_v41  ;;  %v3112_v41 = vld [vmem:[#allocation11 + $0x9e0] sm:$0xff] }
 0xccb   : > { %v6509_v14 = vpack.c.bf16 %v3114_v42, %v3112_v41  ;;  %v3360_v41 = vld [vmem:[#allocation11 + $0xd00] sm:$0xff]  ;;  %v3362_v42 = vld [vmem:[#allocation11 + $0xd10] sm:$0xff] }
 0xccd   : > { %6474 = vmatpush1.bf16.msra.mxu0 %v6473_v45  ;;  %v6511_v45 = vpack.c.bf16 %v3331_v44, %v3329_v43  ;;  %v3365_v43 = vld [vmem:[#allocation11 + $0xd28] sm:$0xff]  ;;  %v3367_v44 = vld [vmem:[#allocation11 + $0xd38] sm:$0xff] }
 0xcce   : > { %6476 = vmatprep.subr.bf16.mxu0 %v6475_v46  ;;  %v3328_v46 = vld [vmem:[#allocation11 + $0xc00] sm:$0xff] }
 0xccf   : > { %v6513_v50 = vpack.c.bf16 %v3330_v47, %v3328_v46  ;;  %v3364_v46 = vld [vmem:[#allocation11 + $0xd20] sm:$0xff]  ;;  %v3366_v47 = vld [vmem:[#allocation11 + $0xd30] sm:$0xff] }
 0xcd1   : > { %6478 = vmatpush1.bf16.msra.mxu0 %v6477_v51  ;;  %v3049_v51 = vmul.f32 %v8116_v22, %v8205_v38  ;;  %v6521_v22 = vpack.c.bf16 %v3338_v0, %v3336_v63  ;;  %v3377_v63 = vld [vmem:[#allocation11 + $0xd88] sm:$0xff]  ;;  %v3379_v0 = vld [vmem:[#allocation11 + $0xd98] sm:$0xff] }
 0xcd2   : > { %6480 = vmatprep.subr.bf16.mxu0 %v6479_v53  ;;  %v6515_v53 = vpack.c.bf16 %v3335_v49, %v3333_v48  ;;  %v3369_v48 = vld [vmem:[#allocation11 + $0xd48] sm:$0xff]  ;;  %v3371_v49 = vld [vmem:[#allocation11 + $0xd58] sm:$0xff] }
 0xcd5   : > { %6482 = vmatpush1.bf16.msra.mxu0 %v6481_v58  ;;  %v3339_v58 = vld [vmem:[#allocation11 + $0xc58] sm:$0xff] }
 0xcd6   : > { %6484 = vmatprep.subr.bf16.mxu0 %v6483_v59  ;;  %v6517_v59 = vpack.c.bf16 %v3334_v55, %v3332_v54  ;;  %v6519_v61 = vpack.c.bf16 %v3339_v58, %v3337_v57  ;;  %v3370_v54 = vld [vmem:[#allocation11 + $0xd50] sm:$0xff]  ;;  %v3373_v55 = vld [vmem:[#allocation11 + $0xd68] sm:$0xff] }
 0xcd9   : > { %6486 = vmatpush1.bf16.msra.mxu0 %v6485_v3  ;;  %v3343_v3 = vld [vmem:[#allocation11 + $0xc78] sm:$0xff] }
 0xcda   : > { %6488 = vmatprep.subr.bf16.mxu0 %v6487_v4  ;;  %v6523_v4 = vpack.c.bf16 %v3343_v3, %v3341_v1  ;;  %v6559_v3 = vpack.c.bf16 %v3379_v0, %v3377_v63 }
 0xcdd   : > { %6490 = vmatpush1.bf16.msra.mxu0 %v6489_v8  ;;  %v6525_v8 = vpack.c.bf16 %v3342_v6, %v3340_v5  ;;  %v3381_v5 = vld [vmem:[#allocation11 + $0xda8] sm:$0xff]  ;;  %v3383_v6 = vld [vmem:[#allocation11 + $0xdb8] sm:$0xff] }
 0xcde   : > { %6492 = vmatprep.subr.bf16.mxu0 %v6491_v9  ;;  %v6527_v9 = vpack.c.bf16 %v3347_v7, %v3345_v18  ;;  %v6563_v7 = vpack.c.bf16 %v3383_v6, %v3381_v5 }
 0xce1   : > { %6494 = vmatpush1.bf16.msra.mxu0 %v6493_v19  ;;  %v6529_v19 = vpack.c.bf16 %v3346_v13, %v3344_v12  ;;  %v3385_v12 = vld [vmem:[#allocation11 + $0xdc8] sm:$0xff]  ;;  %v3387_v13 = vld [vmem:[#allocation11 + $0xdd8] sm:$0xff] }
 0xce2   : > { %6496 = vmatprep.subr.bf16.mxu0 %v6495_v15  ;;  %v6531_v15 = vpack.c.bf16 %v3351_v17, %v3349_v16  ;;  %v6567_v17 = vpack.c.bf16 %v3387_v13, %v3385_v12 }
 0xce5   : > { %6498 = vmatpush1.bf16.msra.mxu0 %v6497_v25  ;;  %v6533_v25 = vpack.c.bf16 %v3350_v21, %v3348_v20  ;;  %v3389_v20 = vld [vmem:[#allocation11 + $0xde8] sm:$0xff]  ;;  %v3391_v21 = vld [vmem:[#allocation11 + $0xdf8] sm:$0xff] }
 0xce6   : > { %6500 = vmatprep.subr.bf16.mxu0 %v6499_v28  ;;  %v6535_v28 = vpack.c.bf16 %v3355_v24, %v3353_v23  ;;  %v6571_v24 = vpack.c.bf16 %v3391_v21, %v3389_v20 }
 0xce9   : > { %6502 = vmatpush1.bf16.msra.mxu0 %v6501_v11  ;;  %v6537_v11 = vpack.c.bf16 %v3354_v30, %v3352_v29  ;;  %v3469_v29 = vld [vmem:[#allocation11 + $0xe08] sm:$0xff]  ;;  %v3471_v30 = vld [vmem:[#allocation11 + $0xe18] sm:$0xff] }
 0xcea   : > { %6504 = vmatprep.subr.bf16.mxu0 %v6503_v33  ;;  %v6539_v33 = vpack.c.bf16 %v3359_v32, %v3357_v31  ;;  %v6575_v32 = vpack.c.bf16 %v3471_v30, %v3469_v29 }
 0xced   : > { %6506 = vmatpush1.bf16.msra.mxu0 %v6505_v39  ;;  %v6541_v39 = vpack.c.bf16 %v3358_v35, %v3356_v34  ;;  %v3473_v34 = vld [vmem:[#allocation11 + $0xe28] sm:$0xff]  ;;  %v3475_v35 = vld [vmem:[#allocation11 + $0xe38] sm:$0xff] }
 0xcee   : > { %6508 = vmatprep.subr.bf16.mxu0 %v6507_v40  ;;  %v6543_v40 = vpack.c.bf16 %v3363_v37, %v3361_v36  ;;  %v3325_v37 = vmul.f32 %v8124_v2, %v8205_v38 }
 0xcf1   : > { %6510 = vmatpush1.bf16.msra.mxu0 %v6509_v14  ;;  %v6545_v14 = vpack.c.bf16 %v3362_v42, %v3360_v41  ;;  %v3474_v41 = vld [vmem:[#allocation11 + $0xe30] sm:$0xff]  ;;  %v3466_v42 = vmul.f32 %v8132_v52, %v8207_v62  ;;  %v3487_v62 = vld [vmem:[#allocation11 + $0xe98] sm:$0xff] }
 0xcf2   : > { %6512 = vmatprep.subr.bf16.mxu0 %v6511_v45  ;;  %v6547_v45 = vpack.c.bf16 %v3367_v44, %v3365_v43  ;;  %v3477_v43 = vld [vmem:[#allocation11 + $0xe48] sm:$0xff]  ;;  %v3479_v44 = vld [vmem:[#allocation11 + $0xe58] sm:$0xff] }
 0xcf4   : > { %3319 = vmatmul.mubr.f32.vlgmr.msra.gmra.mrb[18].mxu0 %v3049_v51  ;;  %v6551_v51 = vpack.c.bf16 %v3371_v49, %v3369_v48  ;;  %v3481_v48 = vld [vmem:[#allocation11 + $0xe68] sm:$0xff]  ;;  %v3483_v49 = vld [vmem:[#allocation11 + $0xe78] sm:$0xff] }
 0xcf5   : > { %6514 = vmatpush1.bf16.msra.mxu0 %v6513_v50  ;;  %3456 = vmatprep.mubr.f32.mxu0 %v3326_v56  ;;  %v6549_v50 = vpack.c.bf16 %v3366_v47, %v3364_v46  ;;  %v3375_v56 = vld [vmem:[#allocation11 + $0xd78] sm:$0xff]  ;;  %v3476_v46 = vld [vmem:[#allocation11 + $0xe40] sm:$0xff]  ;;  %v3478_v47 = vld [vmem:[#allocation11 + $0xe50] sm:$0xff] }
 0xcf6   : > { %6516 = vmatprep.subr.bf16.mxu0 %v6515_v53  ;;  %v3368_v53 = vld [vmem:[#allocation11 + $0xd40] sm:$0xff]  ;;  %v6555_v58 = vpack.c.bf16 %v3375_v56, %v3373_v55  ;;  %v6585_v2 = vpack.c.bf16 %v3478_v47, %v3476_v46 }
 0xcf7   : > { %v6553_v57 = vpack.c.bf16 %v3370_v54, %v3368_v53  ;;  %v3482_v53 = vld [vmem:[#allocation11 + $0xe70] sm:$0xff]  ;;  %v3485_v54 = vld [vmem:[#allocation11 + $0xe88] sm:$0xff] }
 0xcf8   : > { %v6591_v56 = vpack.c.bf16 %v3487_v62, %v3485_v54  ;;  %v3520_v54 = vld [vmem:[#allocation11 + $0xfa0] sm:$0xff]  ;;  %v3522_v62 = vld [vmem:[#allocation11 + $0xfb0] sm:$0xff] }
 0xcf9   : > { %6518 = vmatpush1.bf16.msra.mxu0 %v6517_v59  ;;  %v3372_v59 = vld [vmem:[#allocation11 + $0xd60] sm:$0xff] }
 0xcfa   : > { %6520 = vmatprep.subr.bf16.mxu0 %v6519_v61  ;;  %v3374_v61 = vld [vmem:[#allocation11 + $0xd70] sm:$0xff] }
 0xcfb   : > { %v6557_v1 = vpack.c.bf16 %v3374_v61, %v3372_v59  ;;  %v3489_v59 = vld [vmem:[#allocation11 + $0xea8] sm:$0xff]  ;;  %v3491_v61 = vld [vmem:[#allocation11 + $0xeb8] sm:$0xff] }
 0xcfc   : > { %v6595_v0 = vpack.c.bf16 %v3491_v61, %v3489_v59  ;;  %v3524_v59 = vld [vmem:[#allocation11 + $0xfc0] sm:$0xff]  ;;  %v3526_v61 = vld [vmem:[#allocation11 + $0xfd0] sm:$0xff] }
 0xcfd   : > { %6522 = vmatpush1.bf16.msra.mxu0 %v6521_v22  ;;  %v3376_v22 = vld [vmem:[#allocation11 + $0xd80] sm:$0xff] }
 0xcfe   : > { %6524 = vmatprep.subr.bf16.mxu0 %v6523_v4  ;;  %v3378_v4 = vld [vmem:[#allocation11 + $0xd90] sm:$0xff] }
 0xcff   : > { %v6561_v18 = vpack.c.bf16 %v3378_v4, %v3376_v22  ;;  %v3493_v22 = vld [vmem:[#allocation11 + $0xec8] sm:$0xff]  ;;  %v3495_v4 = vld [vmem:[#allocation11 + $0xed8] sm:$0xff] }
 0xd00   : > { %v6599_v6 = vpack.c.bf16 %v3495_v4, %v3493_v22  ;;  %v3528_v22 = vld [vmem:[#allocation11 + $0xfe0] sm:$0xff]  ;;  %v3530_v4 = vld [vmem:[#allocation11 + $0xff0] sm:$0xff] }
 0xd01   : > { %6526 = vmatpush1.bf16.msra.mxu0 %v6525_v8  ;;  %v3380_v8 = vld [vmem:[#allocation11 + $0xda0] sm:$0xff] }
 0xd02   : > { %6528 = vmatprep.subr.bf16.mxu0 %v6527_v9  ;;  %v3382_v9 = vld [vmem:[#allocation11 + $0xdb0] sm:$0xff] }
 0xd03   : > { %v6565_v16 = vpack.c.bf16 %v3382_v9, %v3380_v8  ;;  %v3497_v8 = vld [vmem:[#allocation11 + $0xee8] sm:$0xff]  ;;  %v3499_v9 = vld [vmem:[#allocation11 + $0xef8] sm:$0xff] }
 0xd04   : > { %v6603_v13 = vpack.c.bf16 %v3499_v9, %v3497_v8  ;;  %v7008_v8 = vld [vmem:[%s8471_s7 + $0x8] sm:$0xff] }
 0xd05   : > { %6530 = vmatpush1.bf16.msra.mxu0 %v6529_v19  ;;  %v3384_v19 = vld [vmem:[#allocation11 + $0xdc0] sm:$0xff] }
 0xd06   : > { %6532 = vmatprep.subr.bf16.mxu0 %v6531_v15  ;;  %v3386_v15 = vld [vmem:[#allocation11 + $0xdd0] sm:$0xff] }
 0xd07   : > { %v6569_v23 = vpack.c.bf16 %v3386_v15, %v3384_v19  ;;  %v3501_v19 = vld [vmem:[#allocation11 + $0xf08] sm:$0xff]  ;;  %v3503_v15 = vld [vmem:[#allocation11 + $0xf18] sm:$0xff] }
 0xd08   : > { %v6607_v21 = vpack.c.bf16 %v3503_v15, %v3501_v19  ;;  %v3888_v19 = vld [vmem:[#allocation13 + $0x90] sm:$0xff]  ;;  %v3889_v15 = vld [vmem:[#allocation13 + $0x98] sm:$0xff] }
 0xd09   : > { %6534 = vmatpush1.bf16.msra.mxu0 %v6533_v25  ;;  %v3388_v25 = vld [vmem:[#allocation11 + $0xde0] sm:$0xff] }
 0xd0a   : > { %6536 = vmatprep.subr.bf16.mxu0 %v6535_v28  ;;  %v3390_v28 = vld [vmem:[#allocation11 + $0xdf0] sm:$0xff] }
 0xd0b   : > { %v6573_v31 = vpack.c.bf16 %v3390_v28, %v3388_v25  ;;  %v3505_v25 = vld [vmem:[#allocation11 + $0xf28] sm:$0xff]  ;;  %v3507_v28 = vld [vmem:[#allocation11 + $0xf38] sm:$0xff] }
 0xd0c   : > { %v6611_v30 = vpack.c.bf16 %v3507_v28, %v3505_v25 }
 0xd0d   : > { %6538 = vmatpush1.bf16.msra.mxu0 %v6537_v11  ;;  %v3468_v11 = vld [vmem:[#allocation11 + $0xe00] sm:$0xff] }
 0xd0e   : > { %6540 = vmatprep.subr.bf16.mxu0 %v6539_v33  ;;  %v3470_v33 = vld [vmem:[#allocation11 + $0xe10] sm:$0xff] }
 0xd0f   : > { %v6577_v36 = vpack.c.bf16 %v3470_v33, %v3468_v11  ;;  %v3509_v11 = vld [vmem:[#allocation11 + $0xf48] sm:$0xff]  ;;  %v3511_v33 = vld [vmem:[#allocation11 + $0xf58] sm:$0xff] }
 0xd11   : > { %6542 = vmatpush1.bf16.msra.mxu0 %v6541_v39  ;;  %v6579_v39 = vpack.c.bf16 %v3475_v35, %v3473_v34  ;;  %v6615_v35 = vpack.c.bf16 %v3511_v33, %v3509_v11 }
 0xd12   : > { %6544 = vmatprep.subr.bf16.mxu0 %v6543_v40  ;;  %v3472_v40 = vld [vmem:[#allocation11 + $0xe20] sm:$0xff] }
 0xd15   : > { %6546 = vmatpush1.bf16.msra.mxu0 %v6545_v14  ;;  %v6581_v14 = vpack.c.bf16 %v3474_v41, %v3472_v40  ;;  %v3515_v40 = vld [vmem:[#allocation11 + $0xf78] sm:$0xff] }
 0xd16   : > { %6548 = vmatprep.subr.bf16.mxu0 %v6547_v45  ;;  %v6583_v45 = vpack.c.bf16 %v3479_v44, %v3477_v43  ;;  %v3512_v43 = vld [vmem:[#allocation11 + $0xf60] sm:$0xff]  ;;  %v3514_v44 = vld [vmem:[#allocation11 + $0xf70] sm:$0xff] }
 0xd17   : > { %v6621_v46 = vpack.c.bf16 %v3514_v44, %v3512_v43 }
 0xd19   : > { %6550 = vmatpush1.bf16.msra.mxu0 %v6549_v50  ;;  %v6587_v50 = vpack.c.bf16 %v3483_v49, %v3481_v48  ;;  %v3516_v48 = vld [vmem:[#allocation11 + $0xf80] sm:$0xff]  ;;  %v3518_v49 = vld [vmem:[#allocation11 + $0xf90] sm:$0xff] }
 0xd1a   : > { %6552 = vmatprep.subr.bf16.mxu0 %v6551_v51  ;;  %v3480_v51 = vld [vmem:[#allocation11 + $0xe60] sm:$0xff] }
 0xd1b   : > { %v6589_v55 = vpack.c.bf16 %v3482_v53, %v3480_v51  ;;  %v6625_v51 = vpack.c.bf16 %v3518_v49, %v3516_v48  ;;  %v4404_v49 = vld [vmem:[#allocation13 + $0xf0] sm:$0xff] }
 0xd1d   : > { %6554 = vmatpush1.bf16.msra.mxu0 %v6553_v57  ;;  %v3484_v57 = vld [vmem:[#allocation11 + $0xe80] sm:$0xff] }
 0xd1e   : > { %6556 = vmatprep.subr.bf16.mxu0 %v6555_v58  ;;  %v3486_v58 = vld [vmem:[#allocation11 + $0xe90] sm:$0xff] }
 0xd1f   : > { %v6593_v63 = vpack.c.bf16 %v3486_v58, %v3484_v57  ;;  %v6629_v57 = vpack.c.bf16 %v3522_v62, %v3520_v54 }
 0xd21   : > { %6558 = vmatpush1.bf16.msra.mxu0 %v6557_v1  ;;  %v3488_v1 = vld [vmem:[#allocation11 + $0xea0] sm:$0xff] }
 0xd22   : > { %6560 = vmatprep.subr.bf16.mxu0 %v6559_v3  ;;  %v3490_v3 = vld [vmem:[#allocation11 + $0xeb0] sm:$0xff] }
 0xd23   : > { %v6597_v5 = vpack.c.bf16 %v3490_v3, %v3488_v1  ;;  %v6633_v1 = vpack.c.bf16 %v3526_v61, %v3524_v59 }
 0xd25   : > { %6562 = vmatpush1.bf16.msra.mxu0 %v6561_v18  ;;  %v3492_v18 = vld [vmem:[#allocation11 + $0xec0] sm:$0xff] }
 0xd26   : > { %6564 = vmatprep.subr.bf16.mxu0 %v6563_v7  ;;  %v3494_v7 = vld [vmem:[#allocation11 + $0xed0] sm:$0xff] }
 0xd27   : > { %v6601_v12 = vpack.c.bf16 %v3494_v7, %v3492_v18 }
 0xd29   : > { %6566 = vmatpush1.bf16.msra.mxu0 %v6565_v16  ;;  %v3496_v16 = vld [vmem:[#allocation11 + $0xee0] sm:$0xff] }
 0xd2a   : > { %6568 = vmatprep.subr.bf16.mxu0 %v6567_v17  ;;  %v3498_v17 = vld [vmem:[#allocation11 + $0xef0] sm:$0xff] }
 0xd2b   : > { %v6605_v20 = vpack.c.bf16 %v3498_v17, %v3496_v16 }
 0xd2d   : > { %6570 = vmatpush1.bf16.msra.mxu0 %v6569_v23  ;;  %v3500_v23 = vld [vmem:[#allocation11 + $0xf00] sm:$0xff] }
 0xd2e   : > { %6572 = vmatprep.subr.bf16.mxu0 %v6571_v24  ;;  %v3502_v24 = vld [vmem:[#allocation11 + $0xf10] sm:$0xff] }
 0xd2f   : > { %v6609_v29 = vpack.c.bf16 %v3502_v24, %v3500_v23  ;;  %v3974_v23 = vld [vmem:[#allocation13 + $0xa0] sm:$0xff]  ;;  %v3975_v24 = vld [vmem:[#allocation13 + $0xa8] sm:$0xff] }
 0xd30   : > { %v6647_v25 = vpack.c.bf16 %v3975_v24, %v3974_v23  ;;  %v4580_v23 = vld [vmem:[#allocation17 + $0xe8] sm:$0xff] }
 0xd31   : > { %6574 = vmatpush1.bf16.msra.mxu0 %v6573_v31  ;;  %v3504_v31 = vld [vmem:[#allocation11 + $0xf20] sm:$0xff] }
 0xd32   : > { %6576 = vmatprep.subr.bf16.mxu0 %v6575_v32  ;;  %v3506_v32 = vld [vmem:[#allocation11 + $0xf30] sm:$0xff] }
 0xd33   : > { %v6613_v34 = vpack.c.bf16 %v3506_v32, %v3504_v31  ;;  %v4061_v31 = vld [vmem:[#allocation13 + $0xb8] sm:$0xff] }
 0xd34   : > { %3457 = vmatmul.mubr.f32.vlgmr.msra.gmra.mrb[18].mxu0 %v3325_v37  ;;  %v3510_v37 = vld [vmem:[#allocation11 + $0xf50] sm:$0xff] }
 0xd35   : > { %6578 = vmatpush1.bf16.msra.mxu0 %v6577_v36  ;;  %3596 = vmatprep.mubr.f32.mxu0 %v3466_v42  ;;  %v3508_v36 = vld [vmem:[#allocation11 + $0xf40] sm:$0xff] }
 0xd36   : > { %6580 = vmatprep.subr.bf16.mxu0 %v6579_v39  ;;  %v3513_v39 = vld [vmem:[#allocation11 + $0xf68] sm:$0xff]  ;;  %v6617_v41 = vpack.c.bf16 %v3510_v37, %v3508_v36 }
 0xd37   : > { %v6619_v42 = vpack.c.bf16 %v3515_v40, %v3513_v39  ;;  %v4232_v40 = vld [vmem:[#allocation13 + $0xd0] sm:$0xff] }
 0xd39   : > { %6582 = vmatpush1.bf16.msra.mxu0 %v6581_v14  ;;  %v3517_v14 = vld [vmem:[#allocation11 + $0xf88] sm:$0xff] }
 0xd3a   : > { %6584 = vmatprep.subr.bf16.mxu0 %v6583_v45  ;;  %v3519_v45 = vld [vmem:[#allocation11 + $0xf98] sm:$0xff] }
 0xd3b   : > { %v6623_v47 = vpack.c.bf16 %v3519_v45, %v3517_v14  ;;  %v4318_v14 = vld [vmem:[#allocation13 + $0xe0] sm:$0xff]  ;;  %v4319_v45 = vld [vmem:[#allocation13 + $0xe8] sm:$0xff] }
 0xd3d   : > { %6586 = vmatpush1.bf16.msra.mxu0 %v6585_v2  ;;  %v3521_v2 = vld [vmem:[#allocation11 + $0xfa8] sm:$0xff] }
 0xd3e   : > { %6588 = vmatprep.subr.bf16.mxu0 %v6587_v50  ;;  %v3523_v50 = vld [vmem:[#allocation11 + $0xfb8] sm:$0xff] }
 0xd3f   : > { %v6627_v53 = vpack.c.bf16 %v3523_v50, %v3521_v2  ;;  %v4405_v2 = vld [vmem:[#allocation13 + $0xf8] sm:$0xff] }
 0xd40   : > { %v6667_v50 = vpack.c.bf16 %v4405_v2, %v4404_v49  ;;  %v4673_v49 = vld [vmem:[#allocation19 + $0xe0] sm:$0xff]  ;;  %v4674_v2 = vld [vmem:[#allocation19 + $0xe8] sm:$0xff] }
 0xd41   : > { %6590 = vmatpush1.bf16.msra.mxu0 %v6589_v55  ;;  %v3525_v55 = vld [vmem:[#allocation11 + $0xfc8] sm:$0xff] }
 0xd42   : > { %6592 = vmatprep.subr.bf16.mxu0 %v6591_v56  ;;  %v3527_v56 = vld [vmem:[#allocation11 + $0xfd8] sm:$0xff] }
 0xd43   : > { %v6631_v58 = vpack.c.bf16 %v3527_v56, %v3525_v55  ;;  %v8257_v56 = vld [vmem:[#allocation16] sm:$0xff] }
 0xd45   : > { %6594 = vmatpush1.bf16.msra.mxu0 %v6593_v63  ;;  %v3529_v63 = vld [vmem:[#allocation11 + $0xfe8] sm:$0xff] }
 0xd46   : > { %6596 = vmatprep.subr.bf16.mxu0 %v6595_v0  ;;  %v3531_v0 = vld [vmem:[#allocation11 + $0xff8] sm:$0xff] }
 0xd47   : > { %v6635_v3 = vpack.c.bf16 %v3531_v0, %v3529_v63 }
 0xd49   : > { %6598 = vmatpush1.bf16.msra.mxu0 %v6597_v5  ;;  %v6637_v5 = vpack.c.bf16 %v3530_v4, %v3528_v22 }
 0xd4a   : > { %6600 = vmatprep.subr.bf16.mxu0 %v6599_v6  ;;  %v3465_v6 = vmul.f32 %v8132_v52, %v8205_v38  ;;  %v7009_v52 = vld [vmem:[%s8472_s20] sm:$0xff]  ;;  %v7010_v38 = vld [vmem:[%s8472_s20 + $0x8] sm:$0xff] }
 0xd4d   : > { %6602 = vmatpush1.bf16.msra.mxu0 %v6601_v12  ;;  %v3796_v12 = vld [vmem:[#allocation13 + $0x80] sm:$0xff] }
 0xd4e   : > { %6604 = vmatprep.subr.bf16.mxu0 %v6603_v13  ;;  %v3797_v13 = vld [vmem:[#allocation13 + $0x88] sm:$0xff] }
 0xd4f   : > { %v6639_v17 = vpack.c.bf16 %v3797_v13, %v3796_v12  ;;  %v4575_v13 = vld [vmem:[#allocation17 + $0xc0] sm:$0xff] }
 0xd51   : > { %6606 = vmatpush1.bf16.msra.mxu0 %v6605_v20  ;;  %v6643_v20 = vpack.c.bf16 %v3889_v15, %v3888_v19  ;;  %v4577_v19 = vld [vmem:[#allocation17 + $0xd0] sm:$0xff]  ;;  %v4578_v15 = vld [vmem:[#allocation17 + $0xd8] sm:$0xff] }
 0xd52   : > { %6608 = vmatprep.subr.bf16.mxu0 %v6607_v21 }
 0xd55   : > { %6610 = vmatpush1.bf16.msra.mxu0 %v6609_v29 }
 0xd56   : > { %6612 = vmatprep.subr.bf16.mxu0 %v6611_v30  ;;  %v4060_v30 = vld [vmem:[#allocation13 + $0xb0] sm:$0xff] }
 0xd57   : > { %v6651_v32 = vpack.c.bf16 %v4061_v31, %v4060_v30  ;;  %v4661_v30 = vld [vmem:[#allocation19 + $0x80] sm:$0xff]  ;;  %v4662_v31 = vld [vmem:[#allocation19 + $0x88] sm:$0xff] }
 0xd59   : > { %6614 = vmatpush1.bf16.msra.mxu0 %v6613_v34  ;;  %v4146_v34 = vld [vmem:[#allocation13 + $0xc0] sm:$0xff] }
 0xd5a   : > { %6616 = vmatprep.subr.bf16.mxu0 %v6615_v35  ;;  %v4147_v35 = vld [vmem:[#allocation13 + $0xc8] sm:$0xff] }
 0xd5b   : > { %v6655_v36 = vpack.c.bf16 %v4147_v35, %v4146_v34 }
 0xd5d   : > { %6618 = vmatpush1.bf16.msra.mxu0 %v6617_v41  ;;  %v4233_v41 = vld [vmem:[#allocation13 + $0xd8] sm:$0xff] }
 0xd5e   : > { %6620 = vmatprep.subr.bf16.mxu0 %v6619_v42  ;;  %v6659_v42 = vpack.c.bf16 %v4233_v41, %v4232_v40  ;;  %v4667_v41 = vld [vmem:[#allocation19 + $0xb0] sm:$0xff] }
 0xd61   : > { %6622 = vmatpush1.bf16.msra.mxu0 %v6621_v46  ;;  %v6663_v46 = vpack.c.bf16 %v4319_v45, %v4318_v14  ;;  %v4670_v14 = vld [vmem:[#allocation19 + $0xc8] sm:$0xff] }
 0xd62   : > { %6624 = vmatprep.subr.bf16.mxu0 %v6623_v47 }
 0xd65   : > { %6626 = vmatpush1.bf16.msra.mxu0 %v6625_v51 }
 0xd66   : > { %6628 = vmatprep.subr.bf16.mxu0 %v6627_v53 }
 0xd69   : > { %6630 = vmatpush1.bf16.msra.mxu0 %v6629_v57  ;;  %v5260_v57 = vld [vmem:[#allocation14 + $0x1] ss:$0 sm:$0xff] }
 0xd6a   : > { %6632 = vmatprep.subr.bf16.mxu0 %v6631_v58 }
 0xd6d   : > { %6634 = vmatpush1.bf16.msra.mxu0 %v6633_v1  ;;  %v4567_v1 = vld [vmem:[#allocation17 + $0x80] sm:$0xff] }
 0xd6e   : > { %6636 = vmatprep.subr.bf16.mxu0 %v6635_v3  ;;  %v4568_v3 = vld [vmem:[#allocation17 + $0x88] sm:$0xff] }
 0xd71   : > { %6638 = vmatpush1.bf16.msra.mxu0 %v6637_v5  ;;  %v6675_v5 = vpack.c.bf16 %v4568_v3, %v4567_v1 }
 0xd74   : > { %3597 = vmatmul.mubr.f32.vlgmr.msra.gmra.mrb[18].mxu0 %v3465_v6  ;;  %v4569_v6 = vld [vmem:[#allocation17 + $0x90] sm:$0xff] }
 0xe47   : > { %v3598_v18 = vpop.f32.mrb[18].mxu0 }
 0xe48   : > { %v3600_v7 = vpop.f32.mrb[19].mxu0 }
 0xe49   : > { %5762 = vmatprep.subr.msk.mxu1 %vm1576_vm7, %v3600_v7 }
 0xe4a   : > { %5763 = vmatpush3.msk.msra.mxu1 %vm1576_vm7, %v3600_v7 }
 0xe4b   : > { %5765 = vmatmul.mubr.msk.f32.vlgmr.msra.gmra.mrb[10].mxu1 %vm1569_vm6, %v7008_v8  ;;  %5767 = vmatprep.subr.msk.mxu1 %vm1576_vm7, %v3598_v18  ;;  %v4571_v8 = vld [vmem:[#allocation17 + $0xa0] sm:$0xff] }
 0xe4c   : > { %5768 = vmatpush3.msk.msra.mxu1 %vm1576_vm7, %v3598_v18  ;;  %5769 = vmatprep.mubr.msk.f32.mxu1 %vm1569_vm6, %v7009_v52  ;;  %v4570_v18 = vld [vmem:[#allocation17 + $0x98] sm:$0xff]  ;;  %v4572_v52 = vld [vmem:[#allocation17 + $0xa8] sm:$0xff] }
 0xe4d   : > { %6640 = vmatprep.subr.bf16.mxu1 %v6639_v17  ;;  %v6679_v7 = vpack.c.bf16 %v4570_v18, %v4569_v6 }
 0xe53   : > { %5770 = vmatmul.mubr.msk.f32.vlgmr.msra.gmra.mrb[10].mxu1 %vm1569_vm6, %v7010_v38  ;;  %v8263_v38 = vld [vmem:[#allocation16 + $0x8] sm:$0xff] }
 0xe54   : > { %6642 = vmatpush3.bf16.msra.mxu1 %v6639_v17 }
 0xe55   : > { %6644 = vmatprep.subr.bf16.mxu1 %v6643_v20 }
 0xf26   : > { %v5771_v9 = vpop.f32.mrb[10].mxu1 }
 0xf27   : > { %v3752_v16 = vpop.f32.mrb[11].mxu1 }
 0xf28   : > { %3761 = vxpose.xlu1.b32.start [1/2] (short) %v3752_v16, 128  ;;  %v4576_v16 = vld [vmem:[#allocation17 + $0xc8] sm:$0xff] }
 0xf29   : > { %v6691_v17 = vpack.c.bf16 %v4576_v16, %v4575_v13  ;;  %v4893_v13 = vld [vmem:[%s8473_s17 + $0x20] sm:$0xff]  ;;  %v4894_v16 = vld [vmem:[%s8473_s17 + $0x28] sm:$0xff] }
 0xf2c   : > { %3762 = vxpose.xlu1.b32.end [2/2] (short) %v5771_v9, 128  ;;  %v4573_v9 = vld [vmem:[#allocation17 + $0xb0] sm:$0xff] }
 0xfa8   : > { %v3777_v21 = vpop.trf.xlu1 }
 0xfa9   : > { %5776 = vmatprep.mubr.msk.f32.mxu1 %vm867_vm1, %v3777_v21  ;;  %v4579_v21 = vld [vmem:[#allocation17 + $0xe0] sm:$0xff] }
 0xfaa   : > { %v6699_v24 = vpack.c.bf16 %v4580_v23, %v4579_v21  ;;  %v4897_v21 = vld [vmem:[%s8473_s17 + $0x40] sm:$0xff]  ;;  %v4898_v23 = vld [vmem:[%s8473_s17 + $0x48] sm:$0xff] }
 0xfac   : > { %v3778_v28 = vpop.trf.xlu1 }
 0xfad   : > { %5777 = vmatmul.mubr.msk.f32.vlgmr.msra.gmra.mrb[12].mxu1 %vm867_vm1, %v3778_v28  ;;  %v4582_v28 = vld [vmem:[#allocation17 + $0xf8] sm:$0xff] }
 0xfae   : > { %6646 = vmatpush3.bf16.msra.mxu1 %v6643_v20  ;;  %v6695_v20 = vpack.c.bf16 %v4578_v15, %v4577_v19  ;;  %v4895_v19 = vld [vmem:[%s8473_s17 + $0x30] sm:$0xff]  ;;  %v4896_v15 = vld [vmem:[%s8473_s17 + $0x38] sm:$0xff] }
 0xfaf   : > { %6648 = vmatprep.subr.bf16.mxu1 %v6647_v25 }
 0xfb0   : > { %v3779_v29 = vpop.trf.xlu1 }
 0xfb1   : > { %5783 = vmatprep.mubr.msk.f32.mxu1 %vm867_vm1, %v3779_v29 }
 0xfb4   : > { %v3780_v11 = vpop.trf.xlu1 }
 0xfb5   : > { %5784 = vmatmul.mubr.msk.f32.vlgmr.msra.gmra.mrb[12].mxu1 %vm867_vm1, %v3780_v11  ;;  %v4663_v11 = vld [vmem:[#allocation19 + $0x90] sm:$0xff] }
 0xfb6   : > { %6650 = vmatpush3.bf16.msra.mxu1 %v6647_v25  ;;  %v4581_v25 = vld [vmem:[#allocation17 + $0xf0] sm:$0xff] }
 0xfb7   : > { %6652 = vmatprep.subr.bf16.mxu1 %v6651_v32  ;;  %v6703_v29 = vpack.c.bf16 %v4582_v28, %v4581_v25  ;;  %v4899_v25 = vld [vmem:[%s8473_s17 + $0x50] sm:$0xff]  ;;  %v4900_v28 = vld [vmem:[%s8473_s17 + $0x58] sm:$0xff] }
 0xfb8   : > { %v3781_v33 = vpop.trf.xlu1 }
 0xfb9   : > { %5790 = vmatprep.mubr.msk.f32.mxu1 %vm867_vm1, %v3781_v33  ;;  %v4664_v33 = vld [vmem:[#allocation19 + $0x98] sm:$0xff] }
 0xfbc   : > { %v3782_v37 = vpop.trf.xlu1 }
 0xfbd   : > { %5791 = vmatmul.mubr.msk.f32.vlgmr.msra.gmra.mrb[12].mxu1 %vm867_vm1, %v3782_v37  ;;  %v4665_v37 = vld [vmem:[#allocation19 + $0xa0] sm:$0xff] }
 0xfbe   : > { %6654 = vmatpush3.bf16.msra.mxu1 %v6651_v32  ;;  %v6707_v32 = vpack.c.bf16 %v4662_v31, %v4661_v30  ;;  %v4901_v30 = vld [vmem:[%s8473_s17 + $0x60] sm:$0xff]  ;;  %v4902_v31 = vld [vmem:[%s8473_s17 + $0x68] sm:$0xff] }
 0xfbf   : > { %6656 = vmatprep.subr.bf16.mxu1 %v6655_v36 }
 0xfc0   : > { %v3783_v39 = vpop.trf.xlu1 }
 0xfc1   : > { %5797 = vmatprep.mubr.msk.f32.mxu1 %vm867_vm1, %v3783_v39  ;;  %v4666_v39 = vld [vmem:[#allocation19 + $0xa8] sm:$0xff] }
 0xfc2   : > { %v6715_v40 = vpack.c.bf16 %v4666_v39, %v4665_v37 }
 0xfc4   : > { %v3784_v43 = vpop.trf.xlu1 }
 0xfc5   : > { %5798 = vmatmul.mubr.msk.f32.vlgmr.msra.gmra.mrb[12].mxu1 %vm867_vm1, %v3784_v43 }
 0xfc6   : > { %6658 = vmatpush3.bf16.msra.mxu1 %v6655_v36  ;;  %v6711_v36 = vpack.c.bf16 %v4664_v33, %v4663_v11  ;;  %v4903_v11 = vld [vmem:[%s8473_s17 + $0x70] sm:$0xff]  ;;  %v4904_v33 = vld [vmem:[%s8473_s17 + $0x78] sm:$0xff] }
 0xfc7   : > { %6660 = vmatprep.subr.bf16.mxu1 %v6659_v42 }
 0xfc8   : > { %v3785_v44 = vpop.trf.xlu1 }
 0xfc9   : > { %5804 = vmatprep.mubr.msk.f32.mxu1 %vm867_vm1, %v3785_v44  ;;  %v4669_v44 = vld [vmem:[#allocation19 + $0xc0] sm:$0xff] }
 0xfca   : > { %v6723_v45 = vpack.c.bf16 %v4670_v14, %v4669_v44  ;;  %v5279_v44 = vld [vmem:[#allocation20] ss:$0 sm:$0xff] }
 0xfcc   : > { %v3786_v47 = vpop.trf.xlu1 }
 0xfcd   : > { %5805 = vmatmul.mubr.msk.f32.vlgmr.msra.gmra.mrb[12].mxu1 %vm867_vm1, %v3786_v47  ;;  %v4672_v47 = vld [vmem:[#allocation19 + $0xd8] sm:$0xff] }
 0xfce   : > { %6662 = vmatpush3.bf16.msra.mxu1 %v6659_v42  ;;  %v4668_v42 = vld [vmem:[#allocation19 + $0xb8] sm:$0xff] }
 0xfcf   : > { %6664 = vmatprep.subr.bf16.mxu1 %v6663_v46  ;;  %v6719_v43 = vpack.c.bf16 %v4668_v42, %v4667_v41 }
 0xfd0   : > { %v3787_v48 = vpop.trf.xlu1 }
 0xfd1   : > { %5811 = vmatprep.mubr.msk.f32.mxu1 %vm867_vm1, %v3787_v48 }
 0xfd4   : > { %v3788_v51 = vpop.trf.xlu1 }
 0xfd5   : > { %5812 = vmatmul.mubr.msk.f32.vlgmr.msra.gmra.mrb[12].mxu1 %vm867_vm1, %v3788_v51  ;;  %v4675_v51 = vld [vmem:[#allocation19 + $0xf0] sm:$0xff] }
 0xfd6   : > { %6666 = vmatpush3.bf16.msra.mxu1 %v6663_v46  ;;  %v4671_v46 = vld [vmem:[#allocation19 + $0xd0] sm:$0xff] }
 0xfd7   : > { %6668 = vmatprep.subr.bf16.mxu1 %v6667_v50  ;;  %v6727_v48 = vpack.c.bf16 %v4672_v47, %v4671_v46  ;;  %v5280_v47 = vld [vmem:[#allocation22] ss:$0 sm:$0xff] }
 0xfd8   : > { %v3789_v53 = vpop.trf.xlu1 }
 0xfd9   : > { %5818 = vmatprep.mubr.msk.f32.mxu1 %vm867_vm1, %v3789_v53  ;;  %v4676_v53 = vld [vmem:[#allocation19 + $0xf8] sm:$0xff] }
 0xfdc   : > { %v3790_v54 = vpop.trf.xlu1 }
 0xfdd   : > { %5819 = vmatmul.mubr.msk.f32.vlgmr.msra.gmra.mrb[12].mxu1 %vm867_vm1, %v3790_v54  ;;  %v6735_v54 = vpack.c.bf16 %v4676_v53, %v4675_v51 }
 0xfde   : > { %6670 = vmatpush3.bf16.msra.mxu1 %v6667_v50  ;;  %v6731_v50 = vpack.c.bf16 %v4674_v2, %v4673_v49 }
 0xfe0   : > { %v3791_v62 = vpop.trf.xlu1 }
 0xfe1   : > { %5825 = vmatprep.mubr.msk.f32.mxu1 %vm867_vm1, %v3791_v62 }
 0xfe4   : > { %v3792_v55 = vpop.trf.xlu1 }
 0xfe5   : > { %5826 = vmatmul.mubr.msk.f32.vlgmr.msra.gmra.mrb[12].mxu1 %vm867_vm1, %v3792_v55 }
 0xfe6   : > { %5832 = vmatprep.mubr.msk.f32.mxu1 %vm867_vm1, %v8257_v56 }
0x10b8   : > { %v5827_v58 = vpop.f32.mrb[12].mxu1 }
0x10b9   : > { %v6771_v59 = vadd.f32 %v5827_v58, %v5260_v57  ;;  %v4478_v61 = vpop.f32.mrb[13].mxu1 }
0x10ba   : > { %v6772_v63 = vadd.f32 %v5260_v57, %v4478_v61 }
0x10bb   : > { %v4490_v0 = vadd.f32 %v6771_v59, %v8192_v10  ;;  %v6683_v10 = vpack.c.bf16 %v4572_v52, %v4571_v8 }
0x10bc   : > { %v4489_v22 = vadd.f32 %v6772_v63, %v8194_v60  ;;  %v4574_v60 = vld [vmem:[#allocation17 + $0xb8] sm:$0xff] }
0x10bd   : > { %v6687_v12 = vpack.c.bf16 %v4574_v60, %v4573_v9  ;;  %v4891_v9 = vld [vmem:[%s8473_s17 + $0x10] sm:$0xff]  ;;  %v4892_v60 = vld [vmem:[%s8473_s17 + $0x18] sm:$0xff] }
0x10be   : > { %v6671_v4 = vpack.c.bf16 %v4490_v0, %v4489_v22 }
0x10c0   : > { %6672 = vmatprep.subr.bf16.mxu1 %v6671_v4 }
0x10c1   : > { %6674 = vmatpush3.bf16.msra.mxu1 %v6671_v4 }
0x10c2   : > { %6676 = vmatprep.subr.bf16.mxu1 %v6675_v5 }
0x10c4   : > { %5833 = vmatmul.mubr.msk.f32.vlgmr.msra.gmra.mrb[14].mxu1 %vm867_vm1, %v8263_v38 }
0x10c5   : > { %6678 = vmatpush3.bf16.msra.mxu1 %v6675_v5 }
0x10c6   : > { %6680 = vmatprep.subr.bf16.mxu1 %v6679_v7 }
0x10c9   : > { %6682 = vmatpush3.bf16.msra.mxu1 %v6679_v7 }
0x10ca   : > { %6684 = vmatprep.subr.bf16.mxu1 %v6683_v10 }
0x10cd   : > { %6686 = vmatpush3.bf16.msra.mxu1 %v6683_v10 }
0x10ce   : > { %6688 = vmatprep.subr.bf16.mxu1 %v6687_v12 }
0x10d1   : > { %6690 = vmatpush3.bf16.msra.mxu1 %v6687_v12  ;;  %v6747_v12 = vpack.c.bf16 %v4892_v60, %v4891_v9 }
0x10d2   : > { %6692 = vmatprep.subr.bf16.mxu1 %v6691_v17 }
0x10d5   : > { %6694 = vmatpush3.bf16.msra.mxu1 %v6691_v17  ;;  %v6750_v17 = vpack.c.bf16 %v4894_v16, %v4893_v13 }
0x10d6   : > { %6696 = vmatprep.subr.bf16.mxu1 %v6695_v20 }
0x10d9   : > { %6698 = vmatpush3.bf16.msra.mxu1 %v6695_v20  ;;  %v6753_v20 = vpack.c.bf16 %v4896_v15, %v4895_v19 }
0x10da   : > { %6700 = vmatprep.subr.bf16.mxu1 %v6699_v24 }
0x10dd   : > { %6702 = vmatpush3.bf16.msra.mxu1 %v6699_v24  ;;  %v6756_v24 = vpack.c.bf16 %v4898_v23, %v4897_v21 }
0x10de   : > { %6704 = vmatprep.subr.bf16.mxu1 %v6703_v29 }
0x10e1   : > { %6706 = vmatpush3.bf16.msra.mxu1 %v6703_v29  ;;  %v6759_v29 = vpack.c.bf16 %v4900_v28, %v4899_v25 }
0x10e2   : > { %6708 = vmatprep.subr.bf16.mxu1 %v6707_v32 }
0x1197   : > { %v5834_v34 = vpop.f32.mrb[14].mxu1 }
0x1198   : > { %v4557_v35 = vpop.f32.mrb[15].mxu1 }
0x1199   : > { %5867 = vmatprep.mubr.f32.mxu1 %v4557_v35 }
0x119a   : > { %5868 = vmatmul.mubr.f32.vlgmr.msra.gmra.mrb[16].mxu1 %v5834_v34 }
0x119b   : > { %6710 = vmatpush3.bf16.msra.mxu1 %v6707_v32  ;;  %v6762_v32 = vpack.c.bf16 %v4902_v31, %v4901_v30 }
0x119c   : > { %6712 = vmatprep.subr.bf16.mxu1 %v6711_v36 }
0x119f   : > { %6714 = vmatpush3.bf16.msra.mxu1 %v6711_v36 }
0x11a0   : > { %6716 = vmatprep.subr.bf16.mxu1 %v6715_v40 }
0x11a3   : > { %6718 = vmatpush3.bf16.msra.mxu1 %v6715_v40 }
0x11a4   : > { %6720 = vmatprep.subr.bf16.mxu1 %v6719_v43 }
0x11a7   : > { %6722 = vmatpush3.bf16.msra.mxu1 %v6719_v43 }
0x11a8   : > { %6724 = vmatprep.subr.bf16.mxu1 %v6723_v45 }
0x11ab   : > { %6726 = vmatpush3.bf16.msra.mxu1 %v6723_v45 }
0x11ac   : > { %6728 = vmatprep.subr.bf16.mxu1 %v6727_v48 }
0x11af   : > { %6730 = vmatpush3.bf16.msra.mxu1 %v6727_v48 }
0x11b0   : > { %6732 = vmatprep.subr.bf16.mxu1 %v6731_v50 }
0x11b3   : > { %6734 = vmatpush3.bf16.msra.mxu1 %v6731_v50 }
0x11b4   : > { %6736 = vmatprep.subr.bf16.mxu1 %v6735_v54 }
0x11b7   : > { %6738 = vmatpush3.bf16.msra.mxu1 %v6735_v54 }
0x126d   : > { %v5869_v62 = vpop.f32.mrb[16].mxu1 }
0x126e   : > { %v4649_v55 = vpop.f32.mrb[17].mxu1  ;;  %v4659_v58 = vmax.f32 %v5869_v62, 0.0 }
0x126f   : > { %v4658_v57 = vmax.f32 %v4649_v55, 0.0 }
0x1271   : > { %5902 = vmatprep.mubr.f32.mxu1 %v4658_v57 }
0x1272   : > { %5903 = vmatmul.mubr.f32.vlgmr.msra.gmra.mrb[18].mxu1 %v4659_v58 }
0x1273   : > { %5909 = vmatprep.mubr.msk.f32.mxu1 %vm867_vm1, %v8257_v56 }
0x1345   : > { %v5904_v59 = vpop.f32.mrb[18].mxu1 }
0x1346   : > { %v4753_v61 = vadd.f32 %v5904_v59, %v5834_v34  ;;  %v4743_v63 = vpop.f32.mrb[19].mxu1  ;;  %v6765_v34 = vpack.c.bf16 %v4904_v33, %v4903_v11 }
0x1347   : > { %v4752_v0 = vadd.f32 %v4743_v63, %v4557_v35 }
0x1349   : > { %v6739_v1 = vpack.c.bf16 %v4753_v61, %v4752_v0 }
0x134b   : > { %6740 = vmatprep.subr.bf16.mxu1 %v6739_v1 }
0x134c   : > { %6742 = vmatpush3.bf16.msra.mxu1 %v6739_v1 }
0x134d   : > { %6743 = vmatprep.subr.bf16.mxu1 %v7522_v26 }
0x134f   : > { %5910 = vmatmul.mubr.msk.f32.vlgmr.msra.gmra.mrb[20].mxu1 %vm867_vm1, %v8263_v38  ;;  %v4889_v38 = vld [vmem:[%s8473_s17] sm:$0xff] }
0x1350   : > { %5944 = vmatprep.mubr.msk.f32.mxu1 %vm7523_vm0, %v7524_v27  ;;  %v4890_v27 = vld [vmem:[%s8473_s17 + $0x8] sm:$0xff] }
0x1351   : > { %v6744_v10 = vpack.c.bf16 %v4890_v27, %v4889_v38 }
0x1353   : > { %6745 = vmatpush3.bf16.msra.mxu1 %v6744_v10 }
0x1354   : > { %6746 = vmatprep.subr.bf16.mxu1 %v7522_v26 }
0x1357   : > { %6748 = vmatpush3.bf16.msra.mxu1 %v6747_v12 }
0x1358   : > { %6749 = vmatprep.subr.bf16.mxu1 %v7522_v26 }
0x135b   : > { %6751 = vmatpush3.bf16.msra.mxu1 %v6750_v17 }
0x135c   : > { %6752 = vmatprep.subr.bf16.mxu1 %v7522_v26 }
0x135f   : > { %6754 = vmatpush3.bf16.msra.mxu1 %v6753_v20 }
0x1360   : > { %6755 = vmatprep.subr.bf16.mxu1 %v7522_v26 }
0x1363   : > { %6757 = vmatpush3.bf16.msra.mxu1 %v6756_v24 }
0x1364   : > { %6758 = vmatprep.subr.bf16.mxu1 %v7522_v26 }
0x1367   : > { %6760 = vmatpush3.bf16.msra.mxu1 %v6759_v29 }
0x1368   : > { %6761 = vmatprep.subr.bf16.mxu1 %v7522_v26 }
0x136b   : > { %6763 = vmatpush3.bf16.msra.mxu1 %v6762_v32 }
0x136c   : > { %6764 = vmatprep.subr.bf16.mxu1 %v7522_v26 }
0x136f   : > { %6766 = vmatpush3.bf16.msra.mxu1 %v6765_v34 }
0x1422   : > { %v5911_v3 = vpop.f32.mrb[20].mxu1 }
0x1423   : > { %4831 = vadd.xlane.f32.xlu1 %v5911_v3  ;;  %v4820_v22 = vpop.f32.mrb[21].mxu1 }
0x1424   : > { %4829 = vadd.xlane.f32.xlu0 %v4820_v22 }
0x14b0   : > { %v4832_v56 = vpop.xlane.xlu1 %4831 }
0x14b1   : > { %v4830_v4 = vpop.xlane.xlu0 %4829  ;;  %v4835_v5 = vmul.f32 0.0078125, %v4832_v56 }
0x14b2   : > { %v4834_v6 = vmul.f32 0.0078125, %v4830_v4 }
0x14b3   : > { %v4837_v7 = vsub.f32 %v5911_v3, %v4835_v5  ;;  %v4905_v5 = vld [vmem:[#allocation23] sm:$0x1] }
0x14b4   : > { %v4836_v18 = vsub.f32 %v4820_v22, %v4834_v6 }
0x14b5   : > { %v4839_v52 = vmul.f32 %v4837_v7, %v4837_v7 }
0x14b6   : > { %v4838_v8 = vmul.f32 %v4836_v18, %v4836_v18 }
0x14b8   : > { %4840 = vadd.xlane.f32.xlu1 %v4838_v8 }
0x14bc   : > { %4842 = vadd.xlane.f32.xlu1 %v4839_v52 }
0x1545   : > { %v4841_v35 = vpop.xlane.xlu1 %4840 }
0x1546   : > { %v4844_v36 = vmul.f32 0.0078125, %v4841_v35 }
0x1548   : > { %v4846_v37 = vadd.f32 1e-05, %v4844_v36 }
0x1549   : > { %v4843_v39 = vpop.xlane.xlu1 %4842 }
0x154a   : > { %7000 = vrsqrt.f32 %v4846_v37  ;;  %v4845_v40 = vmul.f32 0.0078125, %v4843_v39 }
0x154c   : > { %v4847_v41 = vadd.f32 1e-05, %v4845_v40 }
0x154e   : > { %7002 = vrsqrt.f32 %v4847_v41 }
0x1554   : > { %v7001_v42 = vpop.eup %7000 }
0x1555   : > { %v4850_v43 = vmul.f32 %v7001_v42, %v4836_v18 }
0x1557   : > { %v4859_v45 = vmul.f32 %v5279_v44, %v4850_v43 }
0x1558   : > { %v7003_v14 = vpop.eup %7002 }
0x1559   : > { %v4851_v46 = vmul.f32 %v7003_v14, %v4837_v7  ;;  %v4868_v49 = vadd.f32 %v5280_v47, %v4859_v45 }
0x155b   : > { %v4860_v48 = vmul.f32 %v5279_v44, %v4851_v46 }
0x155d   : > { %v4869_v2 = vadd.f32 %v5280_v47, %v4860_v48 }
0x155f   : > { %v4870_v26 = vadd.f32 %v4869_v2, %v4868_v49 }
0x1561   : > { %v4871_v50 = vrot.slane %v4870_v26, 4 }
0x1563   : > { %v4872_v51 = vadd.f32 %v4871_v50, %v4870_v26 }
0x1565   : > { %v4873_v53 = vrot.slane %v4872_v51, 2 }
0x1567   : > { %v4874_v54 = vadd.f32 %v4873_v53, %v4872_v51 }
0x1569   : > { %v4875_v62 = vrot.slane %v4874_v54, 1 }
0x156b   : > { %v4876_v55 = vadd.f32 %v4875_v62, %v4874_v54 }
0x156d   : > { %v4878_v57 = vmul.f32 0.0625, %v4876_v55 }
0x156f   : > { %v4879_v58 = vsub.f32 %v4868_v49, %v4878_v57  ;;  %v4880_v59 = vsub.f32 %v4869_v2, %v4878_v57 }
0x1571   : > { %v4881_v61 = vadd.f32 %v4880_v59, %v4879_v58 }
0x1573   : > { %v4882_v63 = vrot.slane %v4881_v61, 4 }
0x1575   : > { %v4883_v0 = vadd.f32 %v4882_v63, %v4881_v61 }
0x1577   : > { %v4884_v1 = vrot.slane %v4883_v0, 2 }
0x1579   : > { %v4885_v3 = vadd.f32 %v4884_v1, %v4883_v0 }
0x157b   : > { %v4886_v22 = vrot.slane %v4885_v3, 1 }
0x157d   : > { %v4887_v56 = vadd.f32 %v4886_v22, %v4885_v3 }
0x157f   : > { %v4888_v4 = vmul.f32 0.0625, %v4887_v56 }
0x1581   : > { %5945 = vmatmul.mubr.f32.vlgmr.msra.gmra.mrb[22].mxu1 %v4888_v4 }
0x1654   : > { %v4972_v6 = vpop.f32.mrb[22].mxu1 }
0x1655   : > { %v4973_v18 = vadd.f32 %v4972_v6, %v4905_v5  ;;  %v5946_v7 = vpop.f32.mrb[23].mxu1 }
0x1657   : > { %4977 = vst.msk [vmem:[%s744_s19] sm:$0x1] %vm4976_vm8, %v4973_v18 }
0x1658   : > { %7420 = shalt.err (!%p7417_p5)
}
0x1659   : > { %s7421_s21 = scalar_lea.hbm %s8334_s23, 16  ;;  %s7425_s5 = scalar_lea.hbm %s8474_s18, 32 }
0x165a   : > { %p7422_p10 = scmp.ne.s32.totalorder %s8334_s23, %s7421_s21  ;;  %p7426_p12 = scmp.lt.u32.totalorder %s8334_s23, %s8474_s18 }
0x165b   : > { %p7427_p13 = scmp.lt.u32.totalorder %s7425_s5, %s7421_s21  ;;  %p7429_p7 = scmp.lt.u32.totalorder %s7421_s21, %s8334_s23 }
0x165c   : > { %p7423_p1 = pnand %p7422_p10, %p8475_p9 }
0x165d   : > { %p7428_p8 = por %p7427_p13, %p7426_p12 }
0x165e   : > { %p7424_p11 = pneg %p7423_p1 }
0x165f   : > { %p7430_p4 = por %p7429_p7, %p7428_p8 }
0x1661   : > { %p7431_p3 = pnand %p7430_p4, %p7424_p11 }
0x1663   : > { %7434 = shalt.err (!%p7431_p3)
}
0x1664   : > { %6869 = dma.vmem_to_hbm [thread:$0]  (%p8475_p9), %s8336_s22, 16, %s8334_s23, %s4979_s24  }
0x1665 PF: > { %s8476_s4 = sld [smem:[#allocation35_spill]]  ;;  %p8477_p0 = scmp.ne.s32.totalorder %s8450_s15, 0 }
0x1666   : > { %p8478_p2 = scmp.ge.s32.totalorder %s7501_s27, 2 }
0x1668   : > { %p6916_p6 = pnand %p8478_p2, %p8477_p0 }
0x166b   : > { %s5003_s3 = sand.u32 1, %s8476_s4  }
0x166c   : > { %s5004_s6 = scalar_lea.sflag [#allocation4], %s5003_s3 }
0x166d   : > { %7484 = dma.done.wait (!%p6916_p6), %s5004_s6, 16  }
0x166e   : > { %7486 = vsyncadd (!%p6916_p6), %s5004_s6, 4294967280  ;;  %s8479_s24 = sld [smem:[#allocation36_spill]]  ;;  %s8480_s21 = smov %s7983_s25 }
0x166f   : > { %p37_p5 = scmp.ge.s32.totalorder %s7972_s29, 4   ;;  %s8481_s25 = smov %s7497_s26 }
0x1670   : > { %s8482_s26 = smov %s8480_s21  ;;  %s8483_s27 = smov %s7972_s29 }
0x1671   :  { %39 = sbr.rel (!%p37_p5) target bundleno = 23 (0x17), region = 212 }
0x1678   :  { %5008 = vsyncpa [#allocation3], 1 }
0x1679   :  { %5010 = vsyncpa [#allocation3 + $0x1], 1 }
0x167a   :  { %5011 = vsyncpa [#allocation6], 1 }
0x167b   :  { %5012 = vsyncpa [#allocation9], 1 }
0x167c   :  { %5013 = vsyncpa [#allocation12], 1 }
0x167d   :  { %5014 = vsyncpa [#allocation15], 1 }
0x167e   :  { %5015 = vsyncpa [#allocation18], 1 }
0x167f   :  { %5016 = vsyncpa [#allocation21], 1 }
0x1680   :  { %5017 = vsyncpa [#allocation24], 1 }
0x1681   :  { %5018 = vsyncpa [#allocation4], 1 }
0x1682   :  { %5020 = vsyncpa [#allocation4 + $0x1], 1 }

</bundles_post_ra>
